<compile_context>
chip_gen: v6e
topology: v6e:2x2x1
jax: 0.10.0
libtpu: 0.0.40
codegen_flags: <defaults>
</compile_context>

<pallas_src>
import functools

import jax
import jax.numpy as jnp
from jax import lax
from jax.experimental import pallas as pl
from jax.experimental.pallas import tpu as pltpu

_TN = 256            # max output-channel tile (multiple of 128)
_LRELU_SLOPE = 0.2


def _round_up(x, m):
    return (x + m - 1) // m * m


def _choose_tn(coutp):
    if coutp <= _TN:
        return coutp
    return _TN if coutp % _TN == 0 else 128


def _full_spec(shape):
    # whole array as one block (block dims equal full array dims)
    return pl.BlockSpec(shape, lambda i, n=len(shape): (0,) * n)


# ---------------------------------------------------------------------------
# Pallas kernels
# ---------------------------------------------------------------------------

def _conv_accum(x_ref, w_ref, b_ref, *, kh, kw, ho, wo):
    """Fused tap-sum conv: returns (ho*wo, tn) f32 = sum_t patch_t @ w_t + b."""
    ci = x_ref.shape[-1]
    tn = w_ref.shape[-1]
    xv = x_ref[0]                                       # (hi, wi, ci) bf16
    acc = jnp.zeros((ho * wo, tn), jnp.float32)
    for t in range(kh * kw):                            # static unroll over taps
        i, j = t // kw, t % kw
        patch = xv[i:i + ho, j:j + wo, :].reshape(ho * wo, ci)
        acc = acc + jnp.dot(patch, w_ref[t], preferred_element_type=jnp.float32)
    return acc + b_ref[...]


def _conv_kernel(x_ref, w_ref, b_ref, o_ref, *, kh, kw, ho, wo, neg_slope):
    y = _conv_accum(x_ref, w_ref, b_ref, kh=kh, kw=kw, ho=ho, wo=wo)
    y = jnp.where(y >= 0, y, neg_slope * y)
    o_ref[...] = y.reshape(1, ho, wo, -1).astype(o_ref.dtype)


def _conv_res_kernel(x_ref, w_ref, b_ref, r_ref, o_ref, *, kh, kw, ho, wo,
                     neg_slope):
    y = _conv_accum(x_ref, w_ref, b_ref, kh=kh, kw=kw, ho=ho, wo=wo)
    y = y + r_ref[0].reshape(ho * wo, -1).astype(jnp.float32)
    y = jnp.where(y >= 0, y, neg_slope * y)
    o_ref[...] = y.reshape(1, ho, wo, -1).astype(o_ref.dtype)


def _conv_pool_kernel(x_ref, w_ref, b_ref, o_ref, *, kh, kw, ho, wo, neg_slope):
    # conv + bias + LeakyReLU + global average pool; feature map never stored.
    y = _conv_accum(x_ref, w_ref, b_ref, kh=kh, kw=kw, ho=ho, wo=wo)
    y = jnp.where(y >= 0, y, neg_slope * y)
    pooled = jnp.sum(y, axis=0, keepdims=True) * (1.0 / (ho * wo))    # (1, tn)
    o_ref[...] = pooled[None].astype(o_ref.dtype)                     # (1, 1, tn)


def _head_kernel(p_ref, wfc_ref, bfc_ref, loc_ref, wloc_ref, bloc_ref, o_ref):
    pooled = p_ref[...]                                               # (B, Pp)
    uncond = jnp.dot(pooled, wfc_ref[...],
                     preferred_element_type=jnp.float32) + bfc_ref[...]      # (B, 1)
    cond_proj = jnp.dot(loc_ref[...], wloc_ref[...],
                        preferred_element_type=jnp.float32) + bloc_ref[...]  # (B, Pp)
    cond = jnp.sum(pooled * cond_proj, axis=1, keepdims=True)                # (B, 1)
    o_ref[...] = (uncond + cond).astype(o_ref.dtype)


# ---------------------------------------------------------------------------
# Pallas wrappers
# ---------------------------------------------------------------------------

def fused_conv(xpad, w_taps, bias, *, kh, kw, residual=None,
               neg_slope=_LRELU_SLOPE):
    """Stride-1 conv on a spatially pre-padded NHWC input.

    xpad:   (B, ho+kh-1, wo+kw-1, ci) bf16
    w_taps: (kh*kw, ci, coutp) bf16     bias: (1, coutp) f32
    residual (optional): (B, ho, wo, coutp) bf16 (added before LeakyReLU)
    returns (B, ho, wo, coutp) bf16, padded output channels exactly zero.
    """
    B, hi, wi, ci = xpad.shape
    ho, wo = hi - kh + 1, wi - kw + 1
    taps, ciw, coutp = w_taps.shape
    assert taps == kh * kw and ciw == ci and coutp % 128 == 0
    tn = _choose_tn(coutp)
    grid = (B, coutp // tn)

    in_specs = [
        pl.BlockSpec((1, hi, wi, ci), lambda b, n: (b, 0, 0, 0)),
        pl.BlockSpec((taps, ciw, tn), lambda b, n: (0, 0, n)),
        pl.BlockSpec((1, tn), lambda b, n: (0, n)),
    ]
    args = [xpad, w_taps, bias]
    io_alias = {}
    if residual is None:
        kern = functools.partial(_conv_kernel, kh=kh, kw=kw, ho=ho, wo=wo,
                                 neg_slope=neg_slope)
    else:
        kern = functools.partial(_conv_res_kernel, kh=kh, kw=kw, ho=ho, wo=wo,
                                 neg_slope=neg_slope)
        in_specs.append(pl.BlockSpec((1, ho, wo, tn), lambda b, n: (b, 0, 0, n)))
        args.append(residual)
        io_alias = {3: 0}        # write the result over the residual buffer

    return pl.pallas_call(
        kern,
        out_shape=jax.ShapeDtypeStruct((B, ho, wo, coutp), jnp.bfloat16),
        grid=grid,
        in_specs=in_specs,
        out_specs=pl.BlockSpec((1, ho, wo, tn), lambda b, n: (b, 0, 0, n)),
        compiler_params=pltpu.CompilerParams(
            dimension_semantics=("parallel", "parallel")),
        input_output_aliases=io_alias,
    )(*args)


def fused_conv_pool(xpad, w_taps, bias, *, kh, kw, neg_slope=_LRELU_SLOPE):
    """Stride-1 conv + LeakyReLU + global mean pool -> (B, coutp) f32."""
    B, hi, wi, ci = xpad.shape
    ho, wo = hi - kh + 1, wi - kw + 1
    taps, ciw, coutp = w_taps.shape
    assert taps == kh * kw and ciw == ci and coutp % 128 == 0
    tn = _choose_tn(coutp)
    grid = (B, coutp // tn)

    pooled = pl.pallas_call(
        functools.partial(_conv_pool_kernel, kh=kh, kw=kw, ho=ho, wo=wo,
                          neg_slope=neg_slope),
        out_shape=jax.ShapeDtypeStruct((B, 1, coutp), jnp.float32),
        grid=grid,
        in_specs=[
            pl.BlockSpec((1, hi, wi, ci), lambda b, n: (b, 0, 0, 0)),
            pl.BlockSpec((taps, ciw, tn), lambda b, n: (0, 0, n)),
            pl.BlockSpec((1, tn), lambda b, n: (0, n)),
        ],
        out_specs=pl.BlockSpec((1, 1, tn), lambda b, n: (b, 0, n)),
        compiler_params=pltpu.CompilerParams(
            dimension_semantics=("parallel", "parallel")),
    )(xpad, w_taps, bias)
    return pooled.reshape(B, coutp)


def head(pooled, loc, wfc, bfc, wloc, bloc):
    B, pp = pooled.shape
    E = loc.shape[1]
    out = pl.pallas_call(
        _head_kernel,
        out_shape=jax.ShapeDtypeStruct((B, 1), jnp.float32),
        grid=(1,),
        in_specs=[_full_spec((B, pp)), _full_spec((pp, 1)), _full_spec((1, 1)),
                  _full_spec((B, E)), _full_spec((E, pp)), _full_spec((1, pp))],
        out_specs=_full_spec((B, 1)),
    )(pooled, wfc, bfc, loc, wloc, bloc)
    return out.reshape(B)


# ---------------------------------------------------------------------------
# XLA-side glue (spatial pad + space-to-depth; both tiny)
# ---------------------------------------------------------------------------

def _pad_hw(x):
    return jnp.pad(x, ((0, 0), (1, 1), (1, 1), (0, 0)))


def _space_to_depth2(x):
    B, H, W, C = x.shape
    x = x.reshape(B, H // 2, 2, W // 2, 2, C)
    x = x.transpose(0, 1, 3, 2, 4, 5)
    return x.reshape(B, H // 2, W // 2, 4 * C)


# ---------------------------------------------------------------------------
# Parameters: raw init + one-time kernel-layout preparation
# ---------------------------------------------------------------------------

def init_params(key, img_in_ch=3, base_feat=64, n_blocks=4,
                satclip_emb_dim=256, proj_dim=512):
    keys = jax.random.split(key, 5 + 2 * n_blocks)

    def conv_p(k, kh, kw, cin, cout):
        k1, k2 = jax.random.split(k)
        s = 1.0 / jnp.sqrt(jnp.float32(kh * kw * cin))
        w = jax.random.uniform(k1, (kh, kw, cin, cout), jnp.float32, -s, s)
        b = jax.random.uniform(k2, (cout,), jnp.float32, -s, s)
        return w, b

    def lin_p(k, din, dout):
        k1, k2 = jax.random.split(k)
        s = 1.0 / jnp.sqrt(jnp.float32(din))
        w = jax.random.uniform(k1, (din, dout), jnp.float32, -s, s)
        b = jax.random.uniform(k2, (dout,), jnp.float32, -s, s)
        return w, b

    return {
        "conv1": conv_p(keys[0], 4, 4, img_in_ch, base_feat),
        "blocks": [(conv_p(keys[1 + 2 * n], 3, 3, base_feat, base_feat),
                    conv_p(keys[2 + 2 * n], 3, 3, base_feat, base_feat))
                   for n in range(n_blocks)],
        "conv2": conv_p(keys[1 + 2 * n_blocks], 4, 4, base_feat, proj_dim),
        "fc_uncond": lin_p(keys[2 + 2 * n_blocks], proj_dim, 1),
        "loc_proj": lin_p(keys[3 + 2 * n_blocks], satclip_emb_dim, proj_dim),
    }


def _prep_conv3x3(w, b, cin_store, cout_store):
    # 3x3 stride-1 conv -> (9, cin_store, cout_store) bf16 taps; padded cin
    # rows and padded cout cols are zero.
    kh, kw, cin, cout = w.shape
    wp = jnp.zeros((kh, kw, cin_store, cout), jnp.float32).at[:, :, :cin, :].set(w)
    wr = wp.reshape(kh * kw, cin_store, cout)
    wr = jnp.pad(wr, ((0, 0), (0, 0), (0, cout_store - cout))).astype(jnp.bfloat16)
    bp = jnp.pad(b, (0, cout_store - cout)).astype(jnp.float32).reshape(1, cout_store)
    return wr, bp


def _prep_conv4x4_s2(w, b, cin_store, cout_store):
    # 4x4 stride-2 conv == 2x2 stride-1 conv over the space-to-depth(2) input.
    kh, kw, cin, cout = w.shape
    assert kh == 4 and kw == 4
    wp = jnp.zeros((kh, kw, cin_store, cout), jnp.float32).at[:, :, :cin, :].set(w)
    wr = wp.reshape(2, 2, 2, 2, cin_store, cout)     # (a, p, b, q, c, o); i=2a+p, j=2b+q
    wr = wr.transpose(0, 2, 1, 3, 4, 5)              # (a, b, p, q, c, o)
    wr = wr.reshape(4, 4 * cin_store, cout)          # taps=(a,b), channels=(p,q,c)
    wr = jnp.pad(wr, ((0, 0), (0, 0), (0, cout_store - cout))).astype(jnp.bfloat16)
    bp = jnp.pad(b, (0, cout_store - cout)).astype(jnp.float32).reshape(1, cout_store)
    return wr, bp


def prepare_params(params, base_feat, proj_dim):
    """One-time (outside jit) weight reshape / channel-pad / bf16 cast."""
    cp = _round_up(base_feat, 128)
    pp = _round_up(proj_dim, 128)

    w, b = params["conv1"]
    conv1 = _prep_conv4x4_s2(w, b, cin_store=w.shape[2], cout_store=cp)
    blocks = [(_prep_conv3x3(w1, b1, cp, cp), _prep_conv3x3(w2, b2, cp, cp))
              for (w1, b1), (w2, b2) in params["blocks"]]
    w, b = params["conv2"]
    conv2 = _prep_conv4x4_s2(w, b, cin_store=cp, cout_store=pp)

    wfc, bfc = params["fc_uncond"]
    wloc, bloc = params["loc_proj"]
    head_p = (jnp.pad(wfc, ((0, pp - proj_dim), (0, 0))).astype(jnp.float32),
              bfc.astype(jnp.float32).reshape(1, 1),
              jnp.pad(wloc, ((0, 0), (0, pp - proj_dim))).astype(jnp.float32),
              jnp.pad(bloc, (0, pp - proj_dim)).astype(jnp.float32).reshape(1, pp))
    return {"conv1": conv1, "blocks": blocks, "conv2": conv2, "head": head_p}


# ---------------------------------------------------------------------------
# Forward
# ---------------------------------------------------------------------------

def loc_match_discriminator(prep, img_nchw, loc_emb):
    B, _, H, W = img_nchw.shape
    assert H % 4 == 0 and W % 4 == 0, "spatial dims must be multiples of 4"

    x = jnp.transpose(img_nchw, (0, 2, 3, 1)).astype(jnp.bfloat16)   # NCHW -> NHWC

    # conv1 (4x4, s2, p1) + LeakyReLU as a fused 2x2 s1 conv on s2d input.
    w, b = prep["conv1"]
    feat = fused_conv(_space_to_depth2(_pad_hw(x)), w, b, kh=2, kw=2)

    # Residual trunk: fused 3x3 convs read the padded activation directly.
    for (w1, b1), (w2, b2) in prep["blocks"]:
        h = fused_conv(_pad_hw(feat), w1, b1, kh=3, kw=3)
        feat = fused_conv(_pad_hw(h), w2, b2, kh=3, kw=3, residual=feat)

    # conv2 (4x4, s2, p1) + LeakyReLU + AdaptiveAvgPool2d(1), fully fused.
    w, b = prep["conv2"]
    pooled = fused_conv_pool(_space_to_depth2(_pad_hw(feat)), w, b, kh=2, kw=2)

    wfc, bfc, wloc, bloc = prep["head"]
    return head(pooled, loc_emb.astype(jnp.float32), wfc, bfc, wloc, bloc)


# ---------------------------------------------------------------------------
# Reference with matching numerics (bf16 storage / MXU, f32 accumulation)
# ---------------------------------------------------------------------------

def _ref_forward(params, img_nchw, loc_emb):
    def lrelu(v):
        return jnp.where(v >= 0, v, 0.2 * v)

    def conv(x_bf16, w, b, stride, pad):
        y = lax.conv_general_dilated(
            x_bf16, w.astype(jnp.bfloat16), (stride, stride),
            [(pad, pad), (pad, pad)],
            dimension_numbers=("NHWC", "HWIO", "NHWC"),
            preferred_element_type=jnp.float32)
        return y + b.reshape(1, 1, 1, -1)

    x = jnp.transpose(img_nchw, (0, 2, 3, 1)).astype(jnp.bfloat16)
    w, b = params["conv1"]
    feat = lrelu(conv(x, w, b, 2, 1)).astype(jnp.bfloat16)
    for (w1, b1), (w2, b2) in params["blocks"]:
        h = lrelu(conv(feat, w1, b1, 1, 1)).astype(jnp.bfloat16)
        feat = lrelu(conv(h, w2, b2, 1, 1) + feat.astype(jnp.float32)).astype(jnp.bfloat16)
    w, b = params["conv2"]
    f2 = lrelu(conv(feat, w, b, 2, 1))
    pooled = jnp.mean(f2, axis=(1, 2))
    wfc, bfc = params["fc_uncond"]
    wloc, bloc = params["loc_proj"]
    uncond = (pooled @ wfc + bfc)[:, 0]
    cond = jnp.sum(pooled * (loc_emb.astype(jnp.float32) @ wloc + bloc), axis=1)
    return uncond + cond


# ---------------------------------------------------------------------------
# Main
# ---------------------------------------------------------------------------

if __name__ == "__main__":
    # Small config consistent with the module's constructor.
    IMG_IN_CH, BASE_FEAT, N_BLOCKS = 3, 32, 2
    SATCLIP_EMB_DIM, PROJ_DIM = 64, 128
    B, H, W = 2, 16, 16

    key = jax.random.PRNGKey(0)
    kp, ki, kl = jax.random.split(key, 3)

    params = init_params(kp, IMG_IN_CH, BASE_FEAT, N_BLOCKS,
                         SATCLIP_EMB_DIM, PROJ_DIM)
    img = jax.random.normal(ki, (B, IMG_IN_CH, H, W), jnp.float32)   # NCHW input
    loc_emb = jax.random.normal(kl, (B, SATCLIP_EMB_DIM), jnp.float32)

    prep = prepare_params(params, BASE_FEAT, PROJ_DIM)               # once, outside jit

    fwd = jax.jit(loc_match_discriminator)
    out = jax.block_until_ready(fwd(prep, img, loc_emb))

    ref = jax.block_until_ready(_ref_forward(params, img, loc_emb))
    assert out.shape == (B,)
    assert bool(jnp.all(jnp.isfinite(out)))
    assert jnp.allclose(out, ref, rtol=2e-2, atol=2e-2), (out, ref)

    print("KERNEL_OK")
</pallas_src>

<mosaic_0001>
module attributes {stable_mosaic.version = 11 : i64} {
  func.func @_conv_kernel(%arg0: i32, %arg1: i32, %arg2: memref<1x9x9x12xbf16, #tpu.memory_space<vmem>>, %arg3: memref<4x12x128xbf16, #tpu.memory_space<vmem>>, %arg4: memref<1x128xf32, #tpu.memory_space<vmem>>, %arg5: memref<1x8x8x128xbf16, #tpu.memory_space<vmem>>) attributes {dimension_semantics = [#tpu.dimension_semantics<parallel>, #tpu.dimension_semantics<parallel>], iteration_bounds = array<i64: 2, 1>, scalar_prefetch = 0 : i64, scratch_operands = 0 : i64, tpu.core_type = #tpu.core_type<tc>, window_params = [{transform_indices = @transform_0, window_bounds = array<i64: 1, 9, 9, 12>}, {transform_indices = @transform_1, window_bounds = array<i64: 4, 12, 128>}, {transform_indices = @transform_2, window_bounds = array<i64: 1, 128>}, {transform_indices = @transform_3, window_bounds = array<i64: 1, 8, 8, 128>}]} {
    %c0 = arith.constant 0 : index
    %c0_0 = arith.constant 0 : index
    %c0_1 = arith.constant 0 : index
    %c0_2 = arith.constant 0 : index
    %0 = vector.load %arg2[%c0, %c0_0, %c0_1, %c0_2] : memref<1x9x9x12xbf16, #tpu.memory_space<vmem>>, vector<1x9x9x12xbf16>
    %1 = vector.shape_cast %0 : vector<1x9x9x12xbf16> to vector<9x9x12xbf16>
    %cst = arith.constant 0.000000e+00 : f32
    %2 = vector.broadcast %cst : f32 to vector<64x128xf32>
    %3 = vector.extract_strided_slice %1 {offsets = [0, 0, 0], sizes = [8, 8, 12], strides = [1, 1, 1]} : vector<9x9x12xbf16> to vector<8x8x12xbf16>
    %4 = vector.shape_cast %3 : vector<8x8x12xbf16> to vector<64x12xbf16>
    %c0_3 = arith.constant 0 : index
    %c0_4 = arith.constant 0 : index
    %c0_5 = arith.constant 0 : index
    %5 = vector.load %arg3[%c0_3, %c0_4, %c0_5] : memref<4x12x128xbf16, #tpu.memory_space<vmem>>, vector<1x12x128xbf16>
    %6 = vector.shape_cast %5 : vector<1x12x128xbf16> to vector<12x128xbf16>
    %cst_6 = arith.constant dense<0.000000e+00> : vector<64x128xf32>
    %7 = tpu.matmul %4, %6, %cst_6 {dimension_numbers = #tpu.dot_dimension_numbers<[1], [0], [0], [1], [0, 0, 1, 1], [], []>} : vector<64x12xbf16>, vector<12x128xbf16>, vector<64x128xf32> -> vector<64x128xf32>
    %8 = arith.addf %2, %7 : vector<64x128xf32>
    %9 = vector.extract_strided_slice %1 {offsets = [0, 1, 0], sizes = [8, 8, 12], strides = [1, 1, 1]} : vector<9x9x12xbf16> to vector<8x8x12xbf16>
    %10 = vector.shape_cast %9 : vector<8x8x12xbf16> to vector<64x12xbf16>
    %c1 = arith.constant 1 : index
    %c0_7 = arith.constant 0 : index
    %c0_8 = arith.constant 0 : index
    %11 = vector.load %arg3[%c1, %c0_7, %c0_8] : memref<4x12x128xbf16, #tpu.memory_space<vmem>>, vector<1x12x128xbf16>
    %12 = vector.shape_cast %11 : vector<1x12x128xbf16> to vector<12x128xbf16>
    %cst_9 = arith.constant dense<0.000000e+00> : vector<64x128xf32>
    %13 = tpu.matmul %10, %12, %cst_9 {dimension_numbers = #tpu.dot_dimension_numbers<[1], [0], [0], [1], [0, 0, 1, 1], [], []>} : vector<64x12xbf16>, vector<12x128xbf16>, vector<64x128xf32> -> vector<64x128xf32>
    %14 = arith.addf %8, %13 : vector<64x128xf32>
    %15 = vector.extract_strided_slice %1 {offsets = [1, 0, 0], sizes = [8, 8, 12], strides = [1, 1, 1]} : vector<9x9x12xbf16> to vector<8x8x12xbf16>
    %16 = vector.shape_cast %15 : vector<8x8x12xbf16> to vector<64x12xbf16>
    %c2 = arith.constant 2 : index
    %c0_10 = arith.constant 0 : index
    %c0_11 = arith.constant 0 : index
    %17 = vector.load %arg3[%c2, %c0_10, %c0_11] : memref<4x12x128xbf16, #tpu.memory_space<vmem>>, vector<1x12x128xbf16>
    %18 = vector.shape_cast %17 : vector<1x12x128xbf16> to vector<12x128xbf16>
    %cst_12 = arith.constant dense<0.000000e+00> : vector<64x128xf32>
    %19 = tpu.matmul %16, %18, %cst_12 {dimension_numbers = #tpu.dot_dimension_numbers<[1], [0], [0], [1], [0, 0, 1, 1], [], []>} : vector<64x12xbf16>, vector<12x128xbf16>, vector<64x128xf32> -> vector<64x128xf32>
    %20 = arith.addf %14, %19 : vector<64x128xf32>
    %21 = vector.extract_strided_slice %1 {offsets = [1, 1, 0], sizes = [8, 8, 12], strides = [1, 1, 1]} : vector<9x9x12xbf16> to vector<8x8x12xbf16>
    %22 = vector.shape_cast %21 : vector<8x8x12xbf16> to vector<64x12xbf16>
    %c3 = arith.constant 3 : index
    %c0_13 = arith.constant 0 : index
    %c0_14 = arith.constant 0 : index
    %23 = vector.load %arg3[%c3, %c0_13, %c0_14] : memref<4x12x128xbf16, #tpu.memory_space<vmem>>, vector<1x12x128xbf16>
    %24 = vector.shape_cast %23 : vector<1x12x128xbf16> to vector<12x128xbf16>
    %cst_15 = arith.constant dense<0.000000e+00> : vector<64x128xf32>
    %25 = tpu.matmul %22, %24, %cst_15 {dimension_numbers = #tpu.dot_dimension_numbers<[1], [0], [0], [1], [0, 0, 1, 1], [], []>} : vector<64x12xbf16>, vector<12x128xbf16>, vector<64x128xf32> -> vector<64x128xf32>
    %26 = arith.addf %20, %25 : vector<64x128xf32>
    %c0_16 = arith.constant 0 : index
    %c0_17 = arith.constant 0 : index
    %27 = vector.load %arg4[%c0_16, %c0_17] : memref<1x128xf32, #tpu.memory_space<vmem>>, vector<1x128xf32>
    %28 = vector.broadcast %27 : vector<1x128xf32> to vector<64x128xf32>
    %29 = arith.addf %26, %28 : vector<64x128xf32>
    %cst_18 = arith.constant 0.000000e+00 : f32
    %30 = vector.broadcast %cst_18 : f32 to vector<64x128xf32>
    %31 = arith.cmpf oge, %29, %30 : vector<64x128xf32>
    %cst_19 = arith.constant 2.000000e-01 : f32
    %32 = vector.broadcast %cst_19 : f32 to vector<64x128xf32>
    %33 = arith.mulf %32, %29 : vector<64x128xf32>
    %34 = arith.select %31, %29, %33 : vector<64x128xi1>, vector<64x128xf32>
    %35 = vector.shape_cast %34 : vector<64x128xf32> to vector<1x8x8x128xf32>
    %36 = arith.truncf %35 : vector<1x8x8x128xf32> to vector<1x8x8x128xbf16>
    %c0_20 = arith.constant 0 : index
    %c0_21 = arith.constant 0 : index
    %c0_22 = arith.constant 0 : index
    %c0_23 = arith.constant 0 : index
    %37 = vector.load %arg5[%c0_20, %c0_21, %c0_22, %c0_23] : memref<1x8x8x128xbf16, #tpu.memory_space<vmem>>, vector<1x8x8x128xbf16>
    tpu.vector_store %arg5[%c0_20, %c0_21, %c0_22, %c0_23], %36 {strides = array<i32>} : memref<1x8x8x128xbf16, #tpu.memory_space<vmem>>, vector<1x8x8x128xbf16>,
    return
  }
  func.func @transform_0(%arg0: i32, %arg1: i32) -> (i32, i32, i32, i32) {
    %c0_i32 = arith.constant 0 : i32
    %c0_i32_0 = arith.constant 0 : i32
    %c0_i32_1 = arith.constant 0 : i32
    %c0_i32_2 = arith.constant 0 : i32
    return %arg0, %c0_i32, %c0_i32_0, %c0_i32_1 : i32, i32, i32, i32
  }
  func.func @transform_1(%arg0: i32, %arg1: i32) -> (i32, i32, i32) {
    %c0_i32 = arith.constant 0 : i32
    %c0_i32_0 = arith.constant 0 : i32
    %c0_i32_1 = arith.constant 0 : i32
    return %c0_i32, %c0_i32_0, %arg1 : i32, i32, i32
  }
  func.func @transform_2(%arg0: i32, %arg1: i32) -> (i32, i32) {
    %c0_i32 = arith.constant 0 : i32
    %c0_i32_0 = arith.constant 0 : i32
    return %c0_i32, %arg1 : i32, i32
  }
  func.func @transform_3(%arg0: i32, %arg1: i32) -> (i32, i32, i32, i32) {
    %c0_i32 = arith.constant 0 : i32
    %c0_i32_0 = arith.constant 0 : i32
    %c0_i32_1 = arith.constant 0 : i32
    return %arg0, %c0_i32, %c0_i32_0, %arg1 : i32, i32, i32, i32
  }
}

module attributes {stable_mosaic.version = 11 : i64} {
  func.func @_conv_kernel(%arg0: i32, %arg1: i32, %arg2: memref<1x10x10x128xbf16, #tpu.memory_space<vmem>>, %arg3: memref<9x128x128xbf16, #tpu.memory_space<vmem>>, %arg4: memref<1x128xf32, #tpu.memory_space<vmem>>, %arg5: memref<1x8x8x128xbf16, #tpu.memory_space<vmem>>) attributes {dimension_semantics = [#tpu.dimension_semantics<parallel>, #tpu.dimension_semantics<parallel>], iteration_bounds = array<i64: 2, 1>, scalar_prefetch = 0 : i64, scratch_operands = 0 : i64, tpu.core_type = #tpu.core_type<tc>, window_params = [{transform_indices = @transform_0, window_bounds = array<i64: 1, 10, 10, 128>}, {transform_indices = @transform_1, window_bounds = array<i64: 9, 128, 128>}, {transform_indices = @transform_2, window_bounds = array<i64: 1, 128>}, {transform_indices = @transform_3, window_bounds = array<i64: 1, 8, 8, 128>}]} {
    %c0 = arith.constant 0 : index
    %c0_0 = arith.constant 0 : index
    %c0_1 = arith.constant 0 : index
    %c0_2 = arith.constant 0 : index
    %0 = vector.load %arg2[%c0, %c0_0, %c0_1, %c0_2] : memref<1x10x10x128xbf16, #tpu.memory_space<vmem>>, vector<1x10x10x128xbf16>
    %1 = vector.shape_cast %0 : vector<1x10x10x128xbf16> to vector<10x10x128xbf16>
    %cst = arith.constant 0.000000e+00 : f32
    %2 = vector.broadcast %cst : f32 to vector<64x128xf32>
    %3 = vector.extract_strided_slice %1 {offsets = [0, 0, 0], sizes = [8, 8, 128], strides = [1, 1, 1]} : vector<10x10x128xbf16> to vector<8x8x128xbf16>
    %4 = vector.shape_cast %3 : vector<8x8x128xbf16> to vector<64x128xbf16>
    %c0_3 = arith.constant 0 : index
    %c0_4 = arith.constant 0 : index
    %c0_5 = arith.constant 0 : index
    %5 = vector.load %arg3[%c0_3, %c0_4, %c0_5] : memref<9x128x128xbf16, #tpu.memory_space<vmem>>, vector<1x128x128xbf16>
    %6 = vector.shape_cast %5 : vector<1x128x128xbf16> to vector<128x128xbf16>
    %cst_6 = arith.constant dense<0.000000e+00> : vector<64x128xf32>
    %7 = tpu.matmul %4, %6, %cst_6 {dimension_numbers = #tpu.dot_dimension_numbers<[1], [0], [0], [1], [0, 0, 1, 1], [], []>} : vector<64x128xbf16>, vector<128x128xbf16>, vector<64x128xf32> -> vector<64x128xf32>
    %8 = arith.addf %2, %7 : vector<64x128xf32>
    %9 = vector.extract_strided_slice %1 {offsets = [0, 1, 0], sizes = [8, 8, 128], strides = [1, 1, 1]} : vector<10x10x128xbf16> to vector<8x8x128xbf16>
    %10 = vector.shape_cast %9 : vector<8x8x128xbf16> to vector<64x128xbf16>
    %c1 = arith.constant 1 : index
    %c0_7 = arith.constant 0 : index
    %c0_8 = arith.constant 0 : index
    %11 = vector.load %arg3[%c1, %c0_7, %c0_8] : memref<9x128x128xbf16, #tpu.memory_space<vmem>>, vector<1x128x128xbf16>
    %12 = vector.shape_cast %11 : vector<1x128x128xbf16> to vector<128x128xbf16>
    %cst_9 = arith.constant dense<0.000000e+00> : vector<64x128xf32>
    %13 = tpu.matmul %10, %12, %cst_9 {dimension_numbers = #tpu.dot_dimension_numbers<[1], [0], [0], [1], [0, 0, 1, 1], [], []>} : vector<64x128xbf16>, vector<128x128xbf16>, vector<64x128xf32> -> vector<64x128xf32>
    %14 = arith.addf %8, %13 : vector<64x128xf32>
    %15 = vector.extract_strided_slice %1 {offsets = [0, 2, 0], sizes = [8, 8, 128], strides = [1, 1, 1]} : vector<10x10x128xbf16> to vector<8x8x128xbf16>
    %16 = vector.shape_cast %15 : vector<8x8x128xbf16> to vector<64x128xbf16>
    %c2 = arith.constant 2 : index
    %c0_10 = arith.constant 0 : index
    %c0_11 = arith.constant 0 : index
    %17 = vector.load %arg3[%c2, %c0_10, %c0_11] : memref<9x128x128xbf16, #tpu.memory_space<vmem>>, vector<1x128x128xbf16>
    %18 = vector.shape_cast %17 : vector<1x128x128xbf16> to vector<128x128xbf16>
    %cst_12 = arith.constant dense<0.000000e+00> : vector<64x128xf32>
    %19 = tpu.matmul %16, %18, %cst_12 {dimension_numbers = #tpu.dot_dimension_numbers<[1], [0], [0], [1], [0, 0, 1, 1], [], []>} : vector<64x128xbf16>, vector<128x128xbf16>, vector<64x128xf32> -> vector<64x128xf32>
    %20 = arith.addf %14, %19 : vector<64x128xf32>
    %21 = vector.extract_strided_slice %1 {offsets = [1, 0, 0], sizes = [8, 8, 128], strides = [1, 1, 1]} : vector<10x10x128xbf16> to vector<8x8x128xbf16>
    %22 = vector.shape_cast %21 : vector<8x8x128xbf16> to vector<64x128xbf16>
    %c3 = arith.constant 3 : index
    %c0_13 = arith.constant 0 : index
    %c0_14 = arith.constant 0 : index
    %23 = vector.load %arg3[%c3, %c0_13, %c0_14] : memref<9x128x128xbf16, #tpu.memory_space<vmem>>, vector<1x128x128xbf16>
    %24 = vector.shape_cast %23 : vector<1x128x128xbf16> to vector<128x128xbf16>
    %cst_15 = arith.constant dense<0.000000e+00> : vector<64x128xf32>
    %25 = tpu.matmul %22, %24, %cst_15 {dimension_numbers = #tpu.dot_dimension_numbers<[1], [0], [0], [1], [0, 0, 1, 1], [], []>} : vector<64x128xbf16>, vector<128x128xbf16>, vector<64x128xf32> -> vector<64x128xf32>
    %26 = arith.addf %20, %25 : vector<64x128xf32>
    %27 = vector.extract_strided_slice %1 {offsets = [1, 1, 0], sizes = [8, 8, 128], strides = [1, 1, 1]} : vector<10x10x128xbf16> to vector<8x8x128xbf16>
    %28 = vector.shape_cast %27 : vector<8x8x128xbf16> to vector<64x128xbf16>
    %c4 = arith.constant 4 : index
    %c0_16 = arith.constant 0 : index
    %c0_17 = arith.constant 0 : index
    %29 = vector.load %arg3[%c4, %c0_16, %c0_17] : memref<9x128x128xbf16, #tpu.memory_space<vmem>>, vector<1x128x128xbf16>
    %30 = vector.shape_cast %29 : vector<1x128x128xbf16> to vector<128x128xbf16>
    %cst_18 = arith.constant dense<0.000000e+00> : vector<64x128xf32>
    %31 = tpu.matmul %28, %30, %cst_18 {dimension_numbers = #tpu.dot_dimension_numbers<[1], [0], [0], [1], [0, 0, 1, 1], [], []>} : vector<64x128xbf16>, vector<128x128xbf16>, vector<64x128xf32> -> vector<64x128xf32>
    %32 = arith.addf %26, %31 : vector<64x128xf32>
    %33 = vector.extract_strided_slice %1 {offsets = [1, 2, 0], sizes = [8, 8, 128], strides = [1, 1, 1]} : vector<10x10x128xbf16> to vector<8x8x128xbf16>
    %34 = vector.shape_cast %33 : vector<8x8x128xbf16> to vector<64x128xbf16>
    %c5 = arith.constant 5 : index
    %c0_19 = arith.constant 0 : index
    %c0_20 = arith.constant 0 : index
    %35 = vector.load %arg3[%c5, %c0_19, %c0_20] : memref<9x128x128xbf16, #tpu.memory_space<vmem>>, vector<1x128x128xbf16>
    %36 = vector.shape_cast %35 : vector<1x128x128xbf16> to vector<128x128xbf16>
    %cst_21 = arith.constant dense<0.000000e+00> : vector<64x128xf32>
    %37 = tpu.matmul %34, %36, %cst_21 {dimension_numbers = #tpu.dot_dimension_numbers<[1], [0], [0], [1], [0, 0, 1, 1], [], []>} : vector<64x128xbf16>, vector<128x128xbf16>, vector<64x128xf32> -> vector<64x128xf32>
    %38 = arith.addf %32, %37 : vector<64x128xf32>
    %39 = vector.extract_strided_slice %1 {offsets = [2, 0, 0], sizes = [8, 8, 128], strides = [1, 1, 1]} : vector<10x10x128xbf16> to vector<8x8x128xbf16>
    %40 = vector.shape_cast %39 : vector<8x8x128xbf16> to vector<64x128xbf16>
    %c6 = arith.constant 6 : index
    %c0_22 = arith.constant 0 : index
    %c0_23 = arith.constant 0 : index
    %41 = vector.load %arg3[%c6, %c0_22, %c0_23] : memref<9x128x128xbf16, #tpu.memory_space<vmem>>, vector<1x128x128xbf16>
    %42 = vector.shape_cast %41 : vector<1x128x128xbf16> to vector<128x128xbf16>
    %cst_24 = arith.constant dense<0.000000e+00> : vector<64x128xf32>
    %43 = tpu.matmul %40, %42, %cst_24 {dimension_numbers = #tpu.dot_dimension_numbers<[1], [0], [0], [1], [0, 0, 1, 1], [], []>} : vector<64x128xbf16>, vector<128x128xbf16>, vector<64x128xf32> -> vector<64x128xf32>
    %44 = arith.addf %38, %43 : vector<64x128xf32>
    %45 = vector.extract_strided_slice %1 {offsets = [2, 1, 0], sizes = [8, 8, 128], strides = [1, 1, 1]} : vector<10x10x128xbf16> to vector<8x8x128xbf16>
    %46 = vector.shape_cast %45 : vector<8x8x128xbf16> to vector<64x128xbf16>
    %c7 = arith.constant 7 : index
    %c0_25 = arith.constant 0 : index
    %c0_26 = arith.constant 0 : index
    %47 = vector.load %arg3[%c7, %c0_25, %c0_26] : memref<9x128x128xbf16, #tpu.memory_space<vmem>>, vector<1x128x128xbf16>
    %48 = vector.shape_cast %47 : vector<1x128x128xbf16> to vector<128x128xbf16>
    %cst_27 = arith.constant dense<0.000000e+00> : vector<64x128xf32>
    %49 = tpu.matmul %46, %48, %cst_27 {dimension_numbers = #tpu.dot_dimension_numbers<[1], [0], [0], [1], [0, 0, 1, 1], [], []>} : vector<64x128xbf16>, vector<128x128xbf16>, vector<64x128xf32> -> vector<64x128xf32>
    %50 = arith.addf %44, %49 : vector<64x128xf32>
    %51 = vector.extract_strided_slice %1 {offsets = [2, 2, 0], sizes = [8, 8, 128], strides = [1, 1, 1]} : vector<10x10x128xbf16> to vector<8x8x128xbf16>
    %52 = vector.shape_cast %51 : vector<8x8x128xbf16> to vector<64x128xbf16>
    %c8 = arith.constant 8 : index
    %c0_28 = arith.constant 0 : index
    %c0_29 = arith.constant 0 : index
    %53 = vector.load %arg3[%c8, %c0_28, %c0_29] : memref<9x128x128xbf16, #tpu.memory_space<vmem>>, vector<1x128x128xbf16>
    %54 = vector.shape_cast %53 : vector<1x128x128xbf16> to vector<128x128xbf16>
    %cst_30 = arith.constant dense<0.000000e+00> : vector<64x128xf32>
    %55 = tpu.matmul %52, %54, %cst_30 {dimension_numbers = #tpu.dot_dimension_numbers<[1], [0], [0], [1], [0, 0, 1, 1], [], []>} : vector<64x128xbf16>, vector<128x128xbf16>, vector<64x128xf32> -> vector<64x128xf32>
    %56 = arith.addf %50, %55 : vector<64x128xf32>
    %c0_31 = arith.constant 0 : index
    %c0_32 = arith.constant 0 : index
    %57 = vector.load %arg4[%c0_31, %c0_32] : memref<1x128xf32, #tpu.memory_space<vmem>>, vector<1x128xf32>
    %58 = vector.broadcast %57 : vector<1x128xf32> to vector<64x128xf32>
    %59 = arith.addf %56, %58 : vector<64x128xf32>
    %cst_33 = arith.constant 0.000000e+00 : f32
    %60 = vector.broadcast %cst_33 : f32 to vector<64x128xf32>
    %61 = arith.cmpf oge, %59, %60 : vector<64x128xf32>
    %cst_34 = arith.constant 2.000000e-01 : f32
    %62 = vector.broadcast %cst_34 : f32 to vector<64x128xf32>
    %63 = arith.mulf %62, %59 : vector<64x128xf32>
    %64 = arith.select %61, %59, %63 : vector<64x128xi1>, vector<64x128xf32>
    %65 = vector.shape_cast %64 : vector<64x128xf32> to vector<1x8x8x128xf32>
    %66 = arith.truncf %65 : vector<1x8x8x128xf32> to vector<1x8x8x128xbf16>
    %c0_35 = arith.constant 0 : index
    %c0_36 = arith.constant 0 : index
    %c0_37 = arith.constant 0 : index
    %c0_38 = arith.constant 0 : index
    %67 = vector.load %arg5[%c0_35, %c0_36, %c0_37, %c0_38] : memref<1x8x8x128xbf16, #tpu.memory_space<vmem>>, vector<1x8x8x128xbf16>
    tpu.vector_store %arg5[%c0_35, %c0_36, %c0_37, %c0_38], %66 {strides = array<i32>} : memref<1x8x8x128xbf16, #tpu.memory_space<vmem>>, vector<1x8x8x128xbf16>,
    return
  }
  func.func @transform_0(%arg0: i32, %arg1: i32) -> (i32, i32, i32, i32) {
    %c0_i32 = arith.constant 0 : i32
    %c0_i32_0 = arith.constant 0 : i32
    %c0_i32_1 = arith.constant 0 : i32
    %c0_i32_2 = arith.constant 0 : i32
    return %arg0, %c0_i32, %c0_i32_0, %c0_i32_1 : i32, i32, i32, i32
  }
  func.func @transform_1(%arg0: i32, %arg1: i32) -> (i32, i32, i32) {
    %c0_i32 = arith.constant 0 : i32
    %c0_i32_0 = arith.constant 0 : i32
    %c0_i32_1 = arith.constant 0 : i32
    return %c0_i32, %c0_i32_0, %arg1 : i32, i32, i32
  }
  func.func @transform_2(%arg0: i32, %arg1: i32) -> (i32, i32) {
    %c0_i32 = arith.constant 0 : i32
    %c0_i32_0 = arith.constant 0 : i32
    return %c0_i32, %arg1 : i32, i32
  }
  func.func @transform_3(%arg0: i32, %arg1: i32) -> (i32, i32, i32, i32) {
    %c0_i32 = arith.constant 0 : i32
    %c0_i32_0 = arith.constant 0 : i32
    %c0_i32_1 = arith.constant 0 : i32
    return %arg0, %c0_i32, %c0_i32_0, %arg1 : i32, i32, i32, i32
  }
}

module attributes {stable_mosaic.version = 11 : i64} {
  func.func @_conv_res_kernel(%arg0: i32, %arg1: i32, %arg2: memref<1x10x10x128xbf16, #tpu.memory_space<vmem>>, %arg3: memref<9x128x128xbf16, #tpu.memory_space<vmem>>, %arg4: memref<1x128xf32, #tpu.memory_space<vmem>>, %arg5: memref<1x8x8x128xbf16, #tpu.memory_space<vmem>>, %arg6: memref<1x8x8x128xbf16, #tpu.memory_space<vmem>>) attributes {dimension_semantics = [#tpu.dimension_semantics<parallel>, #tpu.dimension_semantics<parallel>], iteration_bounds = array<i64: 2, 1>, scalar_prefetch = 0 : i64, scratch_operands = 0 : i64, tpu.core_type = #tpu.core_type<tc>, window_params = [{transform_indices = @transform_0, window_bounds = array<i64: 1, 10, 10, 128>}, {transform_indices = @transform_1, window_bounds = array<i64: 9, 128, 128>}, {transform_indices = @transform_2, window_bounds = array<i64: 1, 128>}, {transform_indices = @transform_3, window_bounds = array<i64: 1, 8, 8, 128>}, {transform_indices = @transform_4, window_bounds = array<i64: 1, 8, 8, 128>}]} {
    %c0 = arith.constant 0 : index
    %c0_0 = arith.constant 0 : index
    %c0_1 = arith.constant 0 : index
    %c0_2 = arith.constant 0 : index
    %0 = vector.load %arg2[%c0, %c0_0, %c0_1, %c0_2] : memref<1x10x10x128xbf16, #tpu.memory_space<vmem>>, vector<1x10x10x128xbf16>
    %1 = vector.shape_cast %0 : vector<1x10x10x128xbf16> to vector<10x10x128xbf16>
    %cst = arith.constant 0.000000e+00 : f32
    %2 = vector.broadcast %cst : f32 to vector<64x128xf32>
    %3 = vector.extract_strided_slice %1 {offsets = [0, 0, 0], sizes = [8, 8, 128], strides = [1, 1, 1]} : vector<10x10x128xbf16> to vector<8x8x128xbf16>
    %4 = vector.shape_cast %3 : vector<8x8x128xbf16> to vector<64x128xbf16>
    %c0_3 = arith.constant 0 : index
    %c0_4 = arith.constant 0 : index
    %c0_5 = arith.constant 0 : index
    %5 = vector.load %arg3[%c0_3, %c0_4, %c0_5] : memref<9x128x128xbf16, #tpu.memory_space<vmem>>, vector<1x128x128xbf16>
    %6 = vector.shape_cast %5 : vector<1x128x128xbf16> to vector<128x128xbf16>
    %cst_6 = arith.constant dense<0.000000e+00> : vector<64x128xf32>
    %7 = tpu.matmul %4, %6, %cst_6 {dimension_numbers = #tpu.dot_dimension_numbers<[1], [0], [0], [1], [0, 0, 1, 1], [], []>} : vector<64x128xbf16>, vector<128x128xbf16>, vector<64x128xf32> -> vector<64x128xf32>
    %8 = arith.addf %2, %7 : vector<64x128xf32>
    %9 = vector.extract_strided_slice %1 {offsets = [0, 1, 0], sizes = [8, 8, 128], strides = [1, 1, 1]} : vector<10x10x128xbf16> to vector<8x8x128xbf16>
    %10 = vector.shape_cast %9 : vector<8x8x128xbf16> to vector<64x128xbf16>
    %c1 = arith.constant 1 : index
    %c0_7 = arith.constant 0 : index
    %c0_8 = arith.constant 0 : index
    %11 = vector.load %arg3[%c1, %c0_7, %c0_8] : memref<9x128x128xbf16, #tpu.memory_space<vmem>>, vector<1x128x128xbf16>
    %12 = vector.shape_cast %11 : vector<1x128x128xbf16> to vector<128x128xbf16>
    %cst_9 = arith.constant dense<0.000000e+00> : vector<64x128xf32>
    %13 = tpu.matmul %10, %12, %cst_9 {dimension_numbers = #tpu.dot_dimension_numbers<[1], [0], [0], [1], [0, 0, 1, 1], [], []>} : vector<64x128xbf16>, vector<128x128xbf16>, vector<64x128xf32> -> vector<64x128xf32>
    %14 = arith.addf %8, %13 : vector<64x128xf32>
    %15 = vector.extract_strided_slice %1 {offsets = [0, 2, 0], sizes = [8, 8, 128], strides = [1, 1, 1]} : vector<10x10x128xbf16> to vector<8x8x128xbf16>
    %16 = vector.shape_cast %15 : vector<8x8x128xbf16> to vector<64x128xbf16>
    %c2 = arith.constant 2 : index
    %c0_10 = arith.constant 0 : index
    %c0_11 = arith.constant 0 : index
    %17 = vector.load %arg3[%c2, %c0_10, %c0_11] : memref<9x128x128xbf16, #tpu.memory_space<vmem>>, vector<1x128x128xbf16>
    %18 = vector.shape_cast %17 : vector<1x128x128xbf16> to vector<128x128xbf16>
    %cst_12 = arith.constant dense<0.000000e+00> : vector<64x128xf32>
    %19 = tpu.matmul %16, %18, %cst_12 {dimension_numbers = #tpu.dot_dimension_numbers<[1], [0], [0], [1], [0, 0, 1, 1], [], []>} : vector<64x128xbf16>, vector<128x128xbf16>, vector<64x128xf32> -> vector<64x128xf32>
    %20 = arith.addf %14, %19 : vector<64x128xf32>
    %21 = vector.extract_strided_slice %1 {offsets = [1, 0, 0], sizes = [8, 8, 128], strides = [1, 1, 1]} : vector<10x10x128xbf16> to vector<8x8x128xbf16>
    %22 = vector.shape_cast %21 : vector<8x8x128xbf16> to vector<64x128xbf16>
    %c3 = arith.constant 3 : index
    %c0_13 = arith.constant 0 : index
    %c0_14 = arith.constant 0 : index
    %23 = vector.load %arg3[%c3, %c0_13, %c0_14] : memref<9x128x128xbf16, #tpu.memory_space<vmem>>, vector<1x128x128xbf16>
    %24 = vector.shape_cast %23 : vector<1x128x128xbf16> to vector<128x128xbf16>
    %cst_15 = arith.constant dense<0.000000e+00> : vector<64x128xf32>
    %25 = tpu.matmul %22, %24, %cst_15 {dimension_numbers = #tpu.dot_dimension_numbers<[1], [0], [0], [1], [0, 0, 1, 1], [], []>} : vector<64x128xbf16>, vector<128x128xbf16>, vector<64x128xf32> -> vector<64x128xf32>
    %26 = arith.addf %20, %25 : vector<64x128xf32>
    %27 = vector.extract_strided_slice %1 {offsets = [1, 1, 0], sizes = [8, 8, 128], strides = [1, 1, 1]} : vector<10x10x128xbf16> to vector<8x8x128xbf16>
    %28 = vector.shape_cast %27 : vector<8x8x128xbf16> to vector<64x128xbf16>
    %c4 = arith.constant 4 : index
    %c0_16 = arith.constant 0 : index
    %c0_17 = arith.constant 0 : index
    %29 = vector.load %arg3[%c4, %c0_16, %c0_17] : memref<9x128x128xbf16, #tpu.memory_space<vmem>>, vector<1x128x128xbf16>
    %30 = vector.shape_cast %29 : vector<1x128x128xbf16> to vector<128x128xbf16>
    %cst_18 = arith.constant dense<0.000000e+00> : vector<64x128xf32>
    %31 = tpu.matmul %28, %30, %cst_18 {dimension_numbers = #tpu.dot_dimension_numbers<[1], [0], [0], [1], [0, 0, 1, 1], [], []>} : vector<64x128xbf16>, vector<128x128xbf16>, vector<64x128xf32> -> vector<64x128xf32>
    %32 = arith.addf %26, %31 : vector<64x128xf32>
    %33 = vector.extract_strided_slice %1 {offsets = [1, 2, 0], sizes = [8, 8, 128], strides = [1, 1, 1]} : vector<10x10x128xbf16> to vector<8x8x128xbf16>
    %34 = vector.shape_cast %33 : vector<8x8x128xbf16> to vector<64x128xbf16>
    %c5 = arith.constant 5 : index
    %c0_19 = arith.constant 0 : index
    %c0_20 = arith.constant 0 : index
    %35 = vector.load %arg3[%c5, %c0_19, %c0_20] : memref<9x128x128xbf16, #tpu.memory_space<vmem>>, vector<1x128x128xbf16>
    %36 = vector.shape_cast %35 : vector<1x128x128xbf16> to vector<128x128xbf16>
    %cst_21 = arith.constant dense<0.000000e+00> : vector<64x128xf32>
    %37 = tpu.matmul %34, %36, %cst_21 {dimension_numbers = #tpu.dot_dimension_numbers<[1], [0], [0], [1], [0, 0, 1, 1], [], []>} : vector<64x128xbf16>, vector<128x128xbf16>, vector<64x128xf32> -> vector<64x128xf32>
    %38 = arith.addf %32, %37 : vector<64x128xf32>
    %39 = vector.extract_strided_slice %1 {offsets = [2, 0, 0], sizes = [8, 8, 128], strides = [1, 1, 1]} : vector<10x10x128xbf16> to vector<8x8x128xbf16>
    %40 = vector.shape_cast %39 : vector<8x8x128xbf16> to vector<64x128xbf16>
    %c6 = arith.constant 6 : index
    %c0_22 = arith.constant 0 : index
    %c0_23 = arith.constant 0 : index
    %41 = vector.load %arg3[%c6, %c0_22, %c0_23] : memref<9x128x128xbf16, #tpu.memory_space<vmem>>, vector<1x128x128xbf16>
    %42 = vector.shape_cast %41 : vector<1x128x128xbf16> to vector<128x128xbf16>
    %cst_24 = arith.constant dense<0.000000e+00> : vector<64x128xf32>
    %43 = tpu.matmul %40, %42, %cst_24 {dimension_numbers = #tpu.dot_dimension_numbers<[1], [0], [0], [1], [0, 0, 1, 1], [], []>} : vector<64x128xbf16>, vector<128x128xbf16>, vector<64x128xf32> -> vector<64x128xf32>
    %44 = arith.addf %38, %43 : vector<64x128xf32>
    %45 = vector.extract_strided_slice %1 {offsets = [2, 1, 0], sizes = [8, 8, 128], strides = [1, 1, 1]} : vector<10x10x128xbf16> to vector<8x8x128xbf16>
    %46 = vector.shape_cast %45 : vector<8x8x128xbf16> to vector<64x128xbf16>
    %c7 = arith.constant 7 : index
    %c0_25 = arith.constant 0 : index
    %c0_26 = arith.constant 0 : index
    %47 = vector.load %arg3[%c7, %c0_25, %c0_26] : memref<9x128x128xbf16, #tpu.memory_space<vmem>>, vector<1x128x128xbf16>
    %48 = vector.shape_cast %47 : vector<1x128x128xbf16> to vector<128x128xbf16>
    %cst_27 = arith.constant dense<0.000000e+00> : vector<64x128xf32>
    %49 = tpu.matmul %46, %48, %cst_27 {dimension_numbers = #tpu.dot_dimension_numbers<[1], [0], [0], [1], [0, 0, 1, 1], [], []>} : vector<64x128xbf16>, vector<128x128xbf16>, vector<64x128xf32> -> vector<64x128xf32>
    %50 = arith.addf %44, %49 : vector<64x128xf32>
    %51 = vector.extract_strided_slice %1 {offsets = [2, 2, 0], sizes = [8, 8, 128], strides = [1, 1, 1]} : vector<10x10x128xbf16> to vector<8x8x128xbf16>
    %52 = vector.shape_cast %51 : vector<8x8x128xbf16> to vector<64x128xbf16>
    %c8 = arith.constant 8 : index
    %c0_28 = arith.constant 0 : index
    %c0_29 = arith.constant 0 : index
    %53 = vector.load %arg3[%c8, %c0_28, %c0_29] : memref<9x128x128xbf16, #tpu.memory_space<vmem>>, vector<1x128x128xbf16>
    %54 = vector.shape_cast %53 : vector<1x128x128xbf16> to vector<128x128xbf16>
    %cst_30 = arith.constant dense<0.000000e+00> : vector<64x128xf32>
    %55 = tpu.matmul %52, %54, %cst_30 {dimension_numbers = #tpu.dot_dimension_numbers<[1], [0], [0], [1], [0, 0, 1, 1], [], []>} : vector<64x128xbf16>, vector<128x128xbf16>, vector<64x128xf32> -> vector<64x128xf32>
    %56 = arith.addf %50, %55 : vector<64x128xf32>
    %c0_31 = arith.constant 0 : index
    %c0_32 = arith.constant 0 : index
    %57 = vector.load %arg4[%c0_31, %c0_32] : memref<1x128xf32, #tpu.memory_space<vmem>>, vector<1x128xf32>
    %58 = vector.broadcast %57 : vector<1x128xf32> to vector<64x128xf32>
    %59 = arith.addf %56, %58 : vector<64x128xf32>
    %c0_33 = arith.constant 0 : index
    %c0_34 = arith.constant 0 : index
    %c0_35 = arith.constant 0 : index
    %c0_36 = arith.constant 0 : index
    %60 = vector.load %arg5[%c0_33, %c0_34, %c0_35, %c0_36] : memref<1x8x8x128xbf16, #tpu.memory_space<vmem>>, vector<1x8x8x128xbf16>
    %61 = vector.shape_cast %60 : vector<1x8x8x128xbf16> to vector<8x8x128xbf16>
    %62 = vector.shape_cast %61 : vector<8x8x128xbf16> to vector<64x128xbf16>
    %63 = arith.extf %62 : vector<64x128xbf16> to vector<64x128xf32>
    %64 = arith.addf %59, %63 : vector<64x128xf32>
    %cst_37 = arith.constant 0.000000e+00 : f32
    %65 = vector.broadcast %cst_37 : f32 to vector<64x128xf32>
    %66 = arith.cmpf oge, %64, %65 : vector<64x128xf32>
    %cst_38 = arith.constant 2.000000e-01 : f32
    %67 = vector.broadcast %cst_38 : f32 to vector<64x128xf32>
    %68 = arith.mulf %67, %64 : vector<64x128xf32>
    %69 = arith.select %66, %64, %68 : vector<64x128xi1>, vector<64x128xf32>
    %70 = vector.shape_cast %69 : vector<64x128xf32> to vector<1x8x8x128xf32>
    %71 = arith.truncf %70 : vector<1x8x8x128xf32> to vector<1x8x8x128xbf16>
    %c0_39 = arith.constant 0 : index
    %c0_40 = arith.constant 0 : index
    %c0_41 = arith.constant 0 : index
    %c0_42 = arith.constant 0 : index
    %72 = vector.load %arg6[%c0_39, %c0_40, %c0_41, %c0_42] : memref<1x8x8x128xbf16, #tpu.memory_space<vmem>>, vector<1x8x8x128xbf16>
    tpu.vector_store %arg6[%c0_39, %c0_40, %c0_41, %c0_42], %71 {strides = array<i32>} : memref<1x8x8x128xbf16, #tpu.memory_space<vmem>>, vector<1x8x8x128xbf16>,
    return
  }
  func.func @transform_0(%arg0: i32, %arg1: i32) -> (i32, i32, i32, i32) {
    %c0_i32 = arith.constant 0 : i32
    %c0_i32_0 = arith.constant 0 : i32
    %c0_i32_1 = arith.constant 0 : i32
    %c0_i32_2 = arith.constant 0 : i32
    return %arg0, %c0_i32, %c0_i32_0, %c0_i32_1 : i32, i32, i32, i32
  }
  func.func @transform_1(%arg0: i32, %arg1: i32) -> (i32, i32, i32) {
    %c0_i32 = arith.constant 0 : i32
    %c0_i32_0 = arith.constant 0 : i32
    %c0_i32_1 = arith.constant 0 : i32
    return %c0_i32, %c0_i32_0, %arg1 : i32, i32, i32
  }
  func.func @transform_2(%arg0: i32, %arg1: i32) -> (i32, i32) {
    %c0_i32 = arith.constant 0 : i32
    %c0_i32_0 = arith.constant 0 : i32
    return %c0_i32, %arg1 : i32, i32
  }
  func.func @transform_3(%arg0: i32, %arg1: i32) -> (i32, i32, i32, i32) {
    %c0_i32 = arith.constant 0 : i32
    %c0_i32_0 = arith.constant 0 : i32
    %c0_i32_1 = arith.constant 0 : i32
    return %arg0, %c0_i32, %c0_i32_0, %arg1 : i32, i32, i32, i32
  }
  func.func @transform_4(%arg0: i32, %arg1: i32) -> (i32, i32, i32, i32) {
    %c0_i32 = arith.constant 0 : i32
    %c0_i32_0 = arith.constant 0 : i32
    %c0_i32_1 = arith.constant 0 : i32
    return %arg0, %c0_i32, %c0_i32_0, %arg1 : i32, i32, i32, i32
  }
}

module attributes {stable_mosaic.version = 11 : i64} {
  func.func @_head_kernel(%arg0: i32, %arg1: memref<2x128xf32, #tpu.memory_space<vmem>>, %arg2: memref<128x1xf32, #tpu.memory_space<vmem>>, %arg3: memref<1x1xf32, #tpu.memory_space<vmem>>, %arg4: memref<2x64xf32, #tpu.memory_space<vmem>>, %arg5: memref<64x128xf32, #tpu.memory_space<vmem>>, %arg6: memref<1x128xf32, #tpu.memory_space<vmem>>, %arg7: memref<2x1xf32, #tpu.memory_space<vmem>>) attributes {dimension_semantics = [#tpu.dimension_semantics<arbitrary>], iteration_bounds = array<i64: 1>, scalar_prefetch = 0 : i64, scratch_operands = 0 : i64, tpu.core_type = #tpu.core_type<tc>, window_params = [{pipeline_mode = #tpu.pipeline_mode<synchronous>, transform_indices = @transform_0, window_bounds = array<i64: 2, 128>}, {pipeline_mode = #tpu.pipeline_mode<synchronous>, transform_indices = @transform_1, window_bounds = array<i64: 128, 1>}, {pipeline_mode = #tpu.pipeline_mode<synchronous>, transform_indices = @transform_2, window_bounds = array<i64: 1, 1>}, {pipeline_mode = #tpu.pipeline_mode<synchronous>, transform_indices = @transform_3, window_bounds = array<i64: 2, 64>}, {pipeline_mode = #tpu.pipeline_mode<synchronous>, transform_indices = @transform_4, window_bounds = array<i64: 64, 128>}, {pipeline_mode = #tpu.pipeline_mode<synchronous>, transform_indices = @transform_5, window_bounds = array<i64: 1, 128>}, {pipeline_mode = #tpu.pipeline_mode<synchronous>, transform_indices = @transform_6, window_bounds = array<i64: 2, 1>}]} {
    %c0 = arith.constant 0 : index
    %c0_0 = arith.constant 0 : index
    %0 = vector.load %arg1[%c0, %c0_0] : memref<2x128xf32, #tpu.memory_space<vmem>>, vector<2x128xf32>
    %c0_1 = arith.constant 0 : index
    %c0_2 = arith.constant 0 : index
    %1 = vector.load %arg2[%c0_1, %c0_2] : memref<128x1xf32, #tpu.memory_space<vmem>>, vector<128x1xf32>
    %cst = arith.constant dense<0.000000e+00> : vector<2x1xf32>
    %2 = tpu.matmul %0, %1, %cst {dimension_numbers = #tpu.dot_dimension_numbers<[1], [0], [0], [1], [0, 0, 1, 1], [], []>} : vector<2x128xf32>, vector<128x1xf32>, vector<2x1xf32> -> vector<2x1xf32>
    %c0_3 = arith.constant 0 : index
    %c0_4 = arith.constant 0 : index
    %3 = vector.load %arg3[%c0_3, %c0_4] : memref<1x1xf32, #tpu.memory_space<vmem>>, vector<1x1xf32>
    %4 = vector.broadcast %3 : vector<1x1xf32> to vector<2x1xf32>
    %5 = arith.addf %2, %4 : vector<2x1xf32>
    %c0_5 = arith.constant 0 : index
    %c0_6 = arith.constant 0 : index
    %6 = vector.load %arg4[%c0_5, %c0_6] : memref<2x64xf32, #tpu.memory_space<vmem>>, vector<2x64xf32>
    %c0_7 = arith.constant 0 : index
    %c0_8 = arith.constant 0 : index
    %7 = vector.load %arg5[%c0_7, %c0_8] : memref<64x128xf32, #tpu.memory_space<vmem>>, vector<64x128xf32>
    %cst_9 = arith.constant dense<0.000000e+00> : vector<2x128xf32>
    %8 = tpu.matmul %6, %7, %cst_9 {dimension_numbers = #tpu.dot_dimension_numbers<[1], [0], [0], [1], [0, 0, 1, 1], [], []>} : vector<2x64xf32>, vector<64x128xf32>, vector<2x128xf32> -> vector<2x128xf32>
    %c0_10 = arith.constant 0 : index
    %c0_11 = arith.constant 0 : index
    %9 = vector.load %arg6[%c0_10, %c0_11] : memref<1x128xf32, #tpu.memory_space<vmem>>, vector<1x128xf32>
    %10 = vector.broadcast %9 : vector<1x128xf32> to vector<2x128xf32>
    %11 = arith.addf %8, %10 : vector<2x128xf32>
    %12 = arith.mulf %0, %11 : vector<2x128xf32>
    %cst_12 = arith.constant dense<0.000000e+00> : vector<2xf32>
    %13 = vector.multi_reduction <add>, %12, %cst_12 [1] : vector<2x128xf32> to vector<2xf32>
    %14 = vector.shape_cast %13 : vector<2xf32> to vector<2x1xf32>
    %15 = arith.addf %5, %14 : vector<2x1xf32>
    %c0_13 = arith.constant 0 : index
    %c0_14 = arith.constant 0 : index
    %16 = vector.load %arg7[%c0_13, %c0_14] : memref<2x1xf32, #tpu.memory_space<vmem>>, vector<2x1xf32>
    tpu.vector_store %arg7[%c0_13, %c0_14], %15 {strides = array<i32>} : memref<2x1xf32, #tpu.memory_space<vmem>>, vector<2x1xf32>,
    return
  }
  func.func @transform_0(%arg0: i32) -> (i32, i32) {
    %c0_i32 = arith.constant 0 : i32
    %c0_i32_0 = arith.constant 0 : i32
    %c0_i32_1 = arith.constant 0 : i32
    return %c0_i32, %c0_i32_0 : i32, i32
  }
  func.func @transform_1(%arg0: i32) -> (i32, i32) {
    %c0_i32 = arith.constant 0 : i32
    %c0_i32_0 = arith.constant 0 : i32
    %c0_i32_1 = arith.constant 0 : i32
    return %c0_i32, %c0_i32_0 : i32, i32
  }
  func.func @transform_2(%arg0: i32) -> (i32, i32) {
    %c0_i32 = arith.constant 0 : i32
    %c0_i32_0 = arith.constant 0 : i32
    %c0_i32_1 = arith.constant 0 : i32
    return %c0_i32, %c0_i32_0 : i32, i32
  }
  func.func @transform_3(%arg0: i32) -> (i32, i32) {
    %c0_i32 = arith.constant 0 : i32
    %c0_i32_0 = arith.constant 0 : i32
    %c0_i32_1 = arith.constant 0 : i32
    return %c0_i32, %c0_i32_0 : i32, i32
  }
  func.func @transform_4(%arg0: i32) -> (i32, i32) {
    %c0_i32 = arith.constant 0 : i32
    %c0_i32_0 = arith.constant 0 : i32
    %c0_i32_1 = arith.constant 0 : i32
    return %c0_i32, %c0_i32_0 : i32, i32
  }
  func.func @transform_5(%arg0: i32) -> (i32, i32) {
    %c0_i32 = arith.constant 0 : i32
    %c0_i32_0 = arith.constant 0 : i32
    %c0_i32_1 = arith.constant 0 : i32
    return %c0_i32, %c0_i32_0 : i32, i32
  }
  func.func @transform_6(%arg0: i32) -> (i32, i32) {
    %c0_i32 = arith.constant 0 : i32
    %c0_i32_0 = arith.constant 0 : i32
    %c0_i32_1 = arith.constant 0 : i32
    return %c0_i32, %c0_i32_0 : i32, i32
  }
}

module attributes {stable_mosaic.version = 11 : i64} {
  func.func @_conv_pool_kernel(%arg0: i32, %arg1: i32, %arg2: memref<1x5x5x512xbf16, #tpu.memory_space<vmem>>, %arg3: memref<4x512x128xbf16, #tpu.memory_space<vmem>>, %arg4: memref<1x128xf32, #tpu.memory_space<vmem>>, %arg5: memref<1x1x128xf32, #tpu.memory_space<vmem>>) attributes {dimension_semantics = [#tpu.dimension_semantics<parallel>, #tpu.dimension_semantics<parallel>], iteration_bounds = array<i64: 2, 1>, scalar_prefetch = 0 : i64, scratch_operands = 0 : i64, tpu.core_type = #tpu.core_type<tc>, window_params = [{transform_indices = @transform_0, window_bounds = array<i64: 1, 5, 5, 512>}, {transform_indices = @transform_1, window_bounds = array<i64: 4, 512, 128>}, {transform_indices = @transform_2, window_bounds = array<i64: 1, 128>}, {transform_indices = @transform_3, window_bounds = array<i64: 1, 1, 128>}]} {
    %c0 = arith.constant 0 : index
    %c0_0 = arith.constant 0 : index
    %c0_1 = arith.constant 0 : index
    %c0_2 = arith.constant 0 : index
    %0 = vector.load %arg2[%c0, %c0_0, %c0_1, %c0_2] : memref<1x5x5x512xbf16, #tpu.memory_space<vmem>>, vector<1x5x5x512xbf16>
    %1 = vector.shape_cast %0 : vector<1x5x5x512xbf16> to vector<5x5x512xbf16>
    %cst = arith.constant 0.000000e+00 : f32
    %2 = vector.broadcast %cst : f32 to vector<16x128xf32>
    %3 = vector.extract_strided_slice %1 {offsets = [0, 0, 0], sizes = [4, 4, 512], strides = [1, 1, 1]} : vector<5x5x512xbf16> to vector<4x4x512xbf16>
    %4 = vector.shape_cast %3 : vector<4x4x512xbf16> to vector<16x512xbf16>
    %c0_3 = arith.constant 0 : index
    %c0_4 = arith.constant 0 : index
    %c0_5 = arith.constant 0 : index
    %5 = vector.load %arg3[%c0_3, %c0_4, %c0_5] : memref<4x512x128xbf16, #tpu.memory_space<vmem>>, vector<1x512x128xbf16>
    %6 = vector.shape_cast %5 : vector<1x512x128xbf16> to vector<512x128xbf16>
    %cst_6 = arith.constant dense<0.000000e+00> : vector<16x128xf32>
    %7 = tpu.matmul %4, %6, %cst_6 {dimension_numbers = #tpu.dot_dimension_numbers<[1], [0], [0], [1], [0, 0, 1, 1], [], []>} : vector<16x512xbf16>, vector<512x128xbf16>, vector<16x128xf32> -> vector<16x128xf32>
    %8 = arith.addf %2, %7 : vector<16x128xf32>
    %9 = vector.extract_strided_slice %1 {offsets = [0, 1, 0], sizes = [4, 4, 512], strides = [1, 1, 1]} : vector<5x5x512xbf16> to vector<4x4x512xbf16>
    %10 = vector.shape_cast %9 : vector<4x4x512xbf16> to vector<16x512xbf16>
    %c1 = arith.constant 1 : index
    %c0_7 = arith.constant 0 : index
    %c0_8 = arith.constant 0 : index
    %11 = vector.load %arg3[%c1, %c0_7, %c0_8] : memref<4x512x128xbf16, #tpu.memory_space<vmem>>, vector<1x512x128xbf16>
    %12 = vector.shape_cast %11 : vector<1x512x128xbf16> to vector<512x128xbf16>
    %cst_9 = arith.constant dense<0.000000e+00> : vector<16x128xf32>
    %13 = tpu.matmul %10, %12, %cst_9 {dimension_numbers = #tpu.dot_dimension_numbers<[1], [0], [0], [1], [0, 0, 1, 1], [], []>} : vector<16x512xbf16>, vector<512x128xbf16>, vector<16x128xf32> -> vector<16x128xf32>
    %14 = arith.addf %8, %13 : vector<16x128xf32>
    %15 = vector.extract_strided_slice %1 {offsets = [1, 0, 0], sizes = [4, 4, 512], strides = [1, 1, 1]} : vector<5x5x512xbf16> to vector<4x4x512xbf16>
    %16 = vector.shape_cast %15 : vector<4x4x512xbf16> to vector<16x512xbf16>
    %c2 = arith.constant 2 : index
    %c0_10 = arith.constant 0 : index
    %c0_11 = arith.constant 0 : index
    %17 = vector.load %arg3[%c2, %c0_10, %c0_11] : memref<4x512x128xbf16, #tpu.memory_space<vmem>>, vector<1x512x128xbf16>
    %18 = vector.shape_cast %17 : vector<1x512x128xbf16> to vector<512x128xbf16>
    %cst_12 = arith.constant dense<0.000000e+00> : vector<16x128xf32>
    %19 = tpu.matmul %16, %18, %cst_12 {dimension_numbers = #tpu.dot_dimension_numbers<[1], [0], [0], [1], [0, 0, 1, 1], [], []>} : vector<16x512xbf16>, vector<512x128xbf16>, vector<16x128xf32> -> vector<16x128xf32>
    %20 = arith.addf %14, %19 : vector<16x128xf32>
    %21 = vector.extract_strided_slice %1 {offsets = [1, 1, 0], sizes = [4, 4, 512], strides = [1, 1, 1]} : vector<5x5x512xbf16> to vector<4x4x512xbf16>
    %22 = vector.shape_cast %21 : vector<4x4x512xbf16> to vector<16x512xbf16>
    %c3 = arith.constant 3 : index
    %c0_13 = arith.constant 0 : index
    %c0_14 = arith.constant 0 : index
    %23 = vector.load %arg3[%c3, %c0_13, %c0_14] : memref<4x512x128xbf16, #tpu.memory_space<vmem>>, vector<1x512x128xbf16>
    %24 = vector.shape_cast %23 : vector<1x512x128xbf16> to vector<512x128xbf16>
    %cst_15 = arith.constant dense<0.000000e+00> : vector<16x128xf32>
    %25 = tpu.matmul %22, %24, %cst_15 {dimension_numbers = #tpu.dot_dimension_numbers<[1], [0], [0], [1], [0, 0, 1, 1], [], []>} : vector<16x512xbf16>, vector<512x128xbf16>, vector<16x128xf32> -> vector<16x128xf32>
    %26 = arith.addf %20, %25 : vector<16x128xf32>
    %c0_16 = arith.constant 0 : index
    %c0_17 = arith.constant 0 : index
    %27 = vector.load %arg4[%c0_16, %c0_17] : memref<1x128xf32, #tpu.memory_space<vmem>>, vector<1x128xf32>
    %28 = vector.broadcast %27 : vector<1x128xf32> to vector<16x128xf32>
    %29 = arith.addf %26, %28 : vector<16x128xf32>
    %cst_18 = arith.constant 0.000000e+00 : f32
    %30 = vector.broadcast %cst_18 : f32 to vector<16x128xf32>
    %31 = arith.cmpf oge, %29, %30 : vector<16x128xf32>
    %cst_19 = arith.constant 2.000000e-01 : f32
    %32 = vector.broadcast %cst_19 : f32 to vector<16x128xf32>
    %33 = arith.mulf %32, %29 : vector<16x128xf32>
    %34 = arith.select %31, %29, %33 : vector<16x128xi1>, vector<16x128xf32>
    %cst_20 = arith.constant dense<0.000000e+00> : vector<128xf32>
    %35 = vector.multi_reduction <add>, %34, %cst_20 [0] : vector<16x128xf32> to vector<128xf32>
    %36 = vector.shape_cast %35 : vector<128xf32> to vector<1x128xf32>
    %cst_21 = arith.constant 6.250000e-02 : f32
    %37 = vector.broadcast %cst_21 : f32 to vector<1x128xf32>
    %38 = arith.mulf %36, %37 : vector<1x128xf32>
    %39 = vector.shape_cast %38 : vector<1x128xf32> to vector<1x1x128xf32>
    %c0_22 = arith.constant 0 : index
    %c0_23 = arith.constant 0 : index
    %c0_24 = arith.constant 0 : index
    %40 = vector.load %arg5[%c0_22, %c0_23, %c0_24] : memref<1x1x128xf32, #tpu.memory_space<vmem>>, vector<1x1x128xf32>
    tpu.vector_store %arg5[%c0_22, %c0_23, %c0_24], %39 {strides = array<i32>} : memref<1x1x128xf32, #tpu.memory_space<vmem>>, vector<1x1x128xf32>,
    return
  }
  func.func @transform_0(%arg0: i32, %arg1: i32) -> (i32, i32, i32, i32) {
    %c0_i32 = arith.constant 0 : i32
    %c0_i32_0 = arith.constant 0 : i32
    %c0_i32_1 = arith.constant 0 : i32
    %c0_i32_2 = arith.constant 0 : i32
    return %arg0, %c0_i32, %c0_i32_0, %c0_i32_1 : i32, i32, i32, i32
  }
  func.func @transform_1(%arg0: i32, %arg1: i32) -> (i32, i32, i32) {
    %c0_i32 = arith.constant 0 : i32
    %c0_i32_0 = arith.constant 0 : i32
    %c0_i32_1 = arith.constant 0 : i32
    return %c0_i32, %c0_i32_0, %arg1 : i32, i32, i32
  }
  func.func @transform_2(%arg0: i32, %arg1: i32) -> (i32, i32) {
    %c0_i32 = arith.constant 0 : i32
    %c0_i32_0 = arith.constant 0 : i32
    return %c0_i32, %arg1 : i32, i32
  }
  func.func @transform_3(%arg0: i32, %arg1: i32) -> (i32, i32, i32) {
    %c0_i32 = arith.constant 0 : i32
    %c0_i32_0 = arith.constant 0 : i32
    return %arg0, %c0_i32, %arg1 : i32, i32, i32
  }
}

</mosaic_0001>

<bundles_post_ra>
// kernel: loc_match_discriminator.7
= control target key start
LH: loop header
LB: loop body
LE: loop exit
PB: predicated region body
PF: predicated region fallthrough
CT: control target
= control target key end

     0   :  { %s1166_s12 = smov 0   ;;  %s1168_s13 = smov 0   ;;  %s1350_s0 = inlined_call_operand.vmem [shape: bf16[2,9,9,12], index: 0, kind: input, shape index: {}]   ;;  %s1351_s1 = inlined_call_operand.vmem [shape: bf16[4,12,128], index: 1, kind: input, shape index: {}]   ;;  %s1352_s2 = inlined_call_operand.vmem [shape: f32[1,128], index: 2, kind: input, shape index: {}]   ;;  %s1353_s3 = inlined_call_operand.vmem [shape: bf16[2,8,8,128], index: 3, kind: output, shape index: {}]  }
   0x1   :  { %s1170_s14 = smov 0  }
   0x2 LB: > { %s25_s15 = sadd.s32 1, %s1140_s13  ;;  %p948_p0 = scmp.ge.s32.totalorder %s1144_s14, 1  ;;  %s1144_s14 = sphi %s1170_s14, %s13_s14   ;;  %s1140_s13 = sphi %s1168_s13, %s1357_s13   ;;  %s1136_s12 = sphi %s1166_s12, %s1356_s12  }
   0x3   : > { %p27_p1 = scmp.ge.s32.totalorder %s25_s15, 2  ;;  %p168_p2 = scmp.lt.s32.totalorder %s1144_s14, 3 }
   0x5   : > { %s1359_s15 = smov (%p27_p1, %s25_s15), 0  ;;  %p169_p3 = pnand %p948_p0, %p168_p2 }
   0x6   : > { %p202_p4 = scmp.lt.s32.totalorder (!%p169_p3), %s1136_s12, 1 }
   0x7   : > { %172 = sbr.rel (%p169_p3) target bundleno = 270 (0x10e), region = 32 }
   0xc   : > { %vm391_vm0 = vcmask 1045504   ;;  %v1110_v0 = vld [vmem:[%s1351_s1] sm:$0x3f]   ;;  %v1111_v1 = vld [vmem:[%s1351_s1 + $0x8] sm:$0x3f]   ;;  %s1361_s12 = smov (!%p202_p4, %s1136_s12), 1 }
   0xd   : > { %1082 = vmatprep.subr.msk.bf16.mxu1 %vm391_vm0, %v1110_v0  ;;  %v498_v2 = vsel %vm391_vm0, %v1110_v0, 0  ;;  %1081 = vmatprep.subr.msk.bf16.mxu0 %vm391_vm0, %v1111_v1  ;;  %s1085_s20 = smul.u32 72, %s1361_s12  ;;  %v393_v3 = vsel %vm391_vm0, %v1111_v1, 0  ;;  %v1200_v4 = vld [vmem:[%s1351_s1 + $0x10] sm:$0x3f]   ;;  %vm378_vm1 = vcmask 97280  }
   0xe   : > { %1052 = vmatpush3.bf16.msra.mxu1 %v498_v2  ;;  %1042 = vmatpush3.bf16.msra.mxu0 %v393_v3  ;;  %v1205_v5 = vld [vmem:[%s1351_s1 + $0x18] sm:$0x3f]   ;;  %vm243_vm2 = vsmask.f32 3328  ;;  %vm244_vm3 = vsmask.f32 7440 }
   0xf   : > { %s1210_s27 = scalar_lea.vmem %s1350_s0, %s1085_s20  ;;  %1083 = vmatprep.subr.msk.bf16.mxu0 %vm391_vm0, %v1200_v4  ;;  %1084 = vmatprep.subr.msk.bf16.mxu1 %vm391_vm0, %v1205_v5  ;;  %vm1242_vm4 = vmor %vm243_vm2, %vm244_vm3  ;;  %v707_v61 = vsel %vm391_vm0, %v1205_v5, 0  ;;  %s997_s30 = sshll.u32 %s1361_s12, 5 }
  0x10   : > { %v223_v6 = vld [vmem:[%s1210_s27] sm:$0xf]  ;;  %v1216_v7 = vld [vmem:[%s1210_s27 + $0x8] sm:$0xf]  ;;  %v1219_v8 = vld [vmem:[%s1210_s27 + $0x10] sm:$0xf]  ;;  %s1331_s6 = scalar_lea.vmem %s1353_s3, %s997_s30 }
  0x11   : > { %v247_v9 = vshrl.u32 %v223_v6, 16  ;;  %v250_v10 = vshll.u32 %v223_v6, 16  ;;  %v261_v11 = vshrl.u32 %v1216_v7, 16  ;;  %v264_v12 = vshll.u32 %v1216_v7, 16  ;;  %v1226_v13 = vld [vmem:[%s1210_s27 + $0x18] sm:$0xf] }
  0x12   : > { %v963_v14 = vcombine.low %v223_v6, %v1216_v7  ;;  %v964_v15 = vcombine.low %v1219_v8, %v1226_v13  ;;  %v224_v16 = vld [vmem:[%s1210_s27 + $0x4] sm:$0x1]  ;;  %v226_v17 = vld [vmem:[%s1210_s27 + $0xc] sm:$0x1]  ;;  %v228_v18 = vld [vmem:[%s1210_s27 + $0x14] sm:$0x1] }
  0x13   : > { %v249_v19 = vrot.slane %v247_v9, 4  ;;  %v252_v20 = vrot.slane %v250_v10, 5  ;;  %v256_v21 = vshll.u32 %v224_v16, 16  ;;  %v263_v22 = vrot.slane %v261_v11, 4  ;;  %v230_v25 = vld [vmem:[%s1210_s27 + $0x1c] sm:$0x1] }
  0x14   : > { %1053 = vmatprep.mubr.msk.bf16.mxu1 %vm378_vm1, %v963_v14  ;;  %v266_v23 = vrot.slane %v264_v12, 5  ;;  %v270_v24 = vshll.u32 %v226_v17, 16  ;;  %v275_v27 = vshrl.u32 %v1219_v8, 16  ;;  %v278_v28 = vshll.u32 %v1219_v8, 16  ;;  %v1240_v30 = vld [vmem:[%s1210_s27 + $0x20] sm:$0xf] }
  0x15   : > { %1054 = vmatmul.mubr.msk.bf16.vlgmr.msra.gmra.mxu1 %vm378_vm1, %v964_v15  ;;  %v253_v26 = vor.u32 %v252_v20, %v249_v19  ;;  %v284_v29 = vshll.u32 %v228_v18, 16  ;;  %v258_v32 = vrot.slane %v256_v21, 5  ;;  %v289_v35 = vshrl.u32 %v1226_v13, 16  ;;  %v232_v36 = vld [vmem:[%s1210_s27 + $0x24] sm:$0x1] }
  0x16   : > { %v267_v33 = vor.u32 %v266_v23, %v263_v22  ;;  %v272_v34 = vrot.slane %v270_v24, 5  ;;  %v277_v38 = vrot.slane %v275_v27, 4  ;;  %v280_v39 = vrot.slane %v278_v28, 5  ;;  %v1254_v49 = vld [vmem:[%s1210_s27 + $0x28] sm:$0xf]  ;;  %1072 = vmatpush3.bf16.msra.mxu1 %v707_v61 }
  0x17   : > { %v254_v37 = vrot.slane %v253_v26, 4  ;;  %v286_v40 = vrot.slane %v284_v29, 5  ;;  %v291_v42 = vrot.slane %v289_v35, 4  ;;  %v292_v43 = vshll.u32 %v1226_v13, 16  ;;  %v1259_v58 = vld [vmem:[%s1210_s27 + $0x30] sm:$0xf] }
  0x18   : > { %v268_v41 = vrot.slane %v267_v33, 4  ;;  %v298_v44 = vshll.u32 %v230_v25, 16  ;;  %v281_v46 = vor.u32 %v280_v39, %v277_v38  ;;  %v303_v47 = vshrl.u32 %v1240_v30, 16  ;;  %v1265_v63 = vld [vmem:[%s1210_s27 + $0x38] sm:$0xf] }
  0x19   : > { %v259_v45 = vsel %vm1242_vm4, %v254_v37, %v258_v32  ;;  %v306_v48 = vshll.u32 %v1240_v30, 16  ;;  %v294_v51 = vrot.slane %v292_v43, 5  ;;  %v312_v53 = vshll.u32 %v232_v36, 16  ;;  %v234_v6 = vld [vmem:[%s1210_s27 + $0x2c] sm:$0x1] }
  0x1a   : > { %v273_v50 = vsel %vm1242_vm4, %v268_v41, %v272_v34  ;;  %v300_v52 = vrot.slane %v298_v44, 5  ;;  %v282_v54 = vrot.slane %v281_v46, 4  ;;  %v305_v55 = vrot.slane %v303_v47, 4  ;;  %v236_v17 = vld [vmem:[%s1210_s27 + $0x34] sm:$0x1] }
  0x1b   : > { %v308_v56 = vrot.slane %v306_v48, 5  ;;  %v954_v57 = vcombine.low %v259_v45, %v273_v50  ;;  %v295_v59 = vor.u32 %v294_v51, %v291_v42  ;;  %v314_v60 = vrot.slane %v312_v53, 5  ;;  %v238_v22 = vld [vmem:[%s1210_s27 + $0x3c] sm:$0x1]  ;;  %v239_v27 = vld [vmem:[%s1210_s27 + $0x40] sm:$0xf] }
  0x1c   : > { %v317_v62 = vshrl.u32 %v1254_v49, 16  ;;  %v287_v0 = vsel %vm1242_vm4, %v282_v54, %v286_v40  ;;  %v320_v2 = vshll.u32 %v1254_v49, 16  ;;  %v965_v3 = vcombine.low %v1240_v30, %v1254_v49 }
  0x1d   : > { %v309_v1 = vor.u32 %v308_v56, %v305_v55  ;;  %1043 = vmatprep.mubr.msk.bf16.mxu0 %vm378_vm1, %v954_v57  ;;  %v296_v5 = vrot.slane %v295_v59, 4  ;;  %v985_v9 = vcombine.low %v273_v50, %v287_v0  ;;  %v331_v10 = vshrl.u32 %v1259_v58, 16 }
  0x1e   : > { %v334_v11 = vshll.u32 %v1259_v58, 16  ;;  %1057 = vmatprep.mubr.msk.bf16.mxu1 %vm378_vm1, %v965_v3  ;;  %v345_v14 = vshrl.u32 %v1265_v63, 16  ;;  %v348_v15 = vshll.u32 %v1265_v63, 16  ;;  %v966_v16 = vcombine.low %v1259_v58, %v1265_v63 }
  0x1f   : > { %v310_v12 = vrot.slane %v309_v1, 4  ;;  %v301_v18 = vsel %vm1242_vm4, %v296_v5, %v300_v52  ;;  %v319_v19 = vrot.slane %v317_v62, 4  ;;  %v322_v20 = vrot.slane %v320_v2, 5 }
  0x20   : > { %v326_v21 = vshll.u32 %v234_v6, 16  ;;  %v955_v23 = vcombine.low %v287_v0, %v301_v18  ;;  %v592_v24 = vsel %vm391_vm0, %v1200_v4, 0  ;;  %1058 = vmatmul.mubr.msk.bf16.gmra.mxu1 %vm378_vm1, %v966_v16  ;;  %v333_v25 = vrot.slane %v331_v10, 4  ;;  %v240_v4 = vld [vmem:[%s1210_s27 + $0x44] sm:$0x1] }
  0x21   : > { %v336_v26 = vrot.slane %v334_v11, 5  ;;  %v315_v28 = vsel %vm1242_vm4, %v310_v12, %v314_v60  ;;  %v323_v29 = vor.u32 %v322_v20, %v319_v19  ;;  %v340_v33 = vshll.u32 %v236_v17, 16  ;;  %1073 = vmatprep.mubr.msk.bf16.mxu1 %vm378_vm1, %v985_v9 }
  0x22   : > { %v328_v32 = vrot.slane %v326_v21, 5  ;;  %1044 = vmatmul.mubr.msk.bf16.vlgmr.msra.gmra.mxu0 %vm378_vm1, %v955_v23  ;;  %v347_v35 = vrot.slane %v345_v14, 4  ;;  %v350_v36 = vrot.slane %v348_v15, 5  ;;  %v354_v37 = vshll.u32 %v238_v22, 16 }
  0x23   : > { %v337_v34 = vor.u32 %v336_v26, %v333_v25  ;;  %v986_v38 = vcombine.low %v301_v18, %v315_v28  ;;  %1062 = vmatpush3.bf16.msra.mxu0 %v592_v24  ;;  %v324_v39 = vrot.slane %v323_v29, 4  ;;  %v342_v40 = vrot.slane %v340_v33, 5  ;;  %v1321_v24 = vld [vmem:[%s1352_s2] ss:$0 sm:$0xff] }
  0x24   : > { %v668_v41 = vshrl.u32 %v239_v27, 16  ;;  %v351_v43 = vor.u32 %v350_v36, %v347_v35  ;;  %v356_v44 = vrot.slane %v354_v37, 5  ;;  %v671_v45 = vshll.u32 %v239_v27, 16 }
  0x25   : > { %v338_v42 = vrot.slane %v337_v34, 4  ;;  %v329_v46 = vsel %vm1242_vm4, %v324_v39, %v328_v32  ;;  %v677_v48 = vshll.u32 %v240_v4, 16  ;;  %v974_v56 = vcombine.low %v1216_v7, %v1219_v8 }
  0x26   : > { %v670_v47 = vrot.slane %v668_v41, 4  ;;  %v956_v50 = vcombine.low %v315_v28, %v329_v46  ;;  %v352_v52 = vrot.slane %v351_v43, 4  ;;  %v673_v53 = vrot.slane %v671_v45, 5 }
  0x27   : > { %v343_v51 = vsel %vm1242_vm4, %v338_v42, %v342_v40  ;;  %v679_v59 = vrot.slane %v677_v48, 5  ;;  %v975_v1 = vcombine.low %v1226_v13, %v1240_v30  ;;  %v976_v7 = vcombine.low %v1254_v49, %v1259_v58 }
  0x28   : > { %v987_v54 = vcombine.low %v329_v46, %v343_v51  ;;  %1047 = vmatprep.mubr.msk.bf16.mxu0 %vm378_vm1, %v956_v50  ;;  %v357_v55 = vsel %vm1242_vm4, %v352_v52, %v356_v44  ;;  %1074 = vmatmul.mubr.msk.bf16.vlgmr.msra.gmra.mxu1 %vm378_vm1, %v986_v38  ;;  %v674_v57 = vor.u32 %v673_v53, %v670_v47 }
  0x29   : > { %v957_v60 = vcombine.low %v343_v51, %v357_v55  ;;  %v977_v8 = vcombine.low %v1265_v63, %v239_v27 }
  0x2a   : > { %1077 = vmatprep.mubr.msk.bf16.mxu1 %vm378_vm1, %v987_v54  ;;  %v675_v61 = vrot.slane %v674_v57, 4 }
  0x2b   : > { %1048 = vmatmul.mubr.msk.bf16.gmra.mxu0 %vm378_vm1, %v957_v60 }
  0x2c   : > { %1063 = vmatprep.mubr.msk.bf16.mxu0 %vm378_vm1, %v974_v56  ;;  %v680_v62 = vsel %vm1242_vm4, %v675_v61, %v679_v59 }
  0x2d   : > { %v988_v0 = vcombine.low %v357_v55, %v680_v62 }
  0x30   : > { %1078 = vmatmul.mubr.msk.bf16.gmra.mxu1 %vm378_vm1, %v988_v0 }
  0x33   : > { %1064 = vmatmul.mubr.msk.bf16.vlgmr.msra.gmra.mxu0 %vm378_vm1, %v975_v1 }
  0x34   : > { %1067 = vmatprep.mubr.msk.bf16.mxu0 %vm378_vm1, %v976_v7 }
  0x3b   : > { %1068 = vmatmul.mubr.msk.bf16.gmra.mxu0 %vm378_vm1, %v977_v8 }
  0xd5   : > { %v1055_v2 = vpop.f32.mrf.mxu1 }
  0xd7   : > { %v534_v31 = vpop.f32.mrf.mxu1 }
  0xd9   : > { %v1056_v3 = vpop.f32.mrf.mxu1 }
  0xdb   : > { %v537_v6 = vpop.f32.mrf.mxu1 }
  0xe0   : > { %v1059_v5 = vpop.f32.mrf.mxu1 }
  0xe2   : > { %v1045_v9 = vpop.f32.mrf.mxu0  ;;  %v550_v13 = vpop.f32.mrf.mxu1 }
  0xe3   : > { %v543_v19 = vadd.f32 %v1055_v2, %v1045_v9 }
  0xe4   : > { %v429_v30 = vpop.f32.mrf.mxu0  ;;  %v1060_v10 = vpop.f32.mrf.mxu1 }
  0xe5   : > { %v535_v21 = vadd.f32 %v534_v31, %v429_v30 }
  0xe6   : > { %v1046_v11 = vpop.f32.mrf.mxu0  ;;  %v553_v12 = vpop.f32.mrf.mxu1 }
  0xe7   : > { %v546_v26 = vadd.f32 %v1056_v3, %v1046_v11 }
  0xe8   : > { %v432_v49 = vpop.f32.mrf.mxu0  ;;  %v1075_v58 = vpop.f32.mrf.mxu1 }
  0xe9   : > { %v538_v36 = vadd.f32 %v537_v6, %v432_v49 }
  0xea   : > { %v743_v15 = vpop.f32.mrf.mxu1 }
  0xeb   : > { %v1049_v14 = vpop.f32.mrf.mxu0 }
  0xec   : > { %v1076_v63 = vpop.f32.mrf.mxu1  ;;  %v559_v38 = vadd.f32 %v1059_v5, %v1049_v14 }
  0xed   : > { %v445_v16 = vpop.f32.mrf.mxu0 }
  0xee   : > { %v746_v23 = vpop.f32.mrf.mxu1  ;;  %v551_v43 = vadd.f32 %v550_v13, %v445_v16 }
  0xef   : > { %v1050_v17 = vpop.f32.mrf.mxu0 }
  0xf0   : > { %v1079_v35 = vpop.f32.mrf.mxu1  ;;  %v562_v46 = vadd.f32 %v1060_v10, %v1050_v17 }
  0xf1   : > { %v448_v18 = vpop.f32.mrf.mxu0 }
  0xf2   : > { %v759_v45 = vpop.f32.mrf.mxu1  ;;  %v554_v51 = vadd.f32 %v553_v12, %v448_v18 }
  0xf3   : > { %v1065_v20 = vpop.f32.mrf.mxu0 }
  0xf4   : > { %v661_v22 = vadd.f32 %v1065_v20, %v543_v19  ;;  %v1080_v61 = vpop.f32.mrf.mxu1 }
  0xf5   : > { %v628_v25 = vpop.f32.mrf.mxu0 }
  0xf6   : > { %v776_v27 = vadd.f32 %v1075_v58, %v661_v22  ;;  %v659_v28 = vadd.f32 %v628_v25, %v535_v21  ;;  %v762_v10 = vpop.f32.mrf.mxu1 }
  0xf7   : > { %v1066_v29 = vpop.f32.mrf.mxu0 }
  0xf8   : > { %v791_v32 = vadd.f32 %v1321_v24, %v776_v27  ;;  %v774_v33 = vadd.f32 %v743_v15, %v659_v28  ;;  %v662_v34 = vadd.f32 %v1066_v29, %v546_v26 }
  0xf9   : > { %v631_v37 = vpop.f32.mrf.mxu0 }
  0xfa   : > { %v777_v4 = vadd.f32 %v1076_v63, %v662_v34  ;;  %v807_v39 = vmul.f32 0.2, %v791_v32  ;;  %v789_v40 = vadd.f32 %v1321_v24, %v774_v33  ;;  %v660_v41 = vadd.f32 %v631_v37, %v538_v36 }
  0xfb   : > { %v1069_v42 = vpop.f32.mrf.mxu0  ;;  %vm799_vm5 = vcmp.ge.f32.partialorder %v791_v32, 0.0 }
  0xfc   : > { %v792_v44 = vadd.f32 %v1321_v24, %v777_v4  ;;  %v775_v47 = vadd.f32 %v746_v23, %v660_v41  ;;  %v665_v48 = vadd.f32 %v1069_v42, %v559_v38  ;;  %v815_v54 = vsel %vm799_vm5, %v791_v32, %v807_v39 }
  0xfd   : > { %v644_v50 = vpop.f32.mrf.mxu0  ;;  %v805_v55 = vmul.f32 0.2, %v789_v40  ;;  %vm797_vm7 = vcmp.ge.f32.partialorder %v789_v40, 0.0 }
  0xfe   : > { %vm800_vm6 = vcmp.ge.f32.partialorder %v792_v44, 0.0  ;;  %v808_v52 = vmul.f32 0.2, %v792_v44  ;;  %v663_v53 = vadd.f32 %v644_v50, %v551_v43  ;;  %v790_v56 = vadd.f32 %v1321_v24, %v775_v47 }
  0xff   : > { %v780_v57 = vadd.f32 %v1079_v35, %v665_v48  ;;  %v1070_v59 = vpop.f32.mrf.mxu0  ;;  %v813_v6 = vsel %vm797_vm7, %v789_v40, %v805_v55 }
 0x100   : > { %v816_v60 = vsel %vm800_vm6, %v792_v44, %v808_v52  ;;  %v778_v62 = vadd.f32 %v759_v45, %v663_v53  ;;  %v666_v0 = vadd.f32 %v1070_v59, %v562_v46  ;;  %vm798_vm8 = vcmp.ge.f32.partialorder %v790_v56, 0.0 }
 0x101   : > { %v1006_v1 = vpack.c.bf16 %v816_v60, %v815_v54  ;;  %v806_v7 = vmul.f32 0.2, %v790_v56  ;;  %v795_v8 = vadd.f32 %v1321_v24, %v780_v57  ;;  %v647_v2 = vpop.f32.mrf.mxu0 }
 0x102   : > { %v781_v31 = vadd.f32 %v1080_v61, %v666_v0  ;;  %v664_v3 = vadd.f32 %v647_v2, %v554_v51  ;;  %v793_v9 = vadd.f32 %v1321_v24, %v778_v62 }
 0x103   : > { %1018 = vst [vmem:[%s1331_s6 + $0x8] sm:$0xff] %v1006_v1   ;;  %v814_v5 = vsel %vm798_vm8, %v790_v56, %v806_v7  ;;  %v811_v30 = vmul.f32 0.2, %v795_v8  ;;  %vm803_vm9 = vcmp.ge.f32.partialorder %v795_v8, 0.0 }
 0x104   : > { %v1001_v13 = vpack.c.bf16 %v814_v5, %v813_v6  ;;  %v796_v11 = vadd.f32 %v1321_v24, %v781_v31  ;;  %v779_v12 = vadd.f32 %v762_v10, %v664_v3  ;;  %v809_v58 = vmul.f32 0.2, %v793_v9 }
 0x105   : > { %v819_v15 = vsel %vm803_vm9, %v795_v8, %v811_v30  ;;  %vm801_vm11 = vcmp.ge.f32.partialorder %v793_v9, 0.0 }
 0x106   : > { %1002 = vst [vmem:[%s1331_s6] sm:$0xff] %v1001_v13   ;;  %vm804_vm10 = vcmp.ge.f32.partialorder %v796_v11, 0.0  ;;  %v812_v49 = vmul.f32 0.2, %v796_v11  ;;  %v794_v14 = vadd.f32 %v1321_v24, %v779_v12  ;;  %v817_v18 = vsel %vm801_vm11, %v793_v9, %v809_v58 }
 0x108   : > { %v820_v16 = vsel %vm804_vm10, %v796_v11, %v812_v49  ;;  %vm802_vm12 = vcmp.ge.f32.partialorder %v794_v14, 0.0  ;;  %v810_v63 = vmul.f32 0.2, %v794_v14 }
 0x109   : > { %v1016_v17 = vpack.c.bf16 %v820_v16, %v819_v15 }
 0x10a   : > { %v818_v19 = vsel %vm802_vm12, %v794_v14, %v810_v63 }
 0x10b   : > { %1020 = vst [vmem:[%s1331_s6 + $0x18] sm:$0xff] %v1016_v17   ;;  %v1011_v20 = vpack.c.bf16 %v818_v19, %v817_v18 }
 0x10d   : > { %1019 = vst [vmem:[%s1331_s6 + $0x10] sm:$0xff] %v1011_v20  }
 0x10e PF: > { %s13_s14 = sadd.s32 1, %s1144_s14   ;;  %s1356_s12 = smov %s1140_s13 }
 0x10f   : > { %p10_p5 = scmp.ge.s32.totalorder %s13_s14, 4   ;;  %s1357_s13 = smov %s1359_s15 }
 0x111   :  { %12 = sbr.rel (!%p10_p5) target bundleno = 2 (0x2), region = 71 }

// kernel: loc_match_discriminator.8
= control target key start
LH: loop header
LB: loop body
LE: loop exit
PB: predicated region body
PF: predicated region fallthrough
CT: control target
= control target key end

     0   :  { %s2682_s12 = smov 0   ;;  %s2684_s13 = smov 0   ;;  %s3262_s0 = inlined_call_operand.vmem [shape: bf16[2,10,10,128], index: 0, kind: input, shape index: {}]   ;;  %s3263_s1 = inlined_call_operand.vmem [shape: bf16[9,128,128], index: 1, kind: input, shape index: {}]   ;;  %s3264_s2 = inlined_call_operand.vmem [shape: f32[1,128], index: 2, kind: input, shape index: {}]   ;;  %s3265_s3 = inlined_call_operand.vmem [shape: bf16[2,8,8,128], index: 3, kind: output, shape index: {}]  }
   0x1   :  { %s2686_s14 = smov 0  }
   0x2 LB: > { %s25_s15 = sadd.s32 1, %s2656_s13  ;;  %p1924_p0 = scmp.ge.s32.totalorder %s2660_s14, 1  ;;  %s2660_s14 = sphi %s2686_s14, %s13_s14   ;;  %s2656_s13 = sphi %s2684_s13, %s3289_s13   ;;  %s2652_s12 = sphi %s2682_s12, %s3288_s12  }
   0x3   : > { %p27_p1 = scmp.ge.s32.totalorder %s25_s15, 2  ;;  %p168_p2 = scmp.lt.s32.totalorder %s2660_s14, 3 }
   0x5   : > { %s3291_s15 = smov (%p27_p1, %s25_s15), 0  ;;  %p169_p3 = pnand %p1924_p0, %p168_p2 }
   0x7   : > { %172 = sbr.rel (%p169_p3) target bundleno = 383 (0x17f), region = 32 }
   0xc   : > { %v2557_v0 = vld [vmem:[%s3263_s1 + $0x78] sm:$0xff]   ;;  %p202_p4 = scmp.lt.s32.totalorder %s2652_s12, 1  ;;  %v2559_v2 = vld [vmem:[%s3263_s1 + $0x70] sm:$0xff]   ;;  %v2561_v4 = vld [vmem:[%s3263_s1 + $0x68] sm:$0xff]   ;;  %vm259_vm0 = vsmask.f32 3328 }
   0xd   : > { %v2558_v1 = vld [vmem:[%s3263_s1 + $0x38] sm:$0xff]   ;;  %2300 = vmatprep.subr.bf16.mxu0 %v2557_v0  ;;  %v2560_v3 = vld [vmem:[%s3263_s1 + $0x30] sm:$0xff]   ;;  %v2562_v5 = vld [vmem:[%s3263_s1 + $0x28] sm:$0xff]   ;;  %vm260_vm1 = vsmask.f32 7440  ;;  %vm665_vm3 = vcmask 1042432  }
   0xe   : > { %2324 = vmatprep.subr.bf16.mxu1 %v2558_v1  ;;  %2301 = vmatpush3.bf16.msra.mxu0 %v2557_v0  ;;  %s3293_s12 = smov (!%p202_p4, %s2652_s12), 1  ;;  %v2563_v6 = vld [vmem:[%s3263_s1 + $0x60] sm:$0xff]   ;;  %v2565_v8 = vld [vmem:[%s3263_s1 + $0x58] sm:$0xff]   ;;  %v2567_v10 = vld [vmem:[%s3263_s1 + $0x50] sm:$0xff]   ;;  %vm666_vm4 = vcmask 1046532  }
   0xf   : > { %2325 = vmatpush3.bf16.msra.mxu1 %v2558_v1  ;;  %2302 = vmatprep.subr.bf16.mxu0 %v2559_v2  ;;  %v2564_v7 = vld [vmem:[%s3263_s1 + $0x20] sm:$0xff]   ;;  %s2532_s5 = smul.u32 80, %s3293_s12  ;;  %v2566_v9 = vld [vmem:[%s3263_s1 + $0x18] sm:$0xff]   ;;  %v2568_v14 = vld [vmem:[%s3263_s1 + $0x10] sm:$0xff]   ;;  %s2168_s29 = sshll.u32 %s3293_s12, 5 }
  0x10   : > { %2326 = vmatprep.subr.bf16.mxu1 %v2560_v3  ;;  %v2569_v18 = vld [vmem:[%s3263_s1 + $0x48] sm:$0xff]   ;;  %vm2786_vm2 = vmor %vm259_vm0, %vm260_vm1  ;;  %v2571_v43 = vld [vmem:[%s3263_s1 + $0x40] sm:$0xff]  }
  0x11   : > { %s2736_s16 = scalar_lea.vmem %s3262_s0, %s2532_s5  ;;  %v2570_v21 = vld [vmem:[%s3263_s1 + $0x8] sm:$0xff]   ;;  %v2572_v47 = vld [vmem:[%s3263_s1] sm:$0xff]   ;;  %v2575_v57 = vld [vmem:[%s3263_s1 + $0xb8] sm:$0xff]   ;;  %s221_s5 = scalar_lea.vmem %s3265_s3, %s2168_s29 }
  0x12   : > { %2303 = vmatpush3.bf16.msra.mxu0 %v2559_v2  ;;  %v2742_v11 = vld [vmem:[%s2736_s16] sm:$0xf]  ;;  %v2745_v12 = vld [vmem:[%s2736_s16 + $0x4] sm:$0x1]  ;;  %v2748_v13 = vld [vmem:[%s2736_s16 + $0x8] sm:$0xf] }
  0x13   : > { %2327 = vmatpush3.bf16.msra.mxu1 %v2560_v3  ;;  %2304 = vmatprep.subr.bf16.mxu0 %v2561_v4  ;;  %v2754_v15 = vld [vmem:[%s2736_s16 + $0xc] sm:$0x1]  ;;  %v2757_v16 = vld [vmem:[%s2736_s16 + $0x10] sm:$0xf]  ;;  %v1956_v17 = vcombine.low %v2742_v11, %v2748_v13  ;;  %v263_v19 = vshrl.u32 %v2742_v11, 16  ;;  %v266_v20 = vshll.u32 %v2742_v11, 16  ;;  %vm2896_vm5 = vmor %vm665_vm3, %vm666_vm4 }
  0x14   : > { %2328 = vmatprep.subr.bf16.mxu1 %v2562_v5  ;;  %v2770_v22 = vld [vmem:[%s2736_s16 + $0x14] sm:$0x1]  ;;  %v272_v23 = vshll.u32 %v2745_v12, 16  ;;  %v277_v24 = vshrl.u32 %v2748_v13, 16  ;;  %v280_v25 = vshll.u32 %v2748_v13, 16  ;;  %v286_v26 = vshll.u32 %v2754_v15, 16 }
  0x15   : > { %2340 = vmatprep.mubr.bf16.mxu1 %v1956_v17  ;;  %v265_v27 = vrot.slane %v263_v19, 4  ;;  %v268_v28 = vrot.slane %v266_v20, 5  ;;  %v291_v29 = vshrl.u32 %v2757_v16, 16  ;;  %v294_v30 = vshll.u32 %v2757_v16, 16  ;;  %v2779_v31 = vld [vmem:[%s2736_s16 + $0x18] sm:$0xf] }
  0x16   : > { %2305 = vmatpush3.bf16.msra.mxu0 %v2561_v4  ;;  %v279_v32 = vrot.slane %v277_v24, 4  ;;  %v282_v33 = vrot.slane %v280_v25, 5  ;;  %v2782_v34 = vld [vmem:[%s2736_s16 + $0x1c] sm:$0x1]  ;;  %v274_v36 = vrot.slane %v272_v23, 5  ;;  %v288_v41 = vrot.slane %v286_v26, 5 }
  0x17   : > { %2329 = vmatpush3.bf16.msra.mxu1 %v2562_v5  ;;  %2306 = vmatprep.subr.bf16.mxu0 %v2563_v6  ;;  %v269_v35 = vor.u32 %v268_v28, %v265_v27  ;;  %v293_v37 = vrot.slane %v291_v29, 4  ;;  %v296_v38 = vrot.slane %v294_v30, 5  ;;  %v300_v42 = vshll.u32 %v2770_v22, 16  ;;  %v2576_v61 = vld [vmem:[%s3263_s1 + $0xf8] sm:$0xff]   ;;  %v2577_v3 = vld [vmem:[%s3263_s1 + $0xb0] sm:$0xff]   ;;  %v2579_v25 = vld [vmem:[%s3263_s1 + $0xa8] sm:$0xff]  }
  0x18   : > { %2330 = vmatprep.subr.bf16.mxu1 %v2564_v7  ;;  %v283_v40 = vor.u32 %v282_v33, %v279_v32  ;;  %v305_v46 = vshrl.u32 %v2779_v31, 16  ;;  %v308_v49 = vshll.u32 %v2779_v31, 16  ;;  %v314_v50 = vshll.u32 %v2782_v34, 16  ;;  %v2578_v4 = vld [vmem:[%s3263_s1 + $0xf0] sm:$0xff]   ;;  %v2849_v17 = vld [vmem:[%s2736_s16 + $0x2c] sm:$0x1] }
  0x19   : > { %v270_v44 = vrot.slane %v269_v35, 4  ;;  %v297_v45 = vor.u32 %v296_v38, %v293_v37  ;;  %v302_v55 = vrot.slane %v300_v42, 5  ;;  %v670_v63 = vrot.slane %v2745_v12, 5  ;;  %v2860_v24 = vld [vmem:[%s2736_s16 + $0x30] sm:$0xf]  ;;  %v2609_v39 = vld [vmem:[%s3263_s1 + $0x108] sm:$0xff]  }
  0x1a   : > { %2307 = vmatpush3.bf16.msra.mxu0 %v2563_v6  ;;  %v284_v48 = vrot.slane %v283_v40, 4  ;;  %v307_v52 = vrot.slane %v305_v46, 4  ;;  %v310_v56 = vrot.slane %v308_v49, 5  ;;  %v316_v60 = vrot.slane %v314_v50, 5  ;;  %v2834_v6 = vld [vmem:[%s2736_s16 + $0x20] sm:$0xf] }
  0x1b   : > { %2331 = vmatpush3.bf16.msra.mxu1 %v2564_v7  ;;  %2308 = vmatprep.subr.bf16.mxu0 %v2565_v8  ;;  %v275_v51 = vsel %vm2786_vm2, %v270_v44, %v274_v36  ;;  %v298_v54 = vrot.slane %v297_v45, 4  ;;  %v2820_v1 = vcombine.low %v2757_v16, %v2779_v31  ;;  %v674_v2 = vrot.slane %v2754_v15, 5  ;;  %v2873_v29 = vld [vmem:[%s2736_s16 + $0x34] sm:$0x1]  ;;  %v2876_v30 = vld [vmem:[%s2736_s16 + $0x38] sm:$0xf] }
  0x1c   : > { %2332 = vmatprep.subr.bf16.mxu1 %v2566_v9  ;;  %v2804_v53 = vsel %vm2786_vm2, %v284_v48, %v288_v41  ;;  %v311_v59 = vor.u32 %v310_v56, %v307_v52  ;;  %v1968_v7 = vrot.slane %v2742_v11, 9  ;;  %v319_v19 = vshrl.u32 %v2834_v6, 16  ;;  %v2879_v37 = vld [vmem:[%s2736_s16 + $0x3c] sm:$0x1]  ;;  %v2582_v52 = vld [vmem:[%s3263_s1 + $0xe0] sm:$0xff]  }
  0x1d   : > { %v1944_v58 = vcombine.low %v275_v51, %v2804_v53  ;;  %v2815_v62 = vsel %vm2786_vm2, %v298_v54, %v302_v55  ;;  %v322_v20 = vshll.u32 %v2834_v6, 16  ;;  %v342_v27 = vshll.u32 %v2849_v17, 16 }
  0x1e   : > { %2309 = vmatpush3.bf16.msra.mxu0 %v2565_v8  ;;  %v312_v0 = vrot.slane %v311_v59, 4  ;;  %v1969_v8 = vrot.slane %v2748_v13, 9  ;;  %v321_v32 = vrot.slane %v319_v19, 4  ;;  %v347_v41 = vshrl.u32 %v2860_v24, 16 }
  0x1f   : > { %2333 = vmatpush3.bf16.msra.mxu1 %v2566_v9  ;;  %2310 = vmatprep.subr.bf16.mxu0 %v2567_v10  ;;  %v324_v33 = vrot.slane %v322_v20, 5  ;;  %v344_v40 = vrot.slane %v342_v27, 5  ;;  %v350_v42 = vshll.u32 %v2860_v24, 16  ;;  %v356_v44 = vshll.u32 %v2873_v29, 16 }
  0x20   : > { %2334 = vmatprep.subr.bf16.mxu1 %v2568_v14  ;;  %2316 = vmatprep.mubr.bf16.mxu0 %v1944_v58  ;;  %v2831_v5 = vsel %vm2786_vm2, %v312_v0, %v316_v60  ;;  %v361_v45 = vshrl.u32 %v2876_v30, 16  ;;  %v364_v46 = vshll.u32 %v2876_v30, 16  ;;  %v349_v49 = vrot.slane %v347_v41, 4 }
  0x21   : > { %v2840_v9 = vcombine.low %v2815_v62, %v2831_v5  ;;  %v352_v50 = vrot.slane %v350_v42, 5  ;;  %v370_v51 = vshll.u32 %v2879_v37, 16  ;;  %v358_v60 = vrot.slane %v356_v44, 5  ;;  %v2591_v42 = vld [vmem:[%s3263_s1 + $0x80] sm:$0xff]  }
  0x22   : > { %2311 = vmatpush3.bf16.msra.mxu0 %v2567_v10  ;;  %v2843_v10 = vld [vmem:[%s2736_s16 + $0x24] sm:$0x1]  ;;  %v363_v55 = vrot.slane %v361_v45, 4  ;;  %v366_v56 = vrot.slane %v364_v46, 5  ;;  %v2020_v19 = vcombine.low %v2748_v13, %v2757_v16  ;;  %v2583_v13 = vld [vmem:[%s3263_s1 + $0x98] sm:$0xff]   ;;  %v678_v27 = vrot.slane %v2770_v22, 5 }
  0x23   : > { %2335 = vmatpush3.bf16.msra.mxu1 %v2568_v14  ;;  %2312 = vmatprep.subr.bf16.mxu0 %v2569_v18  ;;  %v2846_v14 = vld [vmem:[%s2736_s16 + $0x28] sm:$0xf]  ;;  %v353_v59 = vor.u32 %v352_v50, %v349_v49  ;;  %v1972_v41 = vrot.slane %v2834_v6, 9  ;;  %v690_v45 = vrot.slane %v2849_v17, 5  ;;  %v2021_v17 = vcombine.low %v2779_v31, %v2834_v6  ;;  %v2595_v50 = vld [vmem:[%s3263_s1 + $0x138] sm:$0xff]  }
  0x24   : > { %2336 = vmatprep.subr.bf16.mxu1 %v2570_v21  ;;  %v333_v23 = vshrl.u32 %v2846_v14, 16  ;;  %v336_v26 = vshll.u32 %v2846_v14, 16  ;;  %v2870_v28 = vcombine.low %v2834_v6, %v2846_v14  ;;  %v1973_v44 = vrot.slane %v2846_v14, 9 }
  0x25   : > { %v1975_v6 = vrot.slane %v2876_v30, 9 }
  0x26   : > { %2313 = vmatpush3.bf16.msra.mxu0 %v2569_v18  ;;  %v2580_v18 = vld [vmem:[%s3263_s1 + $0xe8] sm:$0xff]   ;;  %v335_v36 = vrot.slane %v333_v23, 4  ;;  %v338_v38 = vrot.slane %v336_v26, 5  ;;  %v671_v23 = vsel %vm2896_vm5, %v1968_v7, %v670_v63  ;;  %v2926_v26 = vsel %vm2896_vm5, %v1969_v8, %v674_v2  ;;  %v2588_v8 = vld [vmem:[%s3263_s1 + $0xd0] sm:$0xff]  }
  0x27   : > { %2337 = vmatpush3.bf16.msra.mxu1 %v2570_v21  ;;  %2314 = vmatprep.subr.bf16.mxu0 %v2571_v43  ;;  %v328_v21 = vshll.u32 %v2843_v10, 16  ;;  %v1992_v2 = vcombine.low %v671_v23, %v2926_v26 }
  0x28   : > { %2338 = vmatprep.subr.bf16.mxu1 %v2572_v47  ;;  %v339_v48 = vor.u32 %v338_v38, %v335_v36  ;;  %v2589_v36 = vld [vmem:[%s3263_s1 + $0x88] sm:$0xff]   ;;  %v1971_v38 = vrot.slane %v2779_v31, 9 }
  0x29   : > { %v330_v35 = vrot.slane %v328_v21, 5  ;;  %v354_v21 = vrot.slane %v353_v59, 4  ;;  %v2598_v59 = vld [vmem:[%s3263_s1 + $0x170] sm:$0xff]  }
  0x2a   : > { %2315 = vmatpush3.bf16.msra.mxu0 %v2571_v43  ;;  %v325_v43 = vor.u32 %v324_v33, %v321_v32  ;;  %v340_v58 = vrot.slane %v339_v48, 4  ;;  %v682_v32 = vrot.slane %v2782_v34, 5  ;;  %v2590_v33 = vld [vmem:[%s3263_s1 + $0xc8] sm:$0xff]  }
  0x2b   : > { %2339 = vmatpush3.bf16.msra.mxu1 %v2572_v47  ;;  %2348 = vmatprep.subr.bf16.mxu0 %v2575_v57  ;;  %v2581_v47 = vld [vmem:[%s3263_s1 + $0xa0] sm:$0xff]   ;;  %v2940_v15 = vsel %vm2786_vm2, %v354_v21, %v358_v60 }
  0x2c   : > { %2372 = vmatprep.subr.bf16.mxu1 %v2576_v61  ;;  %v326_v54 = vrot.slane %v325_v43, 4  ;;  %v2912_v20 = vsel %vm2786_vm2, %v340_v58, %v344_v40  ;;  %v2971_v40 = vld [vmem:[%s2736_s16 + $0x40] sm:$0xf]  ;;  %v686_v43 = vrot.slane %v2843_v10, 5  ;;  %v2991_v49 = vsel %vm2896_vm5, %v1971_v38, %v682_v32  ;;  %v2596_v10 = vld [vmem:[%s3263_s1 + $0x178] sm:$0xff]  }
  0x2d   : > { %2317 = vmatmul.mubr.bf16.vlgmr.msra.gmra.mxu0 %v2840_v9  ;;  %v1003_v22 = vshrl.u32 %v2971_v40, 16  ;;  %v1006_v34 = vshll.u32 %v2971_v40, 16 }
  0x2e   : > { %2341 = vmatmul.mubr.bf16.vlgmr.msra.gmra.mxu1 %v2820_v1  ;;  %2349 = vmatpush3.bf16.msra.mxu0 %v2575_v57  ;;  %v2906_v0 = vsel %vm2786_vm2, %v326_v54, %v330_v35  ;;  %v1970_v35 = vrot.slane %v2757_v16, 9  ;;  %v2592_v16 = vld [vmem:[%s3263_s1 + $0xc0] sm:$0xff]   ;;  %v1974_v54 = vrot.slane %v2860_v24, 9 }
  0x2f   : > { %2373 = vmatpush3.bf16.msra.mxu1 %v2576_v61  ;;  %2350 = vmatprep.subr.bf16.mxu0 %v2577_v3  ;;  %v2902_v61 = vcombine.low %v2860_v24, %v2876_v30  ;;  %v2933_v11 = vcombine.low %v2906_v0, %v2912_v20  ;;  %v1005_v46 = vrot.slane %v1003_v22, 4  ;;  %v2603_v57 = vld [vmem:[%s3263_s1 + $0x120] sm:$0xff]  }
  0x30   : > { %2374 = vmatprep.subr.bf16.mxu1 %v2578_v4  ;;  %2344 = vmatprep.mubr.bf16.mxu1 %v2870_v28  ;;  %v2987_v48 = vsel %vm2896_vm5, %v1970_v35, %v678_v27  ;;  %v2023_v35 = vcombine.low %v2876_v30, %v2971_v40  ;;  %v2604_v30 = vld [vmem:[%s3263_s1 + $0x160] sm:$0xff]  }
  0x31   : > { %2320 = vmatprep.mubr.bf16.mxu0 %v2933_v11  ;;  %v3013_v31 = vcombine.low %v2987_v48, %v2991_v49 }
  0x32   : > { %2351 = vmatpush3.bf16.msra.mxu0 %v2577_v3  ;;  %v367_v3 = vor.u32 %v366_v56, %v363_v55  ;;  %v694_v55 = vrot.slane %v2873_v29, 5  ;;  %v698_v56 = vrot.slane %v2879_v37, 5  ;;  %v2597_v29 = vld [vmem:[%s3263_s1 + $0x130] sm:$0xff]   ;;  %v2060_v37 = vrot.slane %v2971_v40, 9 }
  0x33   : > { %2375 = vmatpush3.bf16.msra.mxu1 %v2578_v4  ;;  %2352 = vmatprep.subr.bf16.mxu0 %v2579_v25  ;;  %v372_v4 = vrot.slane %v370_v51, 5  ;;  %v3003_v51 = vsel %vm2896_vm5, %v1972_v41, %v686_v43 }
  0x34   : > { %2376 = vmatprep.subr.bf16.mxu1 %v2580_v18  ;;  %v368_v12 = vrot.slane %v367_v3, 4  ;;  %v2022_v3 = vcombine.low %v2846_v14, %v2860_v24  ;;  %v3038_v21 = vsel %vm2896_vm5, %v1975_v6, %v698_v56  ;;  %v2600_v14 = vld [vmem:[%s3263_s1 + $0x168] sm:$0xff]   ;;  %v2612_v6 = vld [vmem:[%s3263_s1 + $0x140] sm:$0xff]  }
  0x35   : > { %v3044_v24 = vld [vmem:[%s2736_s16 + $0x48] sm:$0xf]  ;;  %v2611_v56 = vld [vmem:[%s3263_s1 + $0x100] sm:$0xff]  }
  0x36   : > { %2353 = vmatpush3.bf16.msra.mxu0 %v2579_v25  ;;  %2345 = vmatmul.mubr.bf16.gmra.mxu1 %v2902_v61  ;;  %v2946_v63 = vsel %vm2786_vm2, %v368_v12, %v372_v4  ;;  %v2587_v25 = vld [vmem:[%s3263_s1 + $0x90] sm:$0xff]   ;;  %v240_v4 = vld [vmem:[%s2736_s16 + $0x44] sm:$0x1]  ;;  %v242_v12 = vld [vmem:[%s2736_s16 + $0x4c] sm:$0x1]  ;;  %v2105_v32 = vcombine.low %v2971_v40, %v3044_v24  ;;  %v1461_v41 = vshll.u32 %v3044_v24, 16 }
  0x37   : > { %2377 = vmatpush3.bf16.msra.mxu1 %v2580_v18  ;;  %v2584_v18 = vld [vmem:[%s3263_s1 + $0xd8] sm:$0xff]   ;;  %2354 = vmatprep.subr.bf16.mxu0 %v2581_v47  ;;  %v2951_v7 = vcombine.low %v2940_v15, %v2946_v63  ;;  %v1615_v27 = vrot.slane %v242_v12, 5  ;;  %v2637_v40 = vld [vmem:[%s3263_s1 + $0x200] sm:$0xff]  }
  0x38   : > { %2378 = vmatprep.subr.bf16.mxu1 %v2582_v52  ;;  %2388 = vmatprep.mubr.bf16.mxu1 %v2020_v19  ;;  %v3034_v19 = vsel %vm2896_vm5, %v1974_v54, %v694_v55  ;;  %v2610_v55 = vld [vmem:[%s3263_s1 + $0x148] sm:$0xff]  }
  0x39   : > { %2321 = vmatmul.mubr.bf16.gmra.mxu0 %v2951_v7 }
  0x3a   : > { %2355 = vmatpush3.bf16.msra.mxu0 %v2581_v47  ;;  %2364 = vmatprep.mubr.bf16.mxu0 %v1992_v2  ;;  %v1008_v47 = vrot.slane %v1006_v34, 5  ;;  %v2599_v2 = vld [vmem:[%s3263_s1 + $0x128] sm:$0xff]   ;;  %v1458_v34 = vshrl.u32 %v3044_v24, 16 }
  0x3b   : > { %2379 = vmatpush3.bf16.msra.mxu1 %v2582_v52  ;;  %2356 = vmatprep.subr.bf16.mxu0 %v2583_v13  ;;  %v3007_v52 = vsel %vm2896_vm5, %v1973_v44, %v690_v45  ;;  %v2077_v44 = vcombine.low %v2926_v26, %v2987_v48  ;;  %v1463_v45 = vrot.slane %v1461_v41, 5  ;;  %v2608_v48 = vld [vmem:[%s3263_s1 + $0x150] sm:$0xff]  }
  0x3c   : > { %2380 = vmatprep.subr.bf16.mxu1 %v2584_v18  ;;  %v1009_v58 = vor.u32 %v1008_v47, %v1005_v46  ;;  %v3025_v60 = vcombine.low %v3003_v51, %v3007_v52  ;;  %v1460_v43 = vrot.slane %v1458_v34, 4  ;;  %v1467_v46 = vshll.u32 %v242_v12, 16  ;;  %v2605_v47 = vld [vmem:[%s3263_s1 + $0x118] sm:$0xff]   ;;  %v2627_v12 = vld [vmem:[%s3263_s1 + $0x180] sm:$0xff]  }
  0x3e   : > { %2357 = vmatpush3.bf16.msra.mxu0 %v2583_v13  ;;  %v1010_v23 = vrot.slane %v1009_v58, 4  ;;  %v1166_v13 = vrot.slane %v240_v4, 5  ;;  %v2614_v58 = vld [vmem:[%s3263_s1 + $0x1f8] sm:$0xff]  }
  0x3f   : > { %2381 = vmatpush3.bf16.msra.mxu1 %v2584_v18  ;;  %2358 = vmatprep.subr.bf16.mxu0 %v2587_v25  ;;  %v1012_v18 = vshll.u32 %v240_v4, 16  ;;  %v2615_v4 = vld [vmem:[%s3263_s1 + $0x1b0] sm:$0xff]  }
  0x40   : > { %2382 = vmatprep.subr.bf16.mxu1 %v2588_v8  ;;  %v3066_v38 = vsel %vm2896_vm5, %v2060_v37, %v1166_v13  ;;  %v2049_v37 = vcombine.low %v2831_v5, %v2906_v0  ;;  %v2618_v5 = vld [vmem:[%s3263_s1 + $0x1e8] sm:$0xff]   ;;  %v2629_v13 = vld [vmem:[%s3263_s1 + $0x238] sm:$0xff]  }
  0x41   : > { %v2617_v0 = vld [vmem:[%s3263_s1 + $0x1a8] sm:$0xff]  }
  0x42   : > { %2359 = vmatpush3.bf16.msra.mxu0 %v2587_v25  ;;  %v2139_v25 = vrot.slane %v3044_v24, 9 }
  0x43   : > { %2383 = vmatpush3.bf16.msra.mxu1 %v2588_v8  ;;  %2360 = vmatprep.subr.bf16.mxu0 %v2589_v36  ;;  %v1014_v8 = vrot.slane %v1012_v18, 5  ;;  %v2623_v18 = vld [vmem:[%s3263_s1 + $0x190] sm:$0xff]  }
  0x44   : > { %2384 = vmatprep.subr.bf16.mxu1 %v2590_v33  ;;  %v3070_v22 = vsel %vm2896_vm5, %v2139_v25, %v1615_v27 }
  0x46   : > { %2361 = vmatpush3.bf16.msra.mxu0 %v2589_v36  ;;  %v3062_v36 = vsel %vm2786_vm2, %v1010_v23, %v1014_v8  ;;  %v2050_v23 = vcombine.low %v2912_v20, %v2940_v15  ;;  %v2080_v20 = vcombine.low %v3038_v21, %v3066_v38  ;;  %v2632_v8 = vld [vmem:[%s3263_s1 + $0x228] sm:$0xff]  }
  0x47   : > { %2385 = vmatpush3.bf16.msra.mxu1 %v2590_v33  ;;  %2362 = vmatprep.subr.bf16.mxu0 %v2591_v42  ;;  %v3056_v33 = vcombine.low %v3034_v19, %v3038_v21  ;;  %v2051_v15 = vcombine.low %v2946_v63, %v3062_v36  ;;  %v2622_v63 = vld [vmem:[%s3263_s1 + $0x1d8] sm:$0xff]   ;;  %v2624_v21 = vld [vmem:[%s3263_s1 + $0x1d0] sm:$0xff]  }
  0x48   : > { %2386 = vmatprep.subr.bf16.mxu1 %v2592_v16 }
  0x4a   : > { %2363 = vmatpush3.bf16.msra.mxu0 %v2591_v42  ;;  %v2048_v42 = vcombine.low %v2804_v53, %v2815_v62  ;;  %v2606_v53 = vld [vmem:[%s3263_s1 + $0x158] sm:$0xff]   ;;  %v1464_v62 = vor.u32 %v1463_v45, %v1460_v43 }
  0x4b   : > { %2387 = vmatpush3.bf16.msra.mxu1 %v2592_v16  ;;  %2396 = vmatprep.subr.bf16.mxu0 %v2595_v50  ;;  %v2156_v16 = vcombine.low %v3066_v38, %v3070_v22 }
  0x4c   : > { %2420 = vmatprep.subr.bf16.mxu1 %v2596_v10  ;;  %v1465_v26 = vrot.slane %v1464_v62, 4 }
  0x4d   : > { %2365 = vmatmul.mubr.bf16.vlgmr.msra.gmra.mxu0 %v3013_v31 }
  0x4e   : > { %2389 = vmatmul.mubr.bf16.vlgmr.msra.gmra.mxu1 %v2021_v17  ;;  %2397 = vmatpush3.bf16.msra.mxu0 %v2595_v50  ;;  %v2607_v50 = vld [vmem:[%s3263_s1 + $0x110] sm:$0xff]  }
  0x4f   : > { %2421 = vmatpush3.bf16.msra.mxu1 %v2596_v10  ;;  %2398 = vmatprep.subr.bf16.mxu0 %v2597_v29  ;;  %v1469_v10 = vrot.slane %v1467_v46, 5 }
  0x50   : > { %2422 = vmatprep.subr.bf16.mxu1 %v2598_v59  ;;  %2368 = vmatprep.mubr.bf16.mxu0 %v3025_v60 }
  0x51   : > { %2392 = vmatprep.mubr.bf16.mxu1 %v2022_v3  ;;  %v1470_v17 = vsel %vm2786_vm2, %v1465_v26, %v1469_v10  ;;  %v2616_v3 = vld [vmem:[%s3263_s1 + $0x1f0] sm:$0xff]  }
  0x52   : > { %2399 = vmatpush3.bf16.msra.mxu0 %v2597_v29  ;;  %v3102_v54 = vcombine.low %v3062_v36, %v1470_v17  ;;  %v2078_v29 = vcombine.low %v2991_v49, %v3003_v51  ;;  %v2079_v49 = vcombine.low %v3007_v52, %v3034_v19  ;;  %v2620_v51 = vld [vmem:[%s3263_s1 + $0x1e0] sm:$0xff]   ;;  %v2621_v19 = vld [vmem:[%s3263_s1 + $0x198] sm:$0xff]  }
  0x53   : > { %2423 = vmatpush3.bf16.msra.mxu1 %v2598_v59  ;;  %2400 = vmatprep.subr.bf16.mxu0 %v2599_v2  ;;  %v2613_v59 = vld [vmem:[%s3263_s1 + $0x1b8] sm:$0xff]   ;;  %v2619_v52 = vld [vmem:[%s3263_s1 + $0x1a0] sm:$0xff]  }
  0x54   : > { %2424 = vmatprep.subr.bf16.mxu1 %v2600_v14 }
  0x55   : > { %2369 = vmatmul.mubr.bf16.gmra.mxu0 %v3056_v33 }
  0x56   : > { %2393 = vmatmul.mubr.bf16.gmra.mxu1 %v2023_v35  ;;  %2401 = vmatpush3.bf16.msra.mxu0 %v2599_v2  ;;  %v2630_v2 = vld [vmem:[%s3263_s1 + $0x230] sm:$0xff]  }
  0x57   : > { %2425 = vmatpush3.bf16.msra.mxu1 %v2600_v14  ;;  %2402 = vmatprep.subr.bf16.mxu0 %v2603_v57  ;;  %v2628_v14 = vld [vmem:[%s3263_s1 + $0x1c0] sm:$0xff]  }
  0x58   : > { %2426 = vmatprep.subr.bf16.mxu1 %v2604_v30  ;;  %2412 = vmatprep.mubr.bf16.mxu0 %v2048_v42 }
  0x59   : > { %2436 = vmatprep.mubr.bf16.mxu1 %v2077_v44 }
  0x5a   : > { %2403 = vmatpush3.bf16.msra.mxu0 %v2603_v57 }
  0x5b   : > { %2427 = vmatpush3.bf16.msra.mxu1 %v2604_v30  ;;  %2404 = vmatprep.subr.bf16.mxu0 %v2605_v47 }
  0x5c   : > { %2428 = vmatprep.subr.bf16.mxu1 %v2606_v53 }
  0x5e   : > { %2405 = vmatpush3.bf16.msra.mxu0 %v2605_v47 }
  0x5f   : > { %2429 = vmatpush3.bf16.msra.mxu1 %v2606_v53  ;;  %2406 = vmatprep.subr.bf16.mxu0 %v2607_v50 }
  0x60   : > { %2430 = vmatprep.subr.bf16.mxu1 %v2608_v48 }
  0x62   : > { %2407 = vmatpush3.bf16.msra.mxu0 %v2607_v50 }
  0x63   : > { %2431 = vmatpush3.bf16.msra.mxu1 %v2608_v48  ;;  %2408 = vmatprep.subr.bf16.mxu0 %v2609_v39 }
  0x64   : > { %2432 = vmatprep.subr.bf16.mxu1 %v2610_v55 }
  0x66   : > { %2409 = vmatpush3.bf16.msra.mxu0 %v2609_v39 }
  0x67   : > { %2433 = vmatpush3.bf16.msra.mxu1 %v2610_v55  ;;  %2410 = vmatprep.subr.bf16.mxu0 %v2611_v56 }
  0x68   : > { %2434 = vmatprep.subr.bf16.mxu1 %v2612_v6 }
  0x6a   : > { %2411 = vmatpush3.bf16.msra.mxu0 %v2611_v56 }
  0x6b   : > { %2435 = vmatpush3.bf16.msra.mxu1 %v2612_v6  ;;  %2444 = vmatprep.subr.bf16.mxu0 %v2613_v59 }
  0x6c   : > { %2468 = vmatprep.subr.bf16.mxu1 %v2614_v58 }
  0x6d   : > { %2413 = vmatmul.mubr.bf16.vlgmr.msra.gmra.mxu0 %v2049_v37 }
  0x6e   : > { %2437 = vmatmul.mubr.bf16.vlgmr.msra.gmra.mxu1 %v2078_v29  ;;  %2445 = vmatpush3.bf16.msra.mxu0 %v2613_v59 }
  0x6f   : > { %2469 = vmatpush3.bf16.msra.mxu1 %v2614_v58  ;;  %2446 = vmatprep.subr.bf16.mxu0 %v2615_v4 }
  0x70   : > { %2470 = vmatprep.subr.bf16.mxu1 %v2616_v3  ;;  %2416 = vmatprep.mubr.bf16.mxu0 %v2050_v23 }
  0x71   : > { %2440 = vmatprep.mubr.bf16.mxu1 %v2079_v49 }
  0x72   : > { %2447 = vmatpush3.bf16.msra.mxu0 %v2615_v4 }
  0x73   : > { %2471 = vmatpush3.bf16.msra.mxu1 %v2616_v3  ;;  %2448 = vmatprep.subr.bf16.mxu0 %v2617_v0 }
  0x74   : > { %2472 = vmatprep.subr.bf16.mxu1 %v2618_v5 }
  0x75   : > { %2417 = vmatmul.mubr.bf16.gmra.mxu0 %v2051_v15 }
  0x76   : > { %2441 = vmatmul.mubr.bf16.gmra.mxu1 %v2080_v20  ;;  %2449 = vmatpush3.bf16.msra.mxu0 %v2617_v0 }
  0x77   : > { %2473 = vmatpush3.bf16.msra.mxu1 %v2618_v5  ;;  %2450 = vmatprep.subr.bf16.mxu0 %v2619_v52 }
  0x78   : > { %2474 = vmatprep.subr.bf16.mxu1 %v2620_v51  ;;  %2460 = vmatprep.mubr.bf16.mxu0 %v2820_v1  ;;  %v2626_v1 = vld [vmem:[%s3263_s1 + $0x1c8] sm:$0xff]  }
  0x79   : > { %2484 = vmatprep.mubr.bf16.mxu1 %v2840_v9  ;;  %v2625_v9 = vld [vmem:[%s3263_s1 + $0x188] sm:$0xff]  }
  0x7a   : > { %2451 = vmatpush3.bf16.msra.mxu0 %v2619_v52 }
  0x7b   : > { %2475 = vmatpush3.bf16.msra.mxu1 %v2620_v51  ;;  %2452 = vmatprep.subr.bf16.mxu0 %v2621_v19 }
  0x7c   : > { %2476 = vmatprep.subr.bf16.mxu1 %v2622_v63 }
  0x7e   : > { %2453 = vmatpush3.bf16.msra.mxu0 %v2621_v19 }
  0x7f   : > { %2477 = vmatpush3.bf16.msra.mxu1 %v2622_v63  ;;  %2454 = vmatprep.subr.bf16.mxu0 %v2623_v18 }
  0x80   : > { %2478 = vmatprep.subr.bf16.mxu1 %v2624_v21 }
  0x82   : > { %2455 = vmatpush3.bf16.msra.mxu0 %v2623_v18 }
  0x83   : > { %2479 = vmatpush3.bf16.msra.mxu1 %v2624_v21  ;;  %2456 = vmatprep.subr.bf16.mxu0 %v2625_v9 }
  0x84   : > { %2480 = vmatprep.subr.bf16.mxu1 %v2626_v1 }
  0x86   : > { %2457 = vmatpush3.bf16.msra.mxu0 %v2625_v9 }
  0x87   : > { %2481 = vmatpush3.bf16.msra.mxu1 %v2626_v1  ;;  %2458 = vmatprep.subr.bf16.mxu0 %v2627_v12 }
  0x88   : > { %2482 = vmatprep.subr.bf16.mxu1 %v2628_v14 }
  0x8a   : > { %2459 = vmatpush3.bf16.msra.mxu0 %v2627_v12 }
  0x8b   : > { %2483 = vmatpush3.bf16.msra.mxu1 %v2628_v14  ;;  %2492 = vmatprep.subr.bf16.mxu0 %v2629_v13 }
  0x8c   : > { %2516 = vmatprep.subr.bf16.mxu1 %v2629_v13 }
  0x8d   : > { %2461 = vmatmul.mubr.bf16.vlgmr.msra.gmra.mxu0 %v2870_v28  ;;  %v2634_v28 = vld [vmem:[%s3263_s1 + $0x218] sm:$0xff]  }
  0x8e   : > { %2485 = vmatmul.mubr.bf16.vlgmr.msra.gmra.mxu1 %v2933_v11  ;;  %2493 = vmatpush3.bf16.msra.mxu0 %v2629_v13  ;;  %v2633_v11 = vld [vmem:[%s3263_s1 + $0x220] sm:$0xff]  }
  0x8f   : > { %2524 = vmatpush3.bf16.msra.mxu1 %v2629_v13  ;;  %2494 = vmatprep.subr.bf16.mxu0 %v2630_v2 }
  0x90   : > { %2517 = vmatprep.subr.bf16.mxu1 %v2630_v2  ;;  %2464 = vmatprep.mubr.bf16.mxu0 %v2902_v61  ;;  %v2635_v61 = vld [vmem:[%s3263_s1 + $0x210] sm:$0xff]  }
  0x91   : > { %2488 = vmatprep.mubr.bf16.mxu1 %v2951_v7  ;;  %v2636_v7 = vld [vmem:[%s3263_s1 + $0x208] sm:$0xff]  }
  0x92   : > { %2495 = vmatpush3.bf16.msra.mxu0 %v2630_v2 }
  0x93   : > { %2525 = vmatpush3.bf16.msra.mxu1 %v2630_v2  ;;  %2496 = vmatprep.subr.bf16.mxu0 %v2632_v8 }
  0x94   : > { %2518 = vmatprep.subr.bf16.mxu1 %v2632_v8 }
  0x95   : > { %2465 = vmatmul.mubr.bf16.gmra.mxu0 %v2105_v32 }
  0x96   : > { %2489 = vmatmul.mubr.bf16.gmra.mxu1 %v3102_v54  ;;  %2497 = vmatpush3.bf16.msra.mxu0 %v2632_v8 }
  0x97   : > { %2526 = vmatpush3.bf16.msra.mxu1 %v2632_v8  ;;  %2498 = vmatprep.subr.bf16.mxu0 %v2633_v11 }
  0x98   : > { %2519 = vmatprep.subr.bf16.mxu1 %v2633_v11  ;;  %2508 = vmatprep.mubr.bf16.mxu0 %v3013_v31 }
  0x99   : > { %2512 = vmatprep.mubr.bf16.mxu1 %v3056_v33 }
  0x9a   : > { %2499 = vmatpush3.bf16.msra.mxu0 %v2633_v11 }
  0x9b   : > { %2527 = vmatpush3.bf16.msra.mxu1 %v2633_v11  ;;  %2500 = vmatprep.subr.bf16.mxu0 %v2634_v28 }
  0x9c   : > { %2520 = vmatprep.subr.bf16.mxu1 %v2634_v28 }
  0x9e   : > { %2501 = vmatpush3.bf16.msra.mxu0 %v2634_v28 }
  0x9f   : > { %2528 = vmatpush3.bf16.msra.mxu1 %v2634_v28  ;;  %2502 = vmatprep.subr.bf16.mxu0 %v2635_v61 }
  0xa0   : > { %2521 = vmatprep.subr.bf16.mxu1 %v2635_v61 }
  0xa2   : > { %2503 = vmatpush3.bf16.msra.mxu0 %v2635_v61 }
  0xa3   : > { %2529 = vmatpush3.bf16.msra.mxu1 %v2635_v61  ;;  %2504 = vmatprep.subr.bf16.mxu0 %v2636_v7 }
  0xa4   : > { %2522 = vmatprep.subr.bf16.mxu1 %v2636_v7 }
  0xa6   : > { %2505 = vmatpush3.bf16.msra.mxu0 %v2636_v7 }
  0xa7   : > { %2530 = vmatpush3.bf16.msra.mxu1 %v2636_v7  ;;  %2506 = vmatprep.subr.bf16.mxu0 %v2637_v40 }
  0xa8   : > { %2523 = vmatprep.subr.bf16.mxu1 %v2637_v40 }
  0xaa   : > { %2507 = vmatpush3.bf16.msra.mxu0 %v2637_v40 }
  0xab   : > { %2531 = vmatpush3.bf16.msra.mxu1 %v2637_v40 }
  0xad   : > { %2509 = vmatmul.mubr.bf16.vlgmr.msra.gmra.mxu0 %v3025_v60 }
  0xae   : > { %2513 = vmatmul.mubr.bf16.vlgmr.msra.gmra.mxu1 %v2156_v16 }
  0xed   : > { %v2318_v31 = vpop.f32.mrf.mxu0 }
  0xee   : > { %v2342_v25 = vpop.f32.mrf.mxu1 }
  0xef   : > { %v489_v24 = vpop.f32.mrf.mxu0  ;;  %v635_v12 = vadd.f32 %v2342_v25, %v2318_v31 }
  0xf0   : > { %v626_v32 = vpop.f32.mrf.mxu1 }
  0xf1   : > { %v2319_v27 = vpop.f32.mrf.mxu0  ;;  %v627_v11 = vadd.f32 %v626_v32, %v489_v24 }
  0xf2   : > { %v2343_v35 = vpop.f32.mrf.mxu1 }
  0xf3   : > { %v3216_v33 = vpop.f32.mrf.mxu0 }
  0xf4   : > { %3270 = vst [vmem:[#allocation2_spill] sm:$0xff] %v3216_v33  ;;  %v3218_v34 = vpop.f32.mrf.mxu1 }
  0xf5   : > { %3271 = vst [vmem:[#allocation3_spill] sm:$0xff] %v3218_v34 }
  0xf6   : > { %v2346_v41 = vpop.f32.mrf.mxu1 }
  0xf8   : > { %v642_v57 = vpop.f32.mrf.mxu1 }
  0xf9   : > { %v2322_v36 = vpop.f32.mrf.mxu0 }
  0xfa   : > { %v2347_v38 = vpop.f32.mrf.mxu1  ;;  %v651_v14 = vadd.f32 %v2346_v41, %v2322_v36 }
  0xfb   : > { %v505_v30 = vpop.f32.mrf.mxu0 }
  0xfc   : > { %v645_v16 = vpop.f32.mrf.mxu1  ;;  %v643_v13 = vadd.f32 %v642_v57, %v505_v30  ;;  %v3280_v36 = vld [vmem:[#allocation3_spill] sm:$0xff] }
  0xfd   : > { %v2323_v42 = vpop.f32.mrf.mxu0 }
  0xfe   : > { %v654_v7 = vadd.f32 %v2347_v38, %v2323_v42 }
  0xff   : > { %v508_v43 = vpop.f32.mrf.mxu0 }
 0x100   : > { %v646_v41 = vadd.f32 %v645_v16, %v508_v43 }
 0x10d   : > { %v2366_v22 = vpop.f32.mrf.mxu0 }
 0x10e   : > { %v2390_v44 = vpop.f32.mrf.mxu1  ;;  %v848_v28 = vadd.f32 %v2366_v22, %v635_v12 }
 0x10f   : > { %v815_v60 = vpop.f32.mrf.mxu0 }
 0x110   : > { %v963_v46 = vpop.f32.mrf.mxu1  ;;  %v996_v34 = vadd.f32 %v2390_v44, %v848_v28 }
 0x111   : > { %v2367_v45 = vpop.f32.mrf.mxu0 }
 0x112   : > { %v2391_v62 = vpop.f32.mrf.mxu1 }
 0x113   : > { %v818_v53 = vpop.f32.mrf.mxu0 }
 0x114   : > { %v3220_v10 = vpop.f32.mrf.mxu1 }
 0x115   : > { %v2370_v47 = vpop.f32.mrf.mxu0  ;;  %3272 = vst [vmem:[#allocation4_spill] sm:$0xff] %v3220_v10 }
 0x116   : > { %v2394_v26 = vpop.f32.mrf.mxu1  ;;  %v852_v2 = vadd.f32 %v2370_v47, %v651_v14 }
 0x117   : > { %v831_v48 = vpop.f32.mrf.mxu0 }
 0x118   : > { %v979_v17 = vpop.f32.mrf.mxu1  ;;  %v850_v40 = vadd.f32 %v831_v48, %v643_v13 }
 0x119   : > { %v2371_v50 = vpop.f32.mrf.mxu0 }
 0x11a   : > { %v2395_v54 = vpop.f32.mrf.mxu1  ;;  %v853_v10 = vadd.f32 %v2371_v50, %v654_v7  ;;  %v998_v25 = vadd.f32 %v979_v17, %v850_v40 }
 0x11b   : > { %v834_v55 = vpop.f32.mrf.mxu0 }
 0x11c   : > { %v3222_v6 = vpop.f32.mrf.mxu1  ;;  %v1001_v42 = vadd.f32 %v2395_v54, %v853_v10 }
 0x11d   : > { %3273 = vst [vmem:[#allocation5_spill] sm:$0xff] %v3222_v6  ;;  %v1000_v6 = vadd.f32 %v2394_v26, %v852_v2 }
 0x124   : > { %v3282_v16 = vld [vmem:[#allocation5_spill] sm:$0xff] }
 0x12d   : > { %v2414_v39 = vpop.f32.mrf.mxu0 }
 0x12e   : > { %v2438_v56 = vpop.f32.mrf.mxu1  ;;  %v1157_v32 = vadd.f32 %v2414_v39, %v996_v34 }
 0x12f   : > { %v1124_v58 = vpop.f32.mrf.mxu0 }
 0x130   : > { %v1276_v59 = vpop.f32.mrf.mxu1  ;;  %v1309_v44 = vadd.f32 %v2438_v56, %v1157_v32 }
 0x131   : > { %v2415_v29 = vpop.f32.mrf.mxu0 }
 0x132   : > { %v3224_v37 = vpop.f32.mrf.mxu1 }
 0x133   : > { %3274 = vst [vmem:[#allocation6_spill] sm:$0xff] %v3224_v37  ;;  %v1127_v3 = vpop.f32.mrf.mxu0 }
 0x134   : > { %v3226_v4 = vpop.f32.mrf.mxu1 }
 0x135   : > { %3275 = vst [vmem:[#allocation7_spill] sm:$0xff] %v3226_v4  ;;  %v2418_v23 = vpop.f32.mrf.mxu0  ;;  %v846_v4 = vadd.f32 %v815_v60, %v627_v11  ;;  %v851_v60 = vadd.f32 %v834_v55, %v646_v41 }
 0x136   : > { %v2442_v49 = vpop.f32.mrf.mxu1  ;;  %v1161_v30 = vadd.f32 %v2418_v23, %v1000_v6 }
 0x137   : > { %v1140_v5 = vpop.f32.mrf.mxu0  ;;  %v994_v24 = vadd.f32 %v963_v46, %v846_v4  ;;  %v999_v34 = vadd.f32 %v3282_v16, %v851_v60 }
 0x138   : > { %v1292_v0 = vpop.f32.mrf.mxu1  ;;  %v1159_v38 = vadd.f32 %v1140_v5, %v998_v25  ;;  %v1313_v26 = vadd.f32 %v2442_v49, %v1161_v30 }
 0x139   : > { %v2419_v20 = vpop.f32.mrf.mxu0  ;;  %v1155_v47 = vadd.f32 %v1124_v58, %v994_v24 }
 0x13a   : > { %v2443_v15 = vpop.f32.mrf.mxu1  ;;  %v1162_v48 = vadd.f32 %v2419_v20, %v1001_v42  ;;  %v1311_v17 = vadd.f32 %v1292_v0, %v1159_v38  ;;  %v2165_v0 = vld [vmem:[%s3264_s2] ss:$0 sm:$0xff] }
 0x13b   : > { %v1143_v51 = vpop.f32.mrf.mxu0  ;;  %v1307_v46 = vadd.f32 %v1276_v59, %v1155_v47 }
 0x13c   : > { %v3228_v52 = vpop.f32.mrf.mxu1  ;;  %v1314_v54 = vadd.f32 %v2443_v15, %v1162_v48  ;;  %v1160_v55 = vadd.f32 %v1143_v51, %v999_v34  ;;  %v3284_v59 = vld [vmem:[#allocation7_spill] sm:$0xff] }
 0x13d   : > { %3276 = vst [vmem:[#allocation8_spill] sm:$0xff] %v3228_v52  ;;  %v638_v52 = vadd.f32 %v2343_v35, %v2319_v27 }
 0x13f   : > { %v849_v33 = vadd.f32 %v2367_v45, %v638_v52  ;;  %v3281_v52 = vld [vmem:[#allocation4_spill] sm:$0xff] }
 0x141   : > { %v997_v35 = vadd.f32 %v2391_v62, %v849_v33  ;;  %v3283_v33 = vld [vmem:[#allocation6_spill] sm:$0xff] }
 0x143   : > { %v1158_v45 = vadd.f32 %v2415_v29, %v997_v35 }
 0x144   : > { %v3285_v14 = vld [vmem:[#allocation8_spill] sm:$0xff] }
 0x145   : > { %v1310_v62 = vadd.f32 %v3283_v33, %v1158_v45  ;;  %v1312_v12 = vadd.f32 %v3285_v14, %v1160_v55 }
 0x14d   : > { %v2462_v63 = vpop.f32.mrf.mxu0 }
 0x14e   : > { %v2486_v19 = vpop.f32.mrf.mxu1 }
 0x14f   : > { %v1418_v21 = vpop.f32.mrf.mxu0 }
 0x150   : > { %v3230_v18 = vpop.f32.mrf.mxu1  ;;  %v1449_v58 = vadd.f32 %v1418_v21, %v1307_v46 }
 0x151   : > { %3277 = vst [vmem:[#allocation9_spill] sm:$0xff] %v3230_v18  ;;  %v2463_v1 = vpop.f32.mrf.mxu0 }
 0x152   : > { %v3232_v9 = vpop.f32.mrf.mxu1  ;;  %v1452_v5 = vadd.f32 %v2463_v1, %v1310_v62 }
 0x153   : > { %3278 = vst [vmem:[#allocation10_spill] sm:$0xff] %v3232_v9  ;;  %v1421_v8 = vpop.f32.mrf.mxu0  ;;  %v3279_v9 = vld [vmem:[#allocation2_spill] sm:$0xff] }
 0x154   : > { %v3234_v61 = vpop.f32.mrf.mxu1  ;;  %v630_v31 = vadd.f32 %v3280_v36, %v3279_v9 }
 0x155   : > { %v2466_v18 = vpop.f32.mrf.mxu0 }
 0x156   : > { %v2490_v37 = vpop.f32.mrf.mxu1  ;;  %v847_v22 = vadd.f32 %v818_v53, %v630_v31  ;;  %v1455_v6 = vadd.f32 %v2466_v18, %v1313_v26  ;;  %v1451_v53 = vadd.f32 %v2462_v63, %v1309_v44 }
 0x157   : > { %v1434_v27 = vpop.f32.mrf.mxu0 }
 0x158   : > { %v1589_v57 = vpop.f32.mrf.mxu1  ;;  %v995_v9 = vadd.f32 %v3281_v52, %v847_v22  ;;  %v1453_v39 = vadd.f32 %v1434_v27, %v1311_v17  ;;  %v1610_v56 = vadd.f32 %v2490_v37, %v1455_v6  ;;  %v1606_v49 = vadd.f32 %v2486_v19, %v1451_v53  ;;  %v3286_v51 = vld [vmem:[#allocation9_spill] sm:$0xff] }
 0x159   : > { %v2467_v43 = vpop.f32.mrf.mxu0  ;;  %v1604_v21 = vadd.f32 %v3286_v51, %v1449_v58 }
 0x15a   : > { %v2491_v50 = vpop.f32.mrf.mxu1  ;;  %v1156_v10 = vadd.f32 %v1127_v3, %v995_v9  ;;  %v1456_v29 = vadd.f32 %v2467_v43, %v1314_v54  ;;  %v1608_v3 = vadd.f32 %v1589_v57, %v1453_v39  ;;  %v3287_v7 = vld [vmem:[#allocation10_spill] sm:$0xff] }
 0x15b   : > { %v1437_v23 = vpop.f32.mrf.mxu0  ;;  %v1607_v40 = vadd.f32 %v3287_v7, %v1452_v5 }
 0x15c   : > { %v1592_v4 = vpop.f32.mrf.mxu1  ;;  %v1308_v63 = vadd.f32 %v3284_v59, %v1156_v10  ;;  %v1611_v11 = vadd.f32 %v2491_v50, %v1456_v29  ;;  %v1454_v36 = vadd.f32 %v1437_v23, %v1312_v12 }
 0x15e   : > { %v1450_v2 = vadd.f32 %v1421_v8, %v1308_v63  ;;  %v1609_v47 = vadd.f32 %v1592_v4, %v1454_v36 }
 0x160   : > { %v1605_v42 = vadd.f32 %v3234_v61, %v1450_v2 }
 0x16d   : > { %v2510_v15 = vpop.f32.mrf.mxu0 }
 0x16e   : > { %v2514_v20 = vpop.f32.mrf.mxu1  ;;  %v1752_v13 = vadd.f32 %v2510_v15, %v1606_v49 }
 0x16f   : > { %v1756_v18 = vadd.f32 %v2514_v20, %v1610_v56  ;;  %v1719_v1 = vpop.f32.mrf.mxu0 }
 0x170   : > { %v1735_v37 = vpop.f32.mrf.mxu1  ;;  %v1767_v31 = vadd.f32 %v2165_v0, %v1752_v13  ;;  %v1750_v25 = vadd.f32 %v1719_v1, %v1604_v21 }
 0x171   : > { %v1771_v19 = vadd.f32 %v2165_v0, %v1756_v18  ;;  %v1754_v28 = vadd.f32 %v1735_v37, %v1608_v3  ;;  %v2511_v24 = vpop.f32.mrf.mxu0 }
 0x172   : > { %v2515_v30 = vpop.f32.mrf.mxu1  ;;  %v1753_v22 = vadd.f32 %v2511_v24, %v1607_v40  ;;  %v1783_v8 = vmul.f32 0.2, %v1767_v31  ;;  %v1765_v38 = vadd.f32 %v2165_v0, %v1750_v25  ;;  %vm1775_vm7 = vcmp.ge.f32.partialorder %v1767_v31, 0.0 }
 0x173   : > { %v1787_v41 = vmul.f32 0.2, %v1771_v19  ;;  %v1757_v32 = vadd.f32 %v2515_v30, %v1611_v11  ;;  %vm1779_vm6 = vcmp.ge.f32.partialorder %v1771_v19, 0.0  ;;  %v1769_v57 = vadd.f32 %v2165_v0, %v1754_v28  ;;  %v1722_v35 = vpop.f32.mrf.mxu0 }
 0x174   : > { %v1738_v60 = vpop.f32.mrf.mxu1  ;;  %v1768_v26 = vadd.f32 %v2165_v0, %v1753_v22  ;;  %v1751_v45 = vadd.f32 %v1722_v35, %v1605_v42  ;;  %v1791_v17 = vsel %vm1775_vm7, %v1767_v31, %v1783_v8  ;;  %v1781_v6 = vmul.f32 0.2, %v1765_v38 }
 0x175   : > { %v1772_v27 = vadd.f32 %v2165_v0, %v1757_v32  ;;  %v1795_v48 = vsel %vm1779_vm6, %v1771_v19, %v1787_v41  ;;  %v1785_v50 = vmul.f32 0.2, %v1769_v57  ;;  %v1755_v9 = vadd.f32 %v1738_v60, %v1609_v47 }
 0x176   : > { %vm1776_vm9 = vcmp.ge.f32.partialorder %v1768_v26, 0.0  ;;  %v1784_v52 = vmul.f32 0.2, %v1768_v26  ;;  %v1766_v43 = vadd.f32 %v2165_v0, %v1751_v45  ;;  %vm1773_vm10 = vcmp.ge.f32.partialorder %v1765_v38, 0.0 }
 0x177   : > { %vm1780_vm8 = vcmp.ge.f32.partialorder %v1772_v27, 0.0  ;;  %v1788_v44 = vmul.f32 0.2, %v1772_v27  ;;  %v1770_v46 = vadd.f32 %v2165_v0, %v1755_v9  ;;  %vm1777_vm11 = vcmp.ge.f32.partialorder %v1769_v57, 0.0 }
 0x178   : > { %v1792_v16 = vsel %vm1776_vm9, %v1768_v26, %v1784_v52  ;;  %vm1774_vm12 = vcmp.ge.f32.partialorder %v1766_v43, 0.0  ;;  %v1782_v10 = vmul.f32 0.2, %v1766_v43  ;;  %v1789_v39 = vsel %vm1773_vm10, %v1765_v38, %v1781_v6 }
 0x179   : > { %v1796_v61 = vsel %vm1780_vm8, %v1772_v27, %v1788_v44  ;;  %v2177_v53 = vpack.c.bf16 %v1792_v16, %v1791_v17  ;;  %vm1778_vm13 = vcmp.ge.f32.partialorder %v1770_v46, 0.0  ;;  %v1786_v54 = vmul.f32 0.2, %v1770_v46 }
 0x17a   : > { %v2187_v34 = vpack.c.bf16 %v1796_v61, %v1795_v48  ;;  %v1790_v33 = vsel %vm1774_vm12, %v1766_v43, %v1782_v10  ;;  %v1793_v62 = vsel %vm1777_vm11, %v1769_v57, %v1785_v50 }
 0x17b   : > { %2189 = vst [vmem:[%s221_s5 + $0x8] sm:$0xff] %v2177_v53   ;;  %v2172_v55 = vpack.c.bf16 %v1790_v33, %v1789_v39  ;;  %v1794_v58 = vsel %vm1778_vm13, %v1770_v46, %v1786_v54 }
 0x17c   : > { %2191 = vst [vmem:[%s221_s5 + $0x18] sm:$0xff] %v2187_v34   ;;  %v2182_v4 = vpack.c.bf16 %v1794_v58, %v1793_v62 }
 0x17d   : > { %2173 = vst [vmem:[%s221_s5] sm:$0xff] %v2172_v55  }
 0x17e   : > { %2190 = vst [vmem:[%s221_s5 + $0x10] sm:$0xff] %v2182_v4  }
 0x17f PF: > { %s13_s14 = sadd.s32 1, %s2660_s14   ;;  %s3288_s12 = smov %s2656_s13 }
 0x180   : > { %p10_p5 = scmp.ge.s32.totalorder %s13_s14, 4   ;;  %s3289_s13 = smov %s3291_s15 }
 0x182   :  { %12 = sbr.rel (!%p10_p5) target bundleno = 2 (0x2), region = 76 }

// kernel: loc_match_discriminator.9
= control target key start
LH: loop header
LB: loop body
LE: loop exit
PB: predicated region body
PF: predicated region fallthrough
CT: control target
= control target key end

     0   :  { %s2809_s15 = smov 0   ;;  %s2811_s16 = smov 0   ;;  %s3428_s0 = inlined_call_operand.vmem [shape: bf16[2,10,10,128], index: 0, kind: input, shape index: {}]   ;;  %s3429_s1 = inlined_call_operand.vmem [shape: bf16[9,128,128], index: 1, kind: input, shape index: {}]   ;;  %s3430_s2 = inlined_call_operand.vmem [shape: f32[1,128], index: 2, kind: input, shape index: {}]   ;;  %s3431_s3 = inlined_call_operand.vmem [shape: bf16[2,8,8,128], index: 3, kind: input, shape index: {}, may-alias: {3,4}]   ;;  %s3432_s4 = inlined_call_operand.vmem [shape: bf16[2,8,8,128], index: 4, kind: output, shape index: {}, may-alias: {3,4}]  }
   0x1   :  { %s2813_s17 = smov 0  }
   0x2 LB: > { %s26_s18 = sadd.s32 1, %s2778_s16  ;;  %p2024_p0 = scmp.ge.s32.totalorder %s2782_s17, 1  ;;  %s2782_s17 = sphi %s2813_s17, %s14_s17   ;;  %s2778_s16 = sphi %s2811_s16, %s3452_s16   ;;  %s2774_s15 = sphi %s2809_s15, %s3451_s15  }
   0x3   : > { %p28_p1 = scmp.ge.s32.totalorder %s26_s18, 2  ;;  %p208_p2 = scmp.lt.s32.totalorder %s2782_s17, 3 }
   0x5   : > { %s3454_s18 = smov (%p28_p1, %s26_s18), 0  ;;  %p209_p3 = pnand %p2024_p0, %p208_p2 }
   0x7   : > { %212 = sbr.rel (%p209_p3) target bundleno = 386 (0x182), region = 36 }
   0xc   : > { %v2679_v0 = vld [vmem:[%s3429_s1 + $0x78] sm:$0xff]   ;;  %p252_p4 = scmp.lt.s32.totalorder %s2774_s15, 1  ;;  %v2681_v2 = vld [vmem:[%s3429_s1 + $0x70] sm:$0xff]   ;;  %v2683_v4 = vld [vmem:[%s3429_s1 + $0x68] sm:$0xff]   ;;  %vm317_vm0 = vsmask.f32 3328 }
   0xd   : > { %v2680_v1 = vld [vmem:[%s3429_s1 + $0x38] sm:$0xff]   ;;  %2422 = vmatprep.subr.bf16.mxu0 %v2679_v0  ;;  %v2682_v3 = vld [vmem:[%s3429_s1 + $0x30] sm:$0xff]   ;;  %v2684_v5 = vld [vmem:[%s3429_s1 + $0x28] sm:$0xff]   ;;  %vm318_vm1 = vsmask.f32 7440  ;;  %vm723_vm3 = vcmask 1042432  }
   0xe   : > { %2446 = vmatprep.subr.bf16.mxu1 %v2680_v1  ;;  %2423 = vmatpush3.bf16.msra.mxu0 %v2679_v0  ;;  %s3456_s15 = smov (!%p252_p4, %s2774_s15), 1  ;;  %v2685_v6 = vld [vmem:[%s3429_s1 + $0x60] sm:$0xff]   ;;  %v2687_v8 = vld [vmem:[%s3429_s1 + $0x58] sm:$0xff]   ;;  %v2689_v10 = vld [vmem:[%s3429_s1 + $0x50] sm:$0xff]   ;;  %vm724_vm4 = vcmask 1046532  }
   0xf   : > { %2447 = vmatpush3.bf16.msra.mxu1 %v2680_v1  ;;  %2424 = vmatprep.subr.bf16.mxu0 %v2681_v2  ;;  %v2686_v7 = vld [vmem:[%s3429_s1 + $0x20] sm:$0xff]   ;;  %s2654_s9 = smul.u32 80, %s3456_s15  ;;  %v2688_v9 = vld [vmem:[%s3429_s1 + $0x18] sm:$0xff]   ;;  %v2690_v14 = vld [vmem:[%s3429_s1 + $0x10] sm:$0xff]   ;;  %s2270_s10 = sshll.u32 %s3456_s15, 5 }
  0x10   : > { %2448 = vmatprep.subr.bf16.mxu1 %v2682_v3  ;;  %v2691_v18 = vld [vmem:[%s3429_s1 + $0x48] sm:$0xff]   ;;  %vm2913_vm2 = vmor %vm317_vm0, %vm318_vm1  ;;  %v2693_v43 = vld [vmem:[%s3429_s1 + $0x40] sm:$0xff]   ;;  %s3383_s13 = scalar_lea.vmem %s3431_s3, %s2270_s10  ;;  %s279_s23 = scalar_lea.vmem %s3432_s4, %s2270_s10 }
  0x11   : > { %s2863_s20 = scalar_lea.vmem %s3428_s0, %s2654_s9  ;;  %v2692_v21 = vld [vmem:[%s3429_s1 + $0x8] sm:$0xff]   ;;  %v2694_v47 = vld [vmem:[%s3429_s1] sm:$0xff]   ;;  %v2697_v57 = vld [vmem:[%s3429_s1 + $0xb8] sm:$0xff]  }
  0x12   : > { %2425 = vmatpush3.bf16.msra.mxu0 %v2681_v2  ;;  %v2869_v11 = vld [vmem:[%s2863_s20] sm:$0xf]  ;;  %v2872_v12 = vld [vmem:[%s2863_s20 + $0x4] sm:$0x1]  ;;  %v2875_v13 = vld [vmem:[%s2863_s20 + $0x8] sm:$0xf] }
  0x13   : > { %2449 = vmatpush3.bf16.msra.mxu1 %v2682_v3  ;;  %2426 = vmatprep.subr.bf16.mxu0 %v2683_v4  ;;  %v2881_v15 = vld [vmem:[%s2863_s20 + $0xc] sm:$0x1]  ;;  %v2884_v16 = vld [vmem:[%s2863_s20 + $0x10] sm:$0xf]  ;;  %v2058_v17 = vcombine.low %v2869_v11, %v2875_v13  ;;  %v321_v19 = vshrl.u32 %v2869_v11, 16  ;;  %v324_v20 = vshll.u32 %v2869_v11, 16  ;;  %vm3023_vm5 = vmor %vm723_vm3, %vm724_vm4 }
  0x14   : > { %2450 = vmatprep.subr.bf16.mxu1 %v2684_v5  ;;  %v2897_v22 = vld [vmem:[%s2863_s20 + $0x14] sm:$0x1]  ;;  %v330_v23 = vshll.u32 %v2872_v12, 16  ;;  %v335_v24 = vshrl.u32 %v2875_v13, 16  ;;  %v338_v25 = vshll.u32 %v2875_v13, 16  ;;  %v344_v26 = vshll.u32 %v2881_v15, 16 }
  0x15   : > { %2462 = vmatprep.mubr.bf16.mxu1 %v2058_v17  ;;  %v323_v27 = vrot.slane %v321_v19, 4  ;;  %v326_v28 = vrot.slane %v324_v20, 5  ;;  %v349_v29 = vshrl.u32 %v2884_v16, 16  ;;  %v352_v30 = vshll.u32 %v2884_v16, 16  ;;  %v2906_v31 = vld [vmem:[%s2863_s20 + $0x18] sm:$0xf] }
  0x16   : > { %2427 = vmatpush3.bf16.msra.mxu0 %v2683_v4  ;;  %v337_v32 = vrot.slane %v335_v24, 4  ;;  %v340_v33 = vrot.slane %v338_v25, 5  ;;  %v2909_v34 = vld [vmem:[%s2863_s20 + $0x1c] sm:$0x1]  ;;  %v332_v36 = vrot.slane %v330_v23, 5  ;;  %v346_v41 = vrot.slane %v344_v26, 5 }
  0x17   : > { %2451 = vmatpush3.bf16.msra.mxu1 %v2684_v5  ;;  %2428 = vmatprep.subr.bf16.mxu0 %v2685_v6  ;;  %v327_v35 = vor.u32 %v326_v28, %v323_v27  ;;  %v351_v37 = vrot.slane %v349_v29, 4  ;;  %v354_v38 = vrot.slane %v352_v30, 5  ;;  %v358_v42 = vshll.u32 %v2897_v22, 16  ;;  %v2698_v61 = vld [vmem:[%s3429_s1 + $0xf8] sm:$0xff]   ;;  %v2699_v3 = vld [vmem:[%s3429_s1 + $0xb0] sm:$0xff]   ;;  %v2701_v25 = vld [vmem:[%s3429_s1 + $0xa8] sm:$0xff]  }
  0x18   : > { %2452 = vmatprep.subr.bf16.mxu1 %v2686_v7  ;;  %v341_v40 = vor.u32 %v340_v33, %v337_v32  ;;  %v363_v46 = vshrl.u32 %v2906_v31, 16  ;;  %v366_v49 = vshll.u32 %v2906_v31, 16  ;;  %v372_v50 = vshll.u32 %v2909_v34, 16  ;;  %v2700_v4 = vld [vmem:[%s3429_s1 + $0xf0] sm:$0xff]   ;;  %v2976_v17 = vld [vmem:[%s2863_s20 + $0x2c] sm:$0x1] }
  0x19   : > { %v328_v44 = vrot.slane %v327_v35, 4  ;;  %v355_v45 = vor.u32 %v354_v38, %v351_v37  ;;  %v360_v55 = vrot.slane %v358_v42, 5  ;;  %v728_v63 = vrot.slane %v2872_v12, 5  ;;  %v2987_v24 = vld [vmem:[%s2863_s20 + $0x30] sm:$0xf]  ;;  %v2731_v39 = vld [vmem:[%s3429_s1 + $0x108] sm:$0xff]  }
  0x1a   : > { %2429 = vmatpush3.bf16.msra.mxu0 %v2685_v6  ;;  %v342_v48 = vrot.slane %v341_v40, 4  ;;  %v365_v52 = vrot.slane %v363_v46, 4  ;;  %v368_v56 = vrot.slane %v366_v49, 5  ;;  %v374_v60 = vrot.slane %v372_v50, 5  ;;  %v2961_v6 = vld [vmem:[%s2863_s20 + $0x20] sm:$0xf] }
  0x1b   : > { %2453 = vmatpush3.bf16.msra.mxu1 %v2686_v7  ;;  %2430 = vmatprep.subr.bf16.mxu0 %v2687_v8  ;;  %v333_v51 = vsel %vm2913_vm2, %v328_v44, %v332_v36  ;;  %v356_v54 = vrot.slane %v355_v45, 4  ;;  %v2947_v1 = vcombine.low %v2884_v16, %v2906_v31  ;;  %v732_v2 = vrot.slane %v2881_v15, 5  ;;  %v3000_v29 = vld [vmem:[%s2863_s20 + $0x34] sm:$0x1]  ;;  %v3003_v30 = vld [vmem:[%s2863_s20 + $0x38] sm:$0xf] }
  0x1c   : > { %2454 = vmatprep.subr.bf16.mxu1 %v2688_v9  ;;  %v2931_v53 = vsel %vm2913_vm2, %v342_v48, %v346_v41  ;;  %v369_v59 = vor.u32 %v368_v56, %v365_v52  ;;  %v2070_v7 = vrot.slane %v2869_v11, 9  ;;  %v377_v19 = vshrl.u32 %v2961_v6, 16  ;;  %v3006_v37 = vld [vmem:[%s2863_s20 + $0x3c] sm:$0x1]  ;;  %v2704_v52 = vld [vmem:[%s3429_s1 + $0xe0] sm:$0xff]  }
  0x1d   : > { %v2046_v58 = vcombine.low %v333_v51, %v2931_v53  ;;  %v2942_v62 = vsel %vm2913_vm2, %v356_v54, %v360_v55  ;;  %v380_v20 = vshll.u32 %v2961_v6, 16  ;;  %v400_v27 = vshll.u32 %v2976_v17, 16 }
  0x1e   : > { %2431 = vmatpush3.bf16.msra.mxu0 %v2687_v8  ;;  %v370_v0 = vrot.slane %v369_v59, 4  ;;  %v2071_v8 = vrot.slane %v2875_v13, 9  ;;  %v379_v32 = vrot.slane %v377_v19, 4  ;;  %v405_v41 = vshrl.u32 %v2987_v24, 16 }
  0x1f   : > { %2455 = vmatpush3.bf16.msra.mxu1 %v2688_v9  ;;  %2432 = vmatprep.subr.bf16.mxu0 %v2689_v10  ;;  %v382_v33 = vrot.slane %v380_v20, 5  ;;  %v402_v40 = vrot.slane %v400_v27, 5  ;;  %v408_v42 = vshll.u32 %v2987_v24, 16  ;;  %v414_v44 = vshll.u32 %v3000_v29, 16 }
  0x20   : > { %2456 = vmatprep.subr.bf16.mxu1 %v2690_v14  ;;  %2438 = vmatprep.mubr.bf16.mxu0 %v2046_v58  ;;  %v2958_v5 = vsel %vm2913_vm2, %v370_v0, %v374_v60  ;;  %v419_v45 = vshrl.u32 %v3003_v30, 16  ;;  %v422_v46 = vshll.u32 %v3003_v30, 16  ;;  %v407_v49 = vrot.slane %v405_v41, 4 }
  0x21   : > { %v2967_v9 = vcombine.low %v2942_v62, %v2958_v5  ;;  %v410_v50 = vrot.slane %v408_v42, 5  ;;  %v428_v51 = vshll.u32 %v3006_v37, 16  ;;  %v416_v60 = vrot.slane %v414_v44, 5  ;;  %v2713_v42 = vld [vmem:[%s3429_s1 + $0x80] sm:$0xff]  }
  0x22   : > { %2433 = vmatpush3.bf16.msra.mxu0 %v2689_v10  ;;  %v2970_v10 = vld [vmem:[%s2863_s20 + $0x24] sm:$0x1]  ;;  %v421_v55 = vrot.slane %v419_v45, 4  ;;  %v424_v56 = vrot.slane %v422_v46, 5  ;;  %v2122_v19 = vcombine.low %v2875_v13, %v2884_v16  ;;  %v2705_v13 = vld [vmem:[%s3429_s1 + $0x98] sm:$0xff]   ;;  %v736_v27 = vrot.slane %v2897_v22, 5 }
  0x23   : > { %2457 = vmatpush3.bf16.msra.mxu1 %v2690_v14  ;;  %2434 = vmatprep.subr.bf16.mxu0 %v2691_v18  ;;  %v2973_v14 = vld [vmem:[%s2863_s20 + $0x28] sm:$0xf]  ;;  %v411_v59 = vor.u32 %v410_v50, %v407_v49  ;;  %v2074_v41 = vrot.slane %v2961_v6, 9  ;;  %v748_v45 = vrot.slane %v2976_v17, 5  ;;  %v2123_v17 = vcombine.low %v2906_v31, %v2961_v6  ;;  %v2717_v50 = vld [vmem:[%s3429_s1 + $0x138] sm:$0xff]  }
  0x24   : > { %2458 = vmatprep.subr.bf16.mxu1 %v2692_v21  ;;  %v391_v23 = vshrl.u32 %v2973_v14, 16  ;;  %v394_v26 = vshll.u32 %v2973_v14, 16  ;;  %v2997_v28 = vcombine.low %v2961_v6, %v2973_v14  ;;  %v2075_v44 = vrot.slane %v2973_v14, 9 }
  0x25   : > { %v2077_v6 = vrot.slane %v3003_v30, 9 }
  0x26   : > { %2435 = vmatpush3.bf16.msra.mxu0 %v2691_v18  ;;  %v2702_v18 = vld [vmem:[%s3429_s1 + $0xe8] sm:$0xff]   ;;  %v393_v36 = vrot.slane %v391_v23, 4  ;;  %v396_v38 = vrot.slane %v394_v26, 5  ;;  %v729_v23 = vsel %vm3023_vm5, %v2070_v7, %v728_v63  ;;  %v3053_v26 = vsel %vm3023_vm5, %v2071_v8, %v732_v2  ;;  %v2710_v8 = vld [vmem:[%s3429_s1 + $0xd0] sm:$0xff]  }
  0x27   : > { %2459 = vmatpush3.bf16.msra.mxu1 %v2692_v21  ;;  %2436 = vmatprep.subr.bf16.mxu0 %v2693_v43  ;;  %v386_v21 = vshll.u32 %v2970_v10, 16  ;;  %v2094_v2 = vcombine.low %v729_v23, %v3053_v26 }
  0x28   : > { %2460 = vmatprep.subr.bf16.mxu1 %v2694_v47  ;;  %v397_v48 = vor.u32 %v396_v38, %v393_v36  ;;  %v2711_v36 = vld [vmem:[%s3429_s1 + $0x88] sm:$0xff]   ;;  %v2073_v38 = vrot.slane %v2906_v31, 9 }
  0x29   : > { %v388_v35 = vrot.slane %v386_v21, 5  ;;  %v412_v21 = vrot.slane %v411_v59, 4  ;;  %v2720_v59 = vld [vmem:[%s3429_s1 + $0x170] sm:$0xff]  }
  0x2a   : > { %2437 = vmatpush3.bf16.msra.mxu0 %v2693_v43  ;;  %v383_v43 = vor.u32 %v382_v33, %v379_v32  ;;  %v398_v58 = vrot.slane %v397_v48, 4  ;;  %v740_v32 = vrot.slane %v2909_v34, 5  ;;  %v2712_v33 = vld [vmem:[%s3429_s1 + $0xc8] sm:$0xff]  }
  0x2b   : > { %2461 = vmatpush3.bf16.msra.mxu1 %v2694_v47  ;;  %2470 = vmatprep.subr.bf16.mxu0 %v2697_v57  ;;  %v2703_v47 = vld [vmem:[%s3429_s1 + $0xa0] sm:$0xff]   ;;  %v3067_v15 = vsel %vm2913_vm2, %v412_v21, %v416_v60 }
  0x2c   : > { %2494 = vmatprep.subr.bf16.mxu1 %v2698_v61  ;;  %v384_v54 = vrot.slane %v383_v43, 4  ;;  %v3039_v20 = vsel %vm2913_vm2, %v398_v58, %v402_v40  ;;  %v3098_v40 = vld [vmem:[%s2863_s20 + $0x40] sm:$0xf]  ;;  %v744_v43 = vrot.slane %v2970_v10, 5  ;;  %v3118_v49 = vsel %vm3023_vm5, %v2073_v38, %v740_v32  ;;  %v2718_v10 = vld [vmem:[%s3429_s1 + $0x178] sm:$0xff]  }
  0x2d   : > { %2439 = vmatmul.mubr.bf16.vlgmr.msra.gmra.mxu0 %v2967_v9  ;;  %v1061_v22 = vshrl.u32 %v3098_v40, 16  ;;  %v1064_v34 = vshll.u32 %v3098_v40, 16 }
  0x2e   : > { %2463 = vmatmul.mubr.bf16.vlgmr.msra.gmra.mxu1 %v2947_v1  ;;  %2471 = vmatpush3.bf16.msra.mxu0 %v2697_v57  ;;  %v3033_v0 = vsel %vm2913_vm2, %v384_v54, %v388_v35  ;;  %v2072_v35 = vrot.slane %v2884_v16, 9  ;;  %v2714_v16 = vld [vmem:[%s3429_s1 + $0xc0] sm:$0xff]   ;;  %v2076_v54 = vrot.slane %v2987_v24, 9 }
  0x2f   : > { %2495 = vmatpush3.bf16.msra.mxu1 %v2698_v61  ;;  %2472 = vmatprep.subr.bf16.mxu0 %v2699_v3  ;;  %v3029_v61 = vcombine.low %v2987_v24, %v3003_v30  ;;  %v3060_v11 = vcombine.low %v3033_v0, %v3039_v20  ;;  %v1063_v46 = vrot.slane %v1061_v22, 4  ;;  %v2725_v57 = vld [vmem:[%s3429_s1 + $0x120] sm:$0xff]  }
  0x30   : > { %2496 = vmatprep.subr.bf16.mxu1 %v2700_v4  ;;  %2466 = vmatprep.mubr.bf16.mxu1 %v2997_v28  ;;  %v3114_v48 = vsel %vm3023_vm5, %v2072_v35, %v736_v27  ;;  %v2125_v35 = vcombine.low %v3003_v30, %v3098_v40  ;;  %v2726_v30 = vld [vmem:[%s3429_s1 + $0x160] sm:$0xff]  }
  0x31   : > { %2442 = vmatprep.mubr.bf16.mxu0 %v3060_v11  ;;  %v3140_v31 = vcombine.low %v3114_v48, %v3118_v49 }
  0x32   : > { %2473 = vmatpush3.bf16.msra.mxu0 %v2699_v3  ;;  %v425_v3 = vor.u32 %v424_v56, %v421_v55  ;;  %v752_v55 = vrot.slane %v3000_v29, 5  ;;  %v756_v56 = vrot.slane %v3006_v37, 5  ;;  %v2719_v29 = vld [vmem:[%s3429_s1 + $0x130] sm:$0xff]   ;;  %v2162_v37 = vrot.slane %v3098_v40, 9 }
  0x33   : > { %2497 = vmatpush3.bf16.msra.mxu1 %v2700_v4  ;;  %2474 = vmatprep.subr.bf16.mxu0 %v2701_v25  ;;  %v430_v4 = vrot.slane %v428_v51, 5  ;;  %v3130_v51 = vsel %vm3023_vm5, %v2074_v41, %v744_v43 }
  0x34   : > { %2498 = vmatprep.subr.bf16.mxu1 %v2702_v18  ;;  %v426_v12 = vrot.slane %v425_v3, 4  ;;  %v2124_v3 = vcombine.low %v2973_v14, %v2987_v24  ;;  %v3165_v21 = vsel %vm3023_vm5, %v2077_v6, %v756_v56  ;;  %v2722_v14 = vld [vmem:[%s3429_s1 + $0x168] sm:$0xff]   ;;  %v2734_v6 = vld [vmem:[%s3429_s1 + $0x140] sm:$0xff]  }
  0x35   : > { %v3171_v24 = vld [vmem:[%s2863_s20 + $0x48] sm:$0xf]  ;;  %v2733_v56 = vld [vmem:[%s3429_s1 + $0x100] sm:$0xff]  }
  0x36   : > { %2475 = vmatpush3.bf16.msra.mxu0 %v2701_v25  ;;  %2467 = vmatmul.mubr.bf16.gmra.mxu1 %v3029_v61  ;;  %v3073_v63 = vsel %vm2913_vm2, %v426_v12, %v430_v4  ;;  %v2709_v25 = vld [vmem:[%s3429_s1 + $0x90] sm:$0xff]   ;;  %v298_v4 = vld [vmem:[%s2863_s20 + $0x44] sm:$0x1]  ;;  %v300_v12 = vld [vmem:[%s2863_s20 + $0x4c] sm:$0x1]  ;;  %v2207_v32 = vcombine.low %v3098_v40, %v3171_v24  ;;  %v1519_v41 = vshll.u32 %v3171_v24, 16 }
  0x37   : > { %2499 = vmatpush3.bf16.msra.mxu1 %v2702_v18  ;;  %v2706_v18 = vld [vmem:[%s3429_s1 + $0xd8] sm:$0xff]   ;;  %2476 = vmatprep.subr.bf16.mxu0 %v2703_v47  ;;  %v3078_v7 = vcombine.low %v3067_v15, %v3073_v63  ;;  %v1673_v27 = vrot.slane %v300_v12, 5  ;;  %v2759_v40 = vld [vmem:[%s3429_s1 + $0x200] sm:$0xff]  }
  0x38   : > { %2500 = vmatprep.subr.bf16.mxu1 %v2704_v52  ;;  %2510 = vmatprep.mubr.bf16.mxu1 %v2122_v19  ;;  %v3161_v19 = vsel %vm3023_vm5, %v2076_v54, %v752_v55  ;;  %v2732_v55 = vld [vmem:[%s3429_s1 + $0x148] sm:$0xff]  }
  0x39   : > { %2443 = vmatmul.mubr.bf16.gmra.mxu0 %v3078_v7 }
  0x3a   : > { %2477 = vmatpush3.bf16.msra.mxu0 %v2703_v47  ;;  %2486 = vmatprep.mubr.bf16.mxu0 %v2094_v2  ;;  %v1066_v47 = vrot.slane %v1064_v34, 5  ;;  %v2721_v2 = vld [vmem:[%s3429_s1 + $0x128] sm:$0xff]   ;;  %v1516_v34 = vshrl.u32 %v3171_v24, 16 }
  0x3b   : > { %2501 = vmatpush3.bf16.msra.mxu1 %v2704_v52  ;;  %2478 = vmatprep.subr.bf16.mxu0 %v2705_v13  ;;  %v3134_v52 = vsel %vm3023_vm5, %v2075_v44, %v748_v45  ;;  %v2179_v44 = vcombine.low %v3053_v26, %v3114_v48  ;;  %v1521_v45 = vrot.slane %v1519_v41, 5  ;;  %v2730_v48 = vld [vmem:[%s3429_s1 + $0x150] sm:$0xff]  }
  0x3c   : > { %2502 = vmatprep.subr.bf16.mxu1 %v2706_v18  ;;  %v1067_v58 = vor.u32 %v1066_v47, %v1063_v46  ;;  %v3152_v60 = vcombine.low %v3130_v51, %v3134_v52  ;;  %v1518_v43 = vrot.slane %v1516_v34, 4  ;;  %v1525_v46 = vshll.u32 %v300_v12, 16  ;;  %v2727_v47 = vld [vmem:[%s3429_s1 + $0x118] sm:$0xff]   ;;  %v2749_v12 = vld [vmem:[%s3429_s1 + $0x180] sm:$0xff]  }
  0x3e   : > { %2479 = vmatpush3.bf16.msra.mxu0 %v2705_v13  ;;  %v1068_v23 = vrot.slane %v1067_v58, 4  ;;  %v1224_v13 = vrot.slane %v298_v4, 5  ;;  %v2736_v58 = vld [vmem:[%s3429_s1 + $0x1f8] sm:$0xff]  }
  0x3f   : > { %2503 = vmatpush3.bf16.msra.mxu1 %v2706_v18  ;;  %2480 = vmatprep.subr.bf16.mxu0 %v2709_v25  ;;  %v1070_v18 = vshll.u32 %v298_v4, 16  ;;  %v2737_v4 = vld [vmem:[%s3429_s1 + $0x1b0] sm:$0xff]  }
  0x40   : > { %2504 = vmatprep.subr.bf16.mxu1 %v2710_v8  ;;  %v3193_v38 = vsel %vm3023_vm5, %v2162_v37, %v1224_v13  ;;  %v2151_v37 = vcombine.low %v2958_v5, %v3033_v0  ;;  %v2740_v5 = vld [vmem:[%s3429_s1 + $0x1e8] sm:$0xff]   ;;  %v2751_v13 = vld [vmem:[%s3429_s1 + $0x238] sm:$0xff]  }
  0x41   : > { %v2739_v0 = vld [vmem:[%s3429_s1 + $0x1a8] sm:$0xff]  }
  0x42   : > { %2481 = vmatpush3.bf16.msra.mxu0 %v2709_v25  ;;  %v2241_v25 = vrot.slane %v3171_v24, 9 }
  0x43   : > { %2505 = vmatpush3.bf16.msra.mxu1 %v2710_v8  ;;  %2482 = vmatprep.subr.bf16.mxu0 %v2711_v36  ;;  %v1072_v8 = vrot.slane %v1070_v18, 5  ;;  %v2745_v18 = vld [vmem:[%s3429_s1 + $0x190] sm:$0xff]  }
  0x44   : > { %2506 = vmatprep.subr.bf16.mxu1 %v2712_v33  ;;  %v3197_v22 = vsel %vm3023_vm5, %v2241_v25, %v1673_v27 }
  0x46   : > { %2483 = vmatpush3.bf16.msra.mxu0 %v2711_v36  ;;  %v3189_v36 = vsel %vm2913_vm2, %v1068_v23, %v1072_v8  ;;  %v2152_v23 = vcombine.low %v3039_v20, %v3067_v15  ;;  %v2182_v20 = vcombine.low %v3165_v21, %v3193_v38  ;;  %v2754_v8 = vld [vmem:[%s3429_s1 + $0x228] sm:$0xff]  }
  0x47   : > { %2507 = vmatpush3.bf16.msra.mxu1 %v2712_v33  ;;  %2484 = vmatprep.subr.bf16.mxu0 %v2713_v42  ;;  %v3183_v33 = vcombine.low %v3161_v19, %v3165_v21  ;;  %v2153_v15 = vcombine.low %v3073_v63, %v3189_v36  ;;  %v2744_v63 = vld [vmem:[%s3429_s1 + $0x1d8] sm:$0xff]   ;;  %v2746_v21 = vld [vmem:[%s3429_s1 + $0x1d0] sm:$0xff]  }
  0x48   : > { %2508 = vmatprep.subr.bf16.mxu1 %v2714_v16 }
  0x4a   : > { %2485 = vmatpush3.bf16.msra.mxu0 %v2713_v42  ;;  %v2150_v42 = vcombine.low %v2931_v53, %v2942_v62  ;;  %v2728_v53 = vld [vmem:[%s3429_s1 + $0x158] sm:$0xff]   ;;  %v1522_v62 = vor.u32 %v1521_v45, %v1518_v43 }
  0x4b   : > { %2509 = vmatpush3.bf16.msra.mxu1 %v2714_v16  ;;  %2518 = vmatprep.subr.bf16.mxu0 %v2717_v50  ;;  %v2258_v16 = vcombine.low %v3193_v38, %v3197_v22 }
  0x4c   : > { %2542 = vmatprep.subr.bf16.mxu1 %v2718_v10  ;;  %v1523_v26 = vrot.slane %v1522_v62, 4 }
  0x4d   : > { %2487 = vmatmul.mubr.bf16.vlgmr.msra.gmra.mxu0 %v3140_v31 }
  0x4e   : > { %2511 = vmatmul.mubr.bf16.vlgmr.msra.gmra.mxu1 %v2123_v17  ;;  %2519 = vmatpush3.bf16.msra.mxu0 %v2717_v50  ;;  %v2729_v50 = vld [vmem:[%s3429_s1 + $0x110] sm:$0xff]  }
  0x4f   : > { %2543 = vmatpush3.bf16.msra.mxu1 %v2718_v10  ;;  %2520 = vmatprep.subr.bf16.mxu0 %v2719_v29  ;;  %v1527_v10 = vrot.slane %v1525_v46, 5 }
  0x50   : > { %2544 = vmatprep.subr.bf16.mxu1 %v2720_v59  ;;  %2490 = vmatprep.mubr.bf16.mxu0 %v3152_v60 }
  0x51   : > { %2514 = vmatprep.mubr.bf16.mxu1 %v2124_v3  ;;  %v1528_v17 = vsel %vm2913_vm2, %v1523_v26, %v1527_v10  ;;  %v2738_v3 = vld [vmem:[%s3429_s1 + $0x1f0] sm:$0xff]  }
  0x52   : > { %2521 = vmatpush3.bf16.msra.mxu0 %v2719_v29  ;;  %v3229_v54 = vcombine.low %v3189_v36, %v1528_v17  ;;  %v2180_v29 = vcombine.low %v3118_v49, %v3130_v51  ;;  %v2181_v49 = vcombine.low %v3134_v52, %v3161_v19  ;;  %v2742_v51 = vld [vmem:[%s3429_s1 + $0x1e0] sm:$0xff]   ;;  %v2743_v19 = vld [vmem:[%s3429_s1 + $0x198] sm:$0xff]  }
  0x53   : > { %2545 = vmatpush3.bf16.msra.mxu1 %v2720_v59  ;;  %2522 = vmatprep.subr.bf16.mxu0 %v2721_v2  ;;  %v2735_v59 = vld [vmem:[%s3429_s1 + $0x1b8] sm:$0xff]   ;;  %v2741_v52 = vld [vmem:[%s3429_s1 + $0x1a0] sm:$0xff]  }
  0x54   : > { %2546 = vmatprep.subr.bf16.mxu1 %v2722_v14 }
  0x55   : > { %2491 = vmatmul.mubr.bf16.gmra.mxu0 %v3183_v33 }
  0x56   : > { %2515 = vmatmul.mubr.bf16.gmra.mxu1 %v2125_v35  ;;  %2523 = vmatpush3.bf16.msra.mxu0 %v2721_v2  ;;  %v2752_v2 = vld [vmem:[%s3429_s1 + $0x230] sm:$0xff]  }
  0x57   : > { %2547 = vmatpush3.bf16.msra.mxu1 %v2722_v14  ;;  %2524 = vmatprep.subr.bf16.mxu0 %v2725_v57  ;;  %v2750_v14 = vld [vmem:[%s3429_s1 + $0x1c0] sm:$0xff]  }
  0x58   : > { %2548 = vmatprep.subr.bf16.mxu1 %v2726_v30  ;;  %2534 = vmatprep.mubr.bf16.mxu0 %v2150_v42 }
  0x59   : > { %2558 = vmatprep.mubr.bf16.mxu1 %v2179_v44 }
  0x5a   : > { %2525 = vmatpush3.bf16.msra.mxu0 %v2725_v57 }
  0x5b   : > { %2549 = vmatpush3.bf16.msra.mxu1 %v2726_v30  ;;  %2526 = vmatprep.subr.bf16.mxu0 %v2727_v47 }
  0x5c   : > { %2550 = vmatprep.subr.bf16.mxu1 %v2728_v53 }
  0x5e   : > { %2527 = vmatpush3.bf16.msra.mxu0 %v2727_v47 }
  0x5f   : > { %2551 = vmatpush3.bf16.msra.mxu1 %v2728_v53  ;;  %2528 = vmatprep.subr.bf16.mxu0 %v2729_v50 }
  0x60   : > { %2552 = vmatprep.subr.bf16.mxu1 %v2730_v48 }
  0x62   : > { %2529 = vmatpush3.bf16.msra.mxu0 %v2729_v50 }
  0x63   : > { %2553 = vmatpush3.bf16.msra.mxu1 %v2730_v48  ;;  %2530 = vmatprep.subr.bf16.mxu0 %v2731_v39 }
  0x64   : > { %2554 = vmatprep.subr.bf16.mxu1 %v2732_v55 }
  0x66   : > { %2531 = vmatpush3.bf16.msra.mxu0 %v2731_v39 }
  0x67   : > { %2555 = vmatpush3.bf16.msra.mxu1 %v2732_v55  ;;  %2532 = vmatprep.subr.bf16.mxu0 %v2733_v56 }
  0x68   : > { %2556 = vmatprep.subr.bf16.mxu1 %v2734_v6 }
  0x6a   : > { %2533 = vmatpush3.bf16.msra.mxu0 %v2733_v56 }
  0x6b   : > { %2557 = vmatpush3.bf16.msra.mxu1 %v2734_v6  ;;  %2566 = vmatprep.subr.bf16.mxu0 %v2735_v59 }
  0x6c   : > { %2590 = vmatprep.subr.bf16.mxu1 %v2736_v58 }
  0x6d   : > { %2535 = vmatmul.mubr.bf16.vlgmr.msra.gmra.mxu0 %v2151_v37 }
  0x6e   : > { %2559 = vmatmul.mubr.bf16.vlgmr.msra.gmra.mxu1 %v2180_v29  ;;  %2567 = vmatpush3.bf16.msra.mxu0 %v2735_v59 }
  0x6f   : > { %2591 = vmatpush3.bf16.msra.mxu1 %v2736_v58  ;;  %2568 = vmatprep.subr.bf16.mxu0 %v2737_v4 }
  0x70   : > { %2592 = vmatprep.subr.bf16.mxu1 %v2738_v3  ;;  %2538 = vmatprep.mubr.bf16.mxu0 %v2152_v23 }
  0x71   : > { %2562 = vmatprep.mubr.bf16.mxu1 %v2181_v49 }
  0x72   : > { %2569 = vmatpush3.bf16.msra.mxu0 %v2737_v4 }
  0x73   : > { %2593 = vmatpush3.bf16.msra.mxu1 %v2738_v3  ;;  %2570 = vmatprep.subr.bf16.mxu0 %v2739_v0 }
  0x74   : > { %2594 = vmatprep.subr.bf16.mxu1 %v2740_v5 }
  0x75   : > { %2539 = vmatmul.mubr.bf16.gmra.mxu0 %v2153_v15 }
  0x76   : > { %2563 = vmatmul.mubr.bf16.gmra.mxu1 %v2182_v20  ;;  %2571 = vmatpush3.bf16.msra.mxu0 %v2739_v0 }
  0x77   : > { %2595 = vmatpush3.bf16.msra.mxu1 %v2740_v5  ;;  %2572 = vmatprep.subr.bf16.mxu0 %v2741_v52 }
  0x78   : > { %2596 = vmatprep.subr.bf16.mxu1 %v2742_v51  ;;  %2582 = vmatprep.mubr.bf16.mxu0 %v2947_v1  ;;  %v2748_v1 = vld [vmem:[%s3429_s1 + $0x1c8] sm:$0xff]  }
  0x79   : > { %2606 = vmatprep.mubr.bf16.mxu1 %v2967_v9  ;;  %v2747_v9 = vld [vmem:[%s3429_s1 + $0x188] sm:$0xff]  }
  0x7a   : > { %2573 = vmatpush3.bf16.msra.mxu0 %v2741_v52 }
  0x7b   : > { %2597 = vmatpush3.bf16.msra.mxu1 %v2742_v51  ;;  %2574 = vmatprep.subr.bf16.mxu0 %v2743_v19 }
  0x7c   : > { %2598 = vmatprep.subr.bf16.mxu1 %v2744_v63 }
  0x7e   : > { %2575 = vmatpush3.bf16.msra.mxu0 %v2743_v19 }
  0x7f   : > { %2599 = vmatpush3.bf16.msra.mxu1 %v2744_v63  ;;  %2576 = vmatprep.subr.bf16.mxu0 %v2745_v18 }
  0x80   : > { %2600 = vmatprep.subr.bf16.mxu1 %v2746_v21 }
  0x82   : > { %2577 = vmatpush3.bf16.msra.mxu0 %v2745_v18 }
  0x83   : > { %2601 = vmatpush3.bf16.msra.mxu1 %v2746_v21  ;;  %2578 = vmatprep.subr.bf16.mxu0 %v2747_v9 }
  0x84   : > { %2602 = vmatprep.subr.bf16.mxu1 %v2748_v1 }
  0x86   : > { %2579 = vmatpush3.bf16.msra.mxu0 %v2747_v9 }
  0x87   : > { %2603 = vmatpush3.bf16.msra.mxu1 %v2748_v1  ;;  %2580 = vmatprep.subr.bf16.mxu0 %v2749_v12 }
  0x88   : > { %2604 = vmatprep.subr.bf16.mxu1 %v2750_v14 }
  0x8a   : > { %2581 = vmatpush3.bf16.msra.mxu0 %v2749_v12 }
  0x8b   : > { %2605 = vmatpush3.bf16.msra.mxu1 %v2750_v14  ;;  %2614 = vmatprep.subr.bf16.mxu0 %v2751_v13 }
  0x8c   : > { %2638 = vmatprep.subr.bf16.mxu1 %v2751_v13 }
  0x8d   : > { %2583 = vmatmul.mubr.bf16.vlgmr.msra.gmra.mxu0 %v2997_v28  ;;  %v2756_v28 = vld [vmem:[%s3429_s1 + $0x218] sm:$0xff]  }
  0x8e   : > { %2607 = vmatmul.mubr.bf16.vlgmr.msra.gmra.mxu1 %v3060_v11  ;;  %2615 = vmatpush3.bf16.msra.mxu0 %v2751_v13  ;;  %v2755_v11 = vld [vmem:[%s3429_s1 + $0x220] sm:$0xff]  }
  0x8f   : > { %2646 = vmatpush3.bf16.msra.mxu1 %v2751_v13  ;;  %2616 = vmatprep.subr.bf16.mxu0 %v2752_v2 }
  0x90   : > { %2639 = vmatprep.subr.bf16.mxu1 %v2752_v2  ;;  %2586 = vmatprep.mubr.bf16.mxu0 %v3029_v61  ;;  %v2757_v61 = vld [vmem:[%s3429_s1 + $0x210] sm:$0xff]  }
  0x91   : > { %2610 = vmatprep.mubr.bf16.mxu1 %v3078_v7  ;;  %v2758_v7 = vld [vmem:[%s3429_s1 + $0x208] sm:$0xff]  }
  0x92   : > { %2617 = vmatpush3.bf16.msra.mxu0 %v2752_v2 }
  0x93   : > { %2647 = vmatpush3.bf16.msra.mxu1 %v2752_v2  ;;  %2618 = vmatprep.subr.bf16.mxu0 %v2754_v8 }
  0x94   : > { %2640 = vmatprep.subr.bf16.mxu1 %v2754_v8 }
  0x95   : > { %2587 = vmatmul.mubr.bf16.gmra.mxu0 %v2207_v32 }
  0x96   : > { %2611 = vmatmul.mubr.bf16.gmra.mxu1 %v3229_v54  ;;  %2619 = vmatpush3.bf16.msra.mxu0 %v2754_v8 }
  0x97   : > { %2648 = vmatpush3.bf16.msra.mxu1 %v2754_v8  ;;  %2620 = vmatprep.subr.bf16.mxu0 %v2755_v11 }
  0x98   : > { %2641 = vmatprep.subr.bf16.mxu1 %v2755_v11  ;;  %2630 = vmatprep.mubr.bf16.mxu0 %v3140_v31 }
  0x99   : > { %2634 = vmatprep.mubr.bf16.mxu1 %v3183_v33 }
  0x9a   : > { %2621 = vmatpush3.bf16.msra.mxu0 %v2755_v11 }
  0x9b   : > { %2649 = vmatpush3.bf16.msra.mxu1 %v2755_v11  ;;  %2622 = vmatprep.subr.bf16.mxu0 %v2756_v28 }
  0x9c   : > { %2642 = vmatprep.subr.bf16.mxu1 %v2756_v28 }
  0x9e   : > { %2623 = vmatpush3.bf16.msra.mxu0 %v2756_v28 }
  0x9f   : > { %2650 = vmatpush3.bf16.msra.mxu1 %v2756_v28  ;;  %2624 = vmatprep.subr.bf16.mxu0 %v2757_v61 }
  0xa0   : > { %2643 = vmatprep.subr.bf16.mxu1 %v2757_v61 }
  0xa2   : > { %2625 = vmatpush3.bf16.msra.mxu0 %v2757_v61 }
  0xa3   : > { %2651 = vmatpush3.bf16.msra.mxu1 %v2757_v61  ;;  %2626 = vmatprep.subr.bf16.mxu0 %v2758_v7 }
  0xa4   : > { %2644 = vmatprep.subr.bf16.mxu1 %v2758_v7 }
  0xa6   : > { %2627 = vmatpush3.bf16.msra.mxu0 %v2758_v7 }
  0xa7   : > { %2652 = vmatpush3.bf16.msra.mxu1 %v2758_v7  ;;  %2628 = vmatprep.subr.bf16.mxu0 %v2759_v40 }
  0xa8   : > { %2645 = vmatprep.subr.bf16.mxu1 %v2759_v40 }
  0xaa   : > { %2629 = vmatpush3.bf16.msra.mxu0 %v2759_v40 }
  0xab   : > { %2653 = vmatpush3.bf16.msra.mxu1 %v2759_v40 }
  0xad   : > { %2631 = vmatmul.mubr.bf16.vlgmr.msra.gmra.mxu0 %v3152_v60 }
  0xae   : > { %2635 = vmatmul.mubr.bf16.vlgmr.msra.gmra.mxu1 %v2258_v16 }
  0xed   : > { %v2440_v31 = vpop.f32.mrf.mxu0 }
  0xee   : > { %v2464_v25 = vpop.f32.mrf.mxu1 }
  0xef   : > { %v547_v24 = vpop.f32.mrf.mxu0  ;;  %v693_v12 = vadd.f32 %v2464_v25, %v2440_v31 }
  0xf0   : > { %v684_v32 = vpop.f32.mrf.mxu1 }
  0xf1   : > { %v2441_v27 = vpop.f32.mrf.mxu0  ;;  %v685_v8 = vadd.f32 %v684_v32, %v547_v24 }
  0xf2   : > { %v2465_v35 = vpop.f32.mrf.mxu1 }
  0xf3   : > { %v3343_v33 = vpop.f32.mrf.mxu0  ;;  %v696_v40 = vadd.f32 %v2465_v35, %v2441_v27 }
  0xf4   : > { %v3345_v34 = vpop.f32.mrf.mxu1 }
  0xf5   : > { %v688_v32 = vadd.f32 %v3345_v34, %v3343_v33 }
  0xf6   : > { %v2468_v41 = vpop.f32.mrf.mxu1 }
  0xf8   : > { %v700_v57 = vpop.f32.mrf.mxu1 }
  0xf9   : > { %v2444_v36 = vpop.f32.mrf.mxu0 }
  0xfa   : > { %v2469_v38 = vpop.f32.mrf.mxu1  ;;  %v709_v14 = vadd.f32 %v2468_v41, %v2444_v36 }
  0xfb   : > { %v563_v30 = vpop.f32.mrf.mxu0 }
  0xfc   : > { %v703_v60 = vpop.f32.mrf.mxu1  ;;  %v701_v11 = vadd.f32 %v700_v57, %v563_v30 }
  0xfd   : > { %v2445_v42 = vpop.f32.mrf.mxu0 }
  0xfe   : > { %v712_v7 = vadd.f32 %v2469_v38, %v2445_v42 }
  0xff   : > { %v3347_v43 = vpop.f32.mrf.mxu0 }
 0x100   : > { %v704_v30 = vadd.f32 %v703_v60, %v3347_v43 }
 0x10d   : > { %v2488_v22 = vpop.f32.mrf.mxu0 }
 0x10e   : > { %v2512_v44 = vpop.f32.mrf.mxu1  ;;  %v906_v28 = vadd.f32 %v2488_v22, %v693_v12 }
 0x10f   : > { %v873_v16 = vpop.f32.mrf.mxu0 }
 0x110   : > { %v1021_v46 = vpop.f32.mrf.mxu1 }
 0x111   : > { %v2489_v45 = vpop.f32.mrf.mxu0 }
 0x112   : > { %v2513_v62 = vpop.f32.mrf.mxu1  ;;  %v907_v36 = vadd.f32 %v2489_v45, %v696_v40 }
 0x113   : > { %v3349_v53 = vpop.f32.mrf.mxu0 }
 0x114   : > { %v3351_v10 = vpop.f32.mrf.mxu1  ;;  %v1055_v42 = vadd.f32 %v2513_v62, %v907_v36  ;;  %v905_v22 = vadd.f32 %v3349_v53, %v688_v32  ;;  %v2273_v32 = vld [vmem:[%s3383_s13] sm:$0xff]  }
 0x115   : > { %v2492_v47 = vpop.f32.mrf.mxu0 }
 0x116   : > { %v2516_v26 = vpop.f32.mrf.mxu1  ;;  %v910_v13 = vadd.f32 %v2492_v47, %v709_v14  ;;  %v1053_v60 = vadd.f32 %v3351_v10, %v905_v22  ;;  %v3395_v10 = vld [vmem:[%s3430_s2] ss:$0 sm:$0xff] }
 0x117   : > { %v889_v48 = vpop.f32.mrf.mxu0 }
 0x118   : > { %v1037_v17 = vpop.f32.mrf.mxu1 }
 0x119   : > { %v2493_v50 = vpop.f32.mrf.mxu0 }
 0x11a   : > { %v2517_v54 = vpop.f32.mrf.mxu1 }
 0x11b   : > { %v892_v55 = vpop.f32.mrf.mxu0 }
 0x11c   : > { %v3353_v6 = vpop.f32.mrf.mxu1 }
 0x12d   : > { %v2536_v39 = vpop.f32.mrf.mxu0 }
 0x12e   : > { %v2560_v56 = vpop.f32.mrf.mxu1 }
 0x12f   : > { %v1182_v58 = vpop.f32.mrf.mxu0 }
 0x130   : > { %v1334_v59 = vpop.f32.mrf.mxu1 }
 0x131   : > { %v2537_v29 = vpop.f32.mrf.mxu0 }
 0x132   : > { %v3355_v37 = vpop.f32.mrf.mxu1 }
 0x133   : > { %3437 = vst [vmem:[#allocation2_spill] sm:$0xff] %v3355_v37  ;;  %v3357_v3 = vpop.f32.mrf.mxu0 }
 0x134   : > { %3438 = vst [vmem:[#allocation3_spill] sm:$0xff] %v3357_v3  ;;  %v3359_v4 = vpop.f32.mrf.mxu1  ;;  %v1058_v3 = vadd.f32 %v2516_v26, %v910_v13  ;;  %v1216_v26 = vadd.f32 %v2537_v29, %v1055_v42  ;;  %v2308_v29 = vld [vmem:[%s3383_s13 + $0x8] sm:$0xff]  }
 0x135   : > { %3439 = vst [vmem:[#allocation4_spill] sm:$0xff] %v3359_v4  ;;  %v2540_v23 = vpop.f32.mrf.mxu0  ;;  %v908_v4 = vadd.f32 %v889_v48, %v701_v11 }
 0x136   : > { %v2564_v49 = vpop.f32.mrf.mxu1  ;;  %v1219_v31 = vadd.f32 %v2540_v23, %v1058_v3 }
 0x137   : > { %v1198_v5 = vpop.f32.mrf.mxu0  ;;  %v1056_v41 = vadd.f32 %v1037_v17, %v908_v4 }
 0x138   : > { %v1350_v0 = vpop.f32.mrf.mxu1 }
 0x139   : > { %v2541_v20 = vpop.f32.mrf.mxu0  ;;  %v1217_v38 = vadd.f32 %v1198_v5, %v1056_v41 }
 0x13a   : > { %v2565_v15 = vpop.f32.mrf.mxu1 }
 0x13b   : > { %v1201_v51 = vpop.f32.mrf.mxu0  ;;  %v1369_v34 = vadd.f32 %v1350_v0, %v1217_v38  ;;  %v3445_v3 = vld [vmem:[#allocation3_spill] sm:$0xff] }
 0x13c   : > { %v3361_v52 = vpop.f32.mrf.mxu1  ;;  %v1214_v4 = vadd.f32 %v3445_v3, %v1053_v60 }
 0x13d   : > { %3440 = vst [vmem:[#allocation5_spill] sm:$0xff] %v3361_v52  ;;  %v904_v52 = vadd.f32 %v873_v16, %v685_v8  ;;  %v909_v16 = vadd.f32 %v892_v55, %v704_v30  ;;  %v3448_v8 = vld [vmem:[#allocation4_spill] sm:$0xff] }
 0x13f   : > { %v1052_v25 = vadd.f32 %v1021_v46, %v904_v52  ;;  %v1057_v53 = vadd.f32 %v3353_v6, %v909_v16 }
 0x141   : > { %v1213_v57 = vadd.f32 %v1182_v58, %v1052_v25  ;;  %v1218_v23 = vadd.f32 %v1201_v51, %v1057_v53 }
 0x143   : > { %v1365_v33 = vadd.f32 %v1334_v59, %v1213_v57 }
 0x144   : > { %v3449_v11 = vld [vmem:[#allocation5_spill] sm:$0xff] }
 0x14d   : > { %v2584_v63 = vpop.f32.mrf.mxu0 }
 0x14e   : > { %v3363_v19 = vpop.f32.mrf.mxu1 }
 0x14f   : > { %3441 = vst [vmem:[#allocation6_spill] sm:$0xff] %v3363_v19  ;;  %v1476_v21 = vpop.f32.mrf.mxu0 }
 0x150   : > { %v3365_v18 = vpop.f32.mrf.mxu1 }
 0x151   : > { %3442 = vst [vmem:[#allocation7_spill] sm:$0xff] %v3365_v18  ;;  %v2585_v1 = vpop.f32.mrf.mxu0  ;;  %v911_v18 = vadd.f32 %v2493_v50, %v712_v7 }
 0x152   : > { %v3367_v9 = vpop.f32.mrf.mxu1 }
 0x153   : > { %3443 = vst [vmem:[#allocation8_spill] sm:$0xff] %v3367_v9  ;;  %v3369_v2 = vpop.f32.mrf.mxu0  ;;  %v1054_v9 = vadd.f32 %v2512_v44, %v906_v28  ;;  %v1059_v27 = vadd.f32 %v2517_v54, %v911_v18  ;;  %v1371_v44 = vadd.f32 %v2564_v49, %v1219_v31  ;;  %v3444_v54 = vld [vmem:[#allocation2_spill] sm:$0xff]  ;;  %v1370_v28 = vadd.f32 %v3449_v11, %v1218_v23 }
 0x154   : > { %v3371_v61 = vpop.f32.mrf.mxu1  ;;  %v1368_v55 = vadd.f32 %v3444_v54, %v1216_v26  ;;  %v2274_v26 = vunpack.c.l.bf16 %v2273_v32 }
 0x155   : > { %v2588_v37 = vpop.f32.mrf.mxu0  ;;  %v1215_v47 = vadd.f32 %v2536_v39, %v1054_v9  ;;  %v1220_v45 = vadd.f32 %v2541_v20, %v1059_v27  ;;  %v1507_v39 = vadd.f32 %v1476_v21, %v1365_v33  ;;  %v2309_v27 = vld [vmem:[%s3383_s13 + $0x10] sm:$0xff]  }
 0x156   : > { %v2612_v19 = vpop.f32.mrf.mxu1  ;;  %v1513_v17 = vadd.f32 %v2588_v37, %v1371_v44  ;;  %v2310_v37 = vld [vmem:[%s3383_s13 + $0x18] sm:$0xff]   ;;  %v3446_v0 = vld [vmem:[#allocation6_spill] sm:$0xff]  ;;  %v1510_v52 = vadd.f32 %v2585_v1, %v1368_v55  ;;  %v1366_v1 = vadd.f32 %v3448_v8, %v1214_v4 }
 0x157   : > { %v1492_v35 = vpop.f32.mrf.mxu0  ;;  %v1367_v46 = vadd.f32 %v2560_v56, %v1215_v47  ;;  %v1372_v62 = vadd.f32 %v2565_v15, %v1220_v45  ;;  %v2286_v18 = vunpack.c.l.bf16 %v2310_v37  ;;  %v2287_v13 = vunpack.c.h.bf16 %v2310_v37 }
 0x158   : > { %v1647_v24 = vpop.f32.mrf.mxu1  ;;  %v1511_v56 = vadd.f32 %v1492_v35, %v1369_v34  ;;  %v1668_v49 = vadd.f32 %v2612_v19, %v1513_v17  ;;  %v3447_v9 = vld [vmem:[#allocation7_spill] sm:$0xff]  ;;  %v1508_v35 = vadd.f32 %v3369_v2, %v1366_v1  ;;  %v2279_v45 = vunpack.c.h.bf16 %v2308_v29 }
 0x159   : > { %v2589_v50 = vpop.f32.mrf.mxu0  ;;  %v1509_v43 = vadd.f32 %v2584_v63, %v1367_v46  ;;  %v2278_v63 = vunpack.c.l.bf16 %v2308_v29  ;;  %v1662_v51 = vadd.f32 %v3447_v9, %v1507_v39  ;;  %v2283_v2 = vunpack.c.h.bf16 %v2309_v27 }
 0x15a   : > { %v2613_v48 = vpop.f32.mrf.mxu1  ;;  %v1514_v5 = vadd.f32 %v2589_v50, %v1372_v62  ;;  %v1666_v19 = vadd.f32 %v1647_v24, %v1511_v56  ;;  %v3450_v31 = vld [vmem:[#allocation8_spill] sm:$0xff]  ;;  %v1663_v60 = vadd.f32 %v3371_v61, %v1508_v35 }
 0x15b   : > { %v1495_v59 = vpop.f32.mrf.mxu0  ;;  %v1664_v20 = vadd.f32 %v3446_v0, %v1509_v43  ;;  %v1665_v25 = vadd.f32 %v3450_v31, %v1510_v52  ;;  %v2275_v43 = vunpack.c.h.bf16 %v2273_v32 }
 0x15c   : > { %v1650_v58 = vpop.f32.mrf.mxu1  ;;  %v1669_v7 = vadd.f32 %v2613_v48, %v1514_v5  ;;  %v1512_v42 = vadd.f32 %v1495_v59, %v1370_v28  ;;  %v2282_v48 = vunpack.c.l.bf16 %v2309_v27 }
 0x15e   : > { %v1667_v53 = vadd.f32 %v1650_v58, %v1512_v42 }
 0x16d   : > { %v2632_v15 = vpop.f32.mrf.mxu0 }
 0x16e   : > { %v2636_v6 = vpop.f32.mrf.mxu1  ;;  %v1810_v14 = vadd.f32 %v2632_v15, %v1664_v20 }
 0x16f   : > { %v1814_v21 = vadd.f32 %v2636_v6, %v1668_v49  ;;  %v1777_v36 = vpop.f32.mrf.mxu0 }
 0x170   : > { %v1793_v12 = vpop.f32.mrf.mxu1  ;;  %v1825_v41 = vadd.f32 %v3395_v10, %v1810_v14  ;;  %v1808_v47 = vadd.f32 %v1777_v36, %v1662_v51 }
 0x171   : > { %v1829_v40 = vadd.f32 %v3395_v10, %v1814_v21  ;;  %v1812_v30 = vadd.f32 %v1793_v12, %v1666_v19  ;;  %v2633_v38 = vpop.f32.mrf.mxu0 }
 0x172   : > { %v2637_v24 = vpop.f32.mrf.mxu1  ;;  %v1849_v16 = vadd.f32 %v2278_v63, %v1825_v41  ;;  %v1811_v44 = vadd.f32 %v2633_v38, %v1665_v25  ;;  %v1823_v46 = vadd.f32 %v3395_v10, %v1808_v47 }
 0x173   : > { %v1853_v57 = vadd.f32 %v2286_v18, %v1829_v40  ;;  %v1815_v22 = vadd.f32 %v2637_v24, %v1669_v7  ;;  %v1827_v50 = vadd.f32 %v3395_v10, %v1812_v30  ;;  %v1780_v34 = vpop.f32.mrf.mxu0 }
 0x174   : > { %v1826_v33 = vadd.f32 %v3395_v10, %v1811_v44  ;;  %v1796_v55 = vpop.f32.mrf.mxu1  ;;  %vm1857_vm6 = vcmp.ge.f32.partialorder %v1849_v16, 0.0  ;;  %v1865_v39 = vmul.f32 0.2, %v1849_v16  ;;  %v1847_v29 = vadd.f32 %v2274_v26, %v1823_v46 }
 0x175   : > { %v1830_v17 = vadd.f32 %v3395_v10, %v1815_v22  ;;  %v1869_v62 = vmul.f32 0.2, %v1853_v57  ;;  %vm1861_vm7 = vcmp.ge.f32.partialorder %v1853_v57, 0.0  ;;  %v1809_v3 = vadd.f32 %v1780_v34, %v1663_v60 }
 0x176   : > { %v1850_v56 = vadd.f32 %v2279_v45, %v1826_v33  ;;  %v1851_v4 = vadd.f32 %v2282_v48, %v1827_v50  ;;  %v1813_v49 = vadd.f32 %v1796_v55, %v1667_v53  ;;  %v1873_v59 = vsel %vm1857_vm6, %v1849_v16, %v1865_v39 }
 0x177   : > { %v1854_v54 = vadd.f32 %v2287_v13, %v1830_v17  ;;  %v1877_v61 = vsel %vm1861_vm7, %v1853_v57, %v1869_v62  ;;  %v1824_v5 = vadd.f32 %v3395_v10, %v1809_v3  ;;  %v1863_v6 = vmul.f32 0.2, %v1847_v29 }
 0x178   : > { %vm1858_vm9 = vcmp.ge.f32.partialorder %v1850_v56, 0.0  ;;  %v1866_v23 = vmul.f32 0.2, %v1850_v56  ;;  %v1828_v52 = vadd.f32 %v3395_v10, %v1813_v49  ;;  %vm1855_vm10 = vcmp.ge.f32.partialorder %v1847_v29, 0.0 }
 0x179   : > { %vm1862_vm8 = vcmp.ge.f32.partialorder %v1854_v54, 0.0  ;;  %v1870_v37 = vmul.f32 0.2, %v1854_v54  ;;  %v1848_v63 = vadd.f32 %v2275_v43, %v1824_v5  ;;  %v1867_v21 = vmul.f32 0.2, %v1851_v4 }
 0x17a   : > { %v1874_v0 = vsel %vm1858_vm9, %v1850_v56, %v1866_v23  ;;  %v1852_v18 = vadd.f32 %v2283_v2, %v1828_v52  ;;  %vm1859_vm11 = vcmp.ge.f32.partialorder %v1851_v4, 0.0  ;;  %v1871_v19 = vsel %vm1855_vm10, %v1847_v29, %v1863_v6 }
 0x17b   : > { %v1878_v58 = vsel %vm1862_vm8, %v1854_v54, %v1870_v37  ;;  %v2296_v15 = vpack.c.bf16 %v1874_v0, %v1873_v59  ;;  %vm1856_vm12 = vcmp.ge.f32.partialorder %v1848_v63, 0.0  ;;  %v1864_v9 = vmul.f32 0.2, %v1848_v63 }
 0x17c   : > { %v2306_v20 = vpack.c.bf16 %v1878_v58, %v1877_v61  ;;  %vm1860_vm13 = vcmp.ge.f32.partialorder %v1852_v18, 0.0  ;;  %v1868_v51 = vmul.f32 0.2, %v1852_v18  ;;  %v1875_v12 = vsel %vm1859_vm11, %v1851_v4, %v1867_v21 }
 0x17d   : > { %2311 = vst [vmem:[%s279_s23 + $0x8] sm:$0xff] %v2296_v15   ;;  %v1872_v14 = vsel %vm1856_vm12, %v1848_v63, %v1864_v9 }
 0x17e   : > { %2313 = vst [vmem:[%s279_s23 + $0x18] sm:$0xff] %v2306_v20   ;;  %v2291_v13 = vpack.c.bf16 %v1872_v14, %v1871_v19  ;;  %v1876_v8 = vsel %vm1860_vm13, %v1852_v18, %v1868_v51 }
 0x17f   : > { %v2301_v1 = vpack.c.bf16 %v1876_v8, %v1875_v12 }
 0x180   : > { %2292 = vst [vmem:[%s279_s23] sm:$0xff] %v2291_v13  }
 0x181   : > { %2312 = vst [vmem:[%s279_s23 + $0x10] sm:$0xff] %v2301_v1  }
 0x182 PF: > { %s14_s17 = sadd.s32 1, %s2782_s17   ;;  %s3451_s15 = smov %s2778_s16 }
 0x183   : > { %p11_p5 = scmp.ge.s32.totalorder %s14_s17, 4   ;;  %s3452_s16 = smov %s3454_s18 }
 0x185   :  { %13 = sbr.rel (!%p11_p5) target bundleno = 2 (0x2), region = 83 }

// kernel: loc_match_discriminator.13
= control target key start
LH: loop header
LB: loop body
LE: loop exit
PB: predicated region body
PF: predicated region fallthrough
CT: control target
= control target key end

     0   :  { %v306_v0 = vmov 0.0   ;;  %vm307_vm0 = vmmov 0   ;;  %vm135_vm1 = vcmask 523264   ;;  %vm210_vm2 = vcmask 1041408   ;;  %s456_s4 = inlined_call_operand.vmem [shape: f32[64,128], index: 4, kind: input, shape index: {}]   ;;  %s457_s1 = inlined_call_operand.vmem [shape: f32[128,1], index: 1, kind: input, shape index: {}]   ;;  %s458_s3 = inlined_call_operand.vmem [shape: f32[2,64], index: 3, kind: input, shape index: {}]   ;;  %s459_s0 = inlined_call_operand.vmem [shape: f32[2,128], index: 0, kind: input, shape index: {}]   ;;  %s460_s2 = inlined_call_operand.<no memory space> [shape: f32[1,1], index: 2, kind: input, shape index: {}]   ;;  %s461_s5 = inlined_call_operand.vmem [shape: f32[1,128], index: 5, kind: input, shape index: {}]   ;;  %s462_s6 = inlined_call_operand.vmem [shape: f32[2,1], index: 6, kind: output, shape index: {}]  }
   0x1   :  { %285 = vmatprep.subr.mxu1 %v306_v0  ;;  %v127_v1 = vld [vmem:[%s456_s4 + $0x38] sm:$0xff]  ;;  %v126_v2 = vld [vmem:[%s456_s4 + $0x30] sm:$0xff]  ;;  %301 = vmatprep.mubr.msk.f32.mxu1 %vm307_vm0, %v306_v0  ;;  %v125_v3 = vld [vmem:[%s456_s4 + $0x28] sm:$0xff]  ;;  %v11_v27 = vstv %s460_s2  ;;  %vm215_vm3 = vcmask 1024  }
   0x2   :  { %286 = vmatpush3.msra.mxu1 %v127_v1  ;;  %250 = vmatprep.subr.mxu0 %v306_v0  ;;  %v41_v4 = vld [vmem:[%s457_s1 + $0x78] sm:$0xff]  ;;  %v40_v5 = vld [vmem:[%s457_s1 + $0x70] sm:$0xff]  ;;  %v124_v6 = vld [vmem:[%s456_s4 + $0x20] sm:$0xff]  ;;  %12 = vst [vmem:[#allocation2] sm:$0x1] %v11_v27 }
   0x3   :  { %287 = vmatprep.subr.mxu1 %v306_v0  ;;  %282 = vmatprep.mubr.msk.f32.mxu0 %vm307_vm0, %v306_v0  ;;  %v39_v7 = vld [vmem:[%s457_s1 + $0x68] sm:$0xff]  ;;  %v123_v8 = vld [vmem:[%s456_s4 + $0x18] sm:$0xff]  ;;  %v38_v9 = vld [vmem:[%s457_s1 + $0x60] sm:$0xff] }
   0x4   :  { %288 = vmatpush3.msra.mxu1 %v126_v2  ;;  %251 = vmatpush3.msra.mxu0 %v41_v4  ;;  %v122_v10 = vld [vmem:[%s456_s4 + $0x10] sm:$0xff]  ;;  %v37_v11 = vld [vmem:[%s457_s1 + $0x58] sm:$0xff]  ;;  %v121_v12 = vld [vmem:[%s456_s4 + $0x8] sm:$0xff] }
   0x5   :  { %289 = vmatprep.subr.mxu1 %v306_v0  ;;  %252 = vmatprep.subr.mxu0 %v306_v0  ;;  %v36_v13 = vld [vmem:[%s457_s1 + $0x50] sm:$0xff]  ;;  %v120_v14 = vld [vmem:[%s456_s4] sm:$0xff]  ;;  %v35_v16 = vld [vmem:[%s457_s1 + $0x48] sm:$0xff] }
   0x6   :  { %290 = vmatpush3.msra.mxu1 %v125_v3  ;;  %253 = vmatpush3.msra.mxu0 %v40_v5  ;;  %v119_v15 = vld [vmem:[%s458_s3] sm:$0x3]  ;;  %v33_v18 = vld [vmem:[%s457_s1 + $0x38] sm:$0xff]  ;;  %v32_v19 = vld [vmem:[%s457_s1 + $0x30] sm:$0xff] }
   0x7   :  { %291 = vmatprep.subr.mxu1 %v306_v0  ;;  %254 = vmatprep.subr.mxu0 %v306_v0  ;;  %v34_v17 = vld [vmem:[%s457_s1 + $0x40] sm:$0xff]  ;;  %v31_v20 = vld [vmem:[%s457_s1 + $0x28] sm:$0xff]  ;;  %v29_v22 = vld [vmem:[%s457_s1 + $0x18] sm:$0xff] }
   0x8   :  { %292 = vmatpush3.msra.mxu1 %v124_v6  ;;  %255 = vmatpush3.msra.mxu0 %v39_v7  ;;  %v30_v21 = vld [vmem:[%s457_s1 + $0x20] sm:$0xff]  ;;  %v28_v23 = vld [vmem:[%s457_s1 + $0x10] sm:$0xff]  ;;  %v27_v24 = vld [vmem:[%s457_s1 + $0x8] sm:$0xff] }
   0x9   :  { %293 = vmatprep.subr.mxu1 %v306_v0  ;;  %256 = vmatprep.subr.mxu0 %v306_v0  ;;  %v26_v25 = vld [vmem:[%s457_s1] sm:$0xff] }
   0xa   :  { %294 = vmatpush3.msra.mxu1 %v123_v8  ;;  %257 = vmatpush3.msra.mxu0 %v38_v9  ;;  %v25_v26 = vld [vmem:[%s459_s0] sm:$0x3] }
   0xb   :  { %295 = vmatprep.subr.mxu1 %v306_v0  ;;  %258 = vmatprep.subr.mxu0 %v306_v0  ;;  %v222_v28 = vld [vmem:[%s461_s5] ss:$0 sm:$0xff] }
   0xc   :  { %296 = vmatpush3.msra.mxu1 %v122_v10  ;;  %259 = vmatpush3.msra.mxu0 %v37_v11  ;;  %v221_v36 = vld [vmem:[#allocation2] ss:$0 sm:$0xff] }
   0xd   :  { %297 = vmatprep.subr.mxu1 %v306_v0  ;;  %260 = vmatprep.subr.mxu0 %v306_v0 }
   0xe   :  { %298 = vmatpush3.msra.mxu1 %v121_v12  ;;  %261 = vmatpush3.msra.mxu0 %v36_v13 }
   0xf   :  { %299 = vmatprep.subr.mxu1 %v306_v0  ;;  %262 = vmatprep.subr.mxu0 %v306_v0 }
  0x10   :  { %300 = vmatpush3.msra.mxu1 %v120_v14  ;;  %263 = vmatpush3.msra.mxu0 %v35_v16 }
  0x11   :  { %302 = vmatmul.mubr.msk.f32.vlgmr.msra.gmra.mxu1 %vm135_vm1, %v119_v15  ;;  %264 = vmatprep.subr.mxu0 %v306_v0 }
  0x12   :  { %265 = vmatpush3.msra.mxu0 %v34_v17 }
  0x13   :  { %266 = vmatprep.subr.mxu0 %v306_v0 }
  0x14   :  { %267 = vmatpush3.msra.mxu0 %v33_v18 }
  0x15   :  { %268 = vmatprep.subr.mxu0 %v306_v0 }
  0x16   :  { %269 = vmatpush3.msra.mxu0 %v32_v19 }
  0x17   :  { %270 = vmatprep.subr.mxu0 %v306_v0 }
  0x18   :  { %271 = vmatpush3.msra.mxu0 %v31_v20 }
  0x19   :  { %272 = vmatprep.subr.mxu0 %v306_v0 }
  0x1a   :  { %273 = vmatpush3.msra.mxu0 %v30_v21 }
  0x1b   :  { %274 = vmatprep.subr.mxu0 %v306_v0 }
  0x1c   :  { %275 = vmatpush3.msra.mxu0 %v29_v22 }
  0x1d   :  { %276 = vmatprep.subr.mxu0 %v306_v0 }
  0x1e   :  { %277 = vmatpush3.msra.mxu0 %v28_v23 }
  0x1f   :  { %278 = vmatprep.subr.mxu0 %v306_v0 }
  0x20   :  { %279 = vmatpush3.msra.mxu0 %v27_v24 }
  0x21   :  { %280 = vmatprep.subr.mxu0 %v306_v0 }
  0x22   :  { %281 = vmatpush3.msra.mxu0 %v26_v25 }
  0x23   :  { %283 = vmatmul.mubr.f32.vlgmr.msra.gmra.mxu0 %v25_v26 }
  0xd1   :  { %v205_v29 = vpop.f32.mrf.mxu1 }
  0xd2   :  { %v206_v30 = vadd.f32 %v222_v28, %v205_v29 }
  0xd3   :  { %v303_v31 = vpop.f32.mrf.mxu1 }
  0xd4   :  { %v209_v32 = vmul.f32 %v206_v30, %v25_v26 }
  0xd6   :  { %v211_v33 = vsel %vm210_vm2, %v209_v32, 0.0 }
  0xd7   :  { %212 = vadd.xlane.f32.xlu0 %v211_v33 }
  0xe3   :  { %v115_v34 = vpop.f32.mrf.mxu0 }
  0xe4   :  { %v116_v37 = vadd.f32 %v221_v36, %v115_v34 }
  0xe5   :  { %v284_v35 = vpop.f32.mrf.mxu0 }
 0x160   :  { %v213_v38 = vpop.xlane.xlu0 %212 }
 0x161   :  { %v214_v39 = vadd.f32 %v213_v38, %v116_v37 }
 0x163   :  { %216 = vst.msk [vmem:[%s462_s6] sm:$0x3] %vm215_vm3, %v214_v39 }

// kernel: loc_match_discriminator.12
= control target key start
LH: loop header
LB: loop body
LE: loop exit
PB: predicated region body
PF: predicated region fallthrough
CT: control target
= control target key end

     0   :  { %s2756_s12 = smov 0   ;;  %s2758_s13 = smov 0   ;;  %s3344_s0 = inlined_call_operand.vmem [shape: bf16[2,5,5,512], index: 0, kind: input, shape index: {}]   ;;  %s3345_s1 = inlined_call_operand.vmem [shape: bf16[4,512,128], index: 1, kind: input, shape index: {}]   ;;  %s3346_s2 = inlined_call_operand.vmem [shape: f32[1,128], index: 2, kind: input, shape index: {}]   ;;  %s3347_s3 = inlined_call_operand.vmem [shape: f32[2,1,128], index: 3, kind: output, shape index: {}]  }
   0x1   :  { %s2760_s14 = smov 0  }
   0x2 LB: > { %s25_s15 = sadd.s32 1, %s2729_s13  ;;  %p2038_p0 = scmp.ge.s32.totalorder %s2733_s14, 1  ;;  %s2733_s14 = sphi %s2760_s14, %s13_s14   ;;  %s2729_s13 = sphi %s2758_s13, %s3353_s13   ;;  %s2725_s12 = sphi %s2756_s12, %s3352_s12  }
   0x3   : > { %p27_p1 = scmp.ge.s32.totalorder %s25_s15, 2  ;;  %p168_p2 = scmp.lt.s32.totalorder %s2733_s14, 3 }
   0x5   : > { %s3355_s15 = smov (%p27_p1, %s25_s15), 0  ;;  %p169_p3 = pnand %p2038_p0, %p168_p2 }
   0x6   : > { %p200_p4 = scmp.lt.s32.totalorder (!%p169_p3), %s2725_s12, 1 }
   0x7   : > { %172 = sbr.rel (%p169_p3) target bundleno = 375 (0x177), region = 32 }
   0xc   : > { %v2583_v0 = vld [vmem:[%s3345_s1 + $0x178] sm:$0xff]   ;;  %v2587_v4 = vld [vmem:[%s3345_s1 + $0x170] sm:$0xff]   ;;  %v2591_v8 = vld [vmem:[%s3345_s1 + $0x168] sm:$0xff]   ;;  %s3357_s12 = smov (!%p200_p4, %s2725_s12), 1  ;;  %vm365_vm0 = vsmask.f32 1280  ;;  %v500_v56 = vlaneseq }
   0xd   : > { %v2584_v1 = vld [vmem:[%s3345_s1 + $0x1f8] sm:$0xff]   ;;  %2381 = vmatprep.subr.bf16.mxu0 %v2583_v0  ;;  %v2588_v5 = vld [vmem:[%s3345_s1 + $0x1f0] sm:$0xff]   ;;  %v2592_v9 = vld [vmem:[%s3345_s1 + $0x1e8] sm:$0xff]   ;;  %s2557_s22 = smul.u32 80, %s3357_s12  ;;  %vm366_vm1 = vsmask.f32 3336  ;;  %s217_s4 = scalar_lea.vmem %s3347_s3, %s3357_s12 }
   0xe   : > { %v2585_v2 = vld [vmem:[%s3345_s1 + $0x138] sm:$0xff]   ;;  %2403 = vmatprep.subr.bf16.mxu1 %v2584_v1  ;;  %v2589_v6 = vld [vmem:[%s3345_s1 + $0x130] sm:$0xff]   ;;  %v2593_v10 = vld [vmem:[%s3345_s1 + $0x128] sm:$0xff]   ;;  %vm368_vm2 = vsmask.f32 5392 }
   0xf   : > { %v2586_v3 = vld [vmem:[%s3345_s1 + $0x1b8] sm:$0xff]   ;;  %2382 = vmatpush3.bf16.msra.mxu0 %v2585_v2  ;;  %v2590_v7 = vld [vmem:[%s3345_s1 + $0x1b0] sm:$0xff]   ;;  %v2594_v11 = vld [vmem:[%s3345_s1 + $0x1a8] sm:$0xff]   ;;  %s2874_s6 = scalar_lea.vmem %s3344_s0, %s2557_s22  ;;  %vm370_vm3 = vsmask.f32 7448 }
  0x10   : > { %2404 = vmatpush3.bf16.msra.mxu1 %v2586_v3  ;;  %2383 = vmatprep.subr.bf16.mxu0 %v2587_v4  ;;  %v2595_v12 = vld [vmem:[%s3345_s1 + $0x160] sm:$0xff]   ;;  %v2599_v16 = vld [vmem:[%s3345_s1 + $0x158] sm:$0xff]   ;;  %v2603_v20 = vld [vmem:[%s3345_s1 + $0x150] sm:$0xff]  }
  0x11   : > { %2405 = vmatprep.subr.bf16.mxu1 %v2588_v5  ;;  %v2596_v13 = vld [vmem:[%s3345_s1 + $0x1e0] sm:$0xff]   ;;  %v2600_v17 = vld [vmem:[%s3345_s1 + $0x1d8] sm:$0xff]   ;;  %v2604_v21 = vld [vmem:[%s3345_s1 + $0x1d0] sm:$0xff]  }
  0x12   : > { %v2597_v14 = vld [vmem:[%s3345_s1 + $0x120] sm:$0xff]   ;;  %v2601_v18 = vld [vmem:[%s3345_s1 + $0x118] sm:$0xff]   ;;  %v2605_v22 = vld [vmem:[%s3345_s1 + $0x110] sm:$0xff]  }
  0x13   : > { %2384 = vmatpush3.bf16.msra.mxu0 %v2589_v6  ;;  %v2598_v15 = vld [vmem:[%s3345_s1 + $0x1a0] sm:$0xff]   ;;  %v2602_v19 = vld [vmem:[%s3345_s1 + $0x198] sm:$0xff]   ;;  %v2606_v23 = vld [vmem:[%s3345_s1 + $0x190] sm:$0xff]  }
  0x14   : > { %2406 = vmatpush3.bf16.msra.mxu1 %v2590_v7  ;;  %2385 = vmatprep.subr.bf16.mxu0 %v2591_v8  ;;  %v2607_v24 = vld [vmem:[%s3345_s1 + $0x148] sm:$0xff]   ;;  %v2611_v28 = vld [vmem:[%s3345_s1 + $0x140] sm:$0xff]   ;;  %v2889_v34 = vld.sshfl [vmem:[%s2874_s6 + $0x10] sm:$0x5f pattern:$0x76325410] }
  0x15   : > { %2407 = vmatprep.subr.bf16.mxu1 %v2592_v9  ;;  %v2608_v25 = vld [vmem:[%s3345_s1 + $0x1c8] sm:$0xff]   ;;  %v2612_v29 = vld [vmem:[%s3345_s1 + $0x1c0] sm:$0xff]   ;;  %v2896_v37 = vld.sshfl [vmem:[%s2874_s6 + $0x18] sm:$0x5f pattern:$0x76325410] }
  0x16   : > { %v2609_v26 = vld [vmem:[%s3345_s1 + $0x108] sm:$0xff]   ;;  %v2613_v30 = vld [vmem:[%s3345_s1 + $0x100] sm:$0xff]   ;;  %v266_v39 = vcombine.low %v2889_v34, %v2896_v37  ;;  %vm367_vm4 = vmor %vm365_vm0, %vm366_vm1  ;;  %v362_v43 = vcombine.high %v2889_v34, %v2896_v37 }
  0x17   : > { %2386 = vmatpush3.bf16.msra.mxu0 %v2593_v10  ;;  %v2610_v27 = vld [vmem:[%s3345_s1 + $0x188] sm:$0xff]   ;;  %v2614_v31 = vld [vmem:[%s3345_s1 + $0x180] sm:$0xff]   ;;  %v2615_v45 = vld [vmem:[%s3345_s1 + $0x78] sm:$0xff]  }
  0x18   : > { %2408 = vmatpush3.bf16.msra.mxu1 %v2594_v11  ;;  %2387 = vmatprep.subr.bf16.mxu0 %v2595_v12  ;;  %v2883_v32 = vld.sshfl [vmem:[%s2874_s6] sm:$0x5f pattern:$0x76325410]  ;;  %vm2924_vm5 = vmor %vm367_vm4, %vm368_vm2  ;;  %v387_v55 = vshrl.u32 %v266_v39, 16  ;;  %v390_v61 = vshll.u32 %v266_v39, 16 }
  0x19   : > { %2409 = vmatprep.subr.bf16.mxu1 %v2596_v13  ;;  %v2886_v33 = vld.sshfl [vmem:[%s2874_s6 + $0x8] sm:$0x5f pattern:$0x76325410]  ;;  %v2616_v62 = vld [vmem:[%s3345_s1 + $0xf8] sm:$0xff]   ;;  %v396_v0 = vshll.u32 %v362_v43, 16  ;;  %vm2940_vm6 = vmor %vm2924_vm5, %vm370_vm3 }
  0x1a   : > { %v251_v35 = vcombine.low %v2883_v32, %v2886_v33  ;;  %v361_v36 = vcombine.high %v2883_v32, %v2886_v33  ;;  %v2899_v38 = vld.sshfl [vmem:[%s2874_s6 + $0x20] sm:$0x5f pattern:$0x76325410]  ;;  %v389_v63 = vrot.slane %v387_v55, 6  ;;  %v392_v4 = vrot.slane %v390_v61, 7 }
  0x1b   : > { %2388 = vmatpush3.bf16.msra.mxu0 %v2597_v14  ;;  %v2904_v42 = vld.sshfl [vmem:[%s2874_s6 + $0x28] sm:$0x5f pattern:$0x76325410]  ;;  %v2246_v46 = vcombine.low %v2889_v34, %v2899_v38  ;;  %v398_v12 = vrot.slane %v396_v0, 7  ;;  %v2617_v55 = vld [vmem:[%s3345_s1 + $0x38] sm:$0xff]  }
  0x1c   : > { %2410 = vmatpush3.bf16.msra.mxu1 %v2598_v15  ;;  %2389 = vmatprep.subr.bf16.mxu0 %v2599_v16  ;;  %v373_v40 = vshrl.u32 %v251_v35, 16  ;;  %v376_v41 = vshll.u32 %v251_v35, 16  ;;  %v382_v44 = vshll.u32 %v361_v36, 16  ;;  %v281_v48 = vcombine.low %v2899_v38, %v2904_v42  ;;  %v2619_v0 = vld [vmem:[%s3345_s1 + $0x70] sm:$0xff]  }
  0x1d   : > { %2411 = vmatprep.subr.bf16.mxu1 %v2600_v17  ;;  %v2914_v47 = vld.sshfl [vmem:[%s2874_s6 + $0x30] sm:$0x5f pattern:$0x76325410]  ;;  %v363_v49 = vcombine.high %v2899_v38, %v2904_v42  ;;  %v2247_v57 = vcombine.low %v2896_v37, %v2904_v42  ;;  %v393_v11 = vor.u32 %v392_v4, %v389_v63 }
  0x1e   : > { %v375_v50 = vrot.slane %v373_v40, 6  ;;  %v378_v51 = vrot.slane %v376_v41, 7  ;;  %v2921_v52 = vld.sshfl [vmem:[%s2874_s6 + $0x38] sm:$0x5f pattern:$0x76325410] }
  0x1f   : > { %2390 = vmatpush3.bf16.msra.mxu0 %v2601_v18  ;;  %v384_v54 = vrot.slane %v382_v44, 7  ;;  %v296_v58 = vcombine.low %v2914_v47, %v2921_v52  ;;  %v364_v59 = vcombine.high %v2914_v47, %v2921_v52  ;;  %v401_v1 = vshrl.u32 %v281_v48, 16 }
  0x20   : > { %2412 = vmatpush3.bf16.msra.mxu1 %v2602_v19  ;;  %2391 = vmatprep.subr.bf16.mxu0 %v2603_v20  ;;  %v379_v60 = vor.u32 %v378_v51, %v375_v50  ;;  %v404_v2 = vshll.u32 %v281_v48, 16  ;;  %v410_v5 = vshll.u32 %v363_v49, 16  ;;  %v394_v19 = vrot.slane %v393_v11, 2  ;;  %v2627_v11 = vld [vmem:[%s3345_s1 + $0x60] sm:$0xff]  }
  0x21   : > { %2413 = vmatprep.subr.bf16.mxu1 %v2604_v21  ;;  %v415_v6 = vshrl.u32 %v296_v58, 16  ;;  %v403_v8 = vrot.slane %v401_v1, 6  ;;  %v418_v10 = vshll.u32 %v296_v58, 16  ;;  %v424_v17 = vshll.u32 %v364_v59, 16  ;;  %v2618_v59 = vld [vmem:[%s3345_s1 + $0xb8] sm:$0xff]   ;;  %v2620_v1 = vld [vmem:[%s3345_s1 + $0xf0] sm:$0xff]  }
  0x22   : > { %v380_v3 = vrot.slane %v379_v60, 2  ;;  %v406_v9 = vrot.slane %v404_v2, 7  ;;  %v412_v13 = vrot.slane %v410_v5, 7  ;;  %v2735_v20 = vmov 1983009808   ;;  %v2621_v2 = vld [vmem:[%s3345_s1 + $0x30] sm:$0xff]  }
  0x23   : > { %2392 = vmatpush3.bf16.msra.mxu0 %v2605_v22  ;;  %v417_v14 = vrot.slane %v415_v6, 6  ;;  %v420_v16 = vrot.slane %v418_v10, 7  ;;  %v498_v21 = vunpack.c.l.s4 %v2735_v20  ;;  %v501_v22 = vshrl.u32 %v500_v56, 7  ;;  %v2622_v5 = vld [vmem:[%s3345_s1 + $0xb0] sm:$0xff]   ;;  %v2623_v6 = vld [vmem:[%s3345_s1 + $0x68] sm:$0xff]  }
  0x24   : > { %2414 = vmatpush3.bf16.msra.mxu1 %v2606_v23  ;;  %2393 = vmatprep.subr.bf16.mxu0 %v2607_v24  ;;  %v407_v15 = vor.u32 %v406_v9, %v403_v8  ;;  %v385_v18 = vsel %vm2940_vm6, %v380_v3, %v384_v54  ;;  %v2147_v40 = vcombine.low %v2904_v42, %v2921_v52  ;;  %v2624_v8 = vld [vmem:[%s3345_s1 + $0xe8] sm:$0xff]   ;;  %v2636_v20 = vld [vmem:[%s3345_s1 + $0xd0] sm:$0xff]  }
  0x25   : > { %2415 = vmatprep.subr.bf16.mxu1 %v2608_v25  ;;  %v421_v24 = vor.u32 %v420_v16, %v417_v14  ;;  %v426_v25 = vrot.slane %v424_v17, 7  ;;  %v2625_v9 = vld [vmem:[%s3345_s1 + $0x28] sm:$0xff]   ;;  %v2630_v14 = vld [vmem:[%s3345_s1 + $0xa0] sm:$0xff]   ;;  %v2632_v16 = vld [vmem:[%s3345_s1 + $0xd8] sm:$0xff]  }
  0x26   : > { %v408_v23 = vrot.slane %v407_v15, 2  ;;  %v2626_v10 = vld [vmem:[%s3345_s1 + $0xa8] sm:$0xff]   ;;  %v2631_v15 = vld [vmem:[%s3345_s1 + $0x58] sm:$0xff]  }
  0x27   : > { %2394 = vmatpush3.bf16.msra.mxu0 %v2609_v26  ;;  %v2144_v26 = vcombine.low %v2883_v32, %v2889_v34  ;;  %v422_v35 = vrot.slane %v421_v24, 2  ;;  %v2633_v17 = vld [vmem:[%s3345_s1 + $0x18] sm:$0xff]   ;;  %v2640_v24 = vld [vmem:[%s3345_s1 + $0xc8] sm:$0xff]  }
  0x28   : > { %2416 = vmatpush3.bf16.msra.mxu1 %v2610_v27  ;;  %2395 = vmatprep.subr.bf16.mxu0 %v2611_v28  ;;  %v2950_v27 = vsel %vm2940_vm6, %v394_v19, %v398_v12  ;;  %v499_v28 = vunpack.c.0.s8 %v498_v21  ;;  %v2628_v12 = vld [vmem:[%s3345_s1 + $0xe0] sm:$0xff]   ;;  %v2635_v19 = vld [vmem:[%s3345_s1 + $0x50] sm:$0xff]   ;;  %v2674_v34 = vld [vmem:[%s3345_s1 + $0x288] sm:$0xff]  }
  0x29   : > { %2417 = vmatprep.subr.bf16.mxu1 %v2612_v29  ;;  %v2146_v29 = vcombine.low %v2899_v38, %v2914_v47  ;;  %v493_v36 = vcombine.low %v385_v18, %v2950_v27  ;;  %v494_v32 = vcombine.high %v385_v18, %v2950_v27  ;;  %v2972_v43 = vsel %vm2940_vm6, %v422_v35, %v426_v25  ;;  %v2634_v18 = vld [vmem:[%s3345_s1 + $0x98] sm:$0xff]   ;;  %v2637_v21 = vld [vmem:[%s3345_s1 + $0x10] sm:$0xff]   ;;  %v2641_v25 = vld [vmem:[%s3345_s1 + $0x8] sm:$0xff]  }
  0x2a   : > { %v2962_v39 = vsub.s32 %v499_v28, %v501_v22  ;;  %v2638_v22 = vld [vmem:[%s3345_s1 + $0x90] sm:$0xff]   ;;  %v2643_v28 = vld [vmem:[%s3345_s1 + $0x40] sm:$0xff]  }
  0x2b   : > { %2396 = vmatpush3.bf16.msra.mxu0 %v2613_v30  ;;  %v2145_v30 = vcombine.low %v2886_v33, %v2896_v37  ;;  %v2646_v35 = vld [vmem:[%s3345_s1 + $0x80] sm:$0xff]  }
  0x2c   : > { %2418 = vmatpush3.bf16.msra.mxu1 %v2614_v31  ;;  %2425 = vmatprep.subr.bf16.mxu0 %v2615_v45  ;;  %v2958_v31 = vsel %vm2940_vm6, %v408_v23, %v412_v13  ;;  %v503_v45 = vrot.slane %v493_v36, %v2962_v39  ;;  %v510_v49 = vrot.slane %v494_v32, %v2962_v39  ;;  %v2629_v13 = vld [vmem:[%s3345_s1 + $0x20] sm:$0xff]   ;;  %v2639_v23 = vld [vmem:[%s3345_s1 + $0x48] sm:$0xff]   ;;  %v2647_v36 = vld [vmem:[%s3345_s1 + $0x278] sm:$0xff]  }
  0x2d   : > { %2447 = vmatprep.subr.bf16.mxu1 %v2616_v62  ;;  %v1599_v41 = vcombine.low %v2950_v27, %v2958_v31  ;;  %v1600_v33 = vcombine.high %v2950_v27, %v2958_v31  ;;  %v495_v44 = vcombine.low %v2958_v31, %v2972_v43  ;;  %v496_v48 = vcombine.high %v2958_v31, %v2972_v43  ;;  %v2648_v32 = vld [vmem:[%s3345_s1 + $0x2f8] sm:$0xff]   ;;  %v2675_v37 = vld [vmem:[%s3345_s1 + $0x240] sm:$0xff]   ;;  %v2686_v27 = vld [vmem:[%s3345_s1 + $0x3b0] sm:$0xff]  }
  0x2e   : > { %v2981_v50 = vrot.slane %v2144_v26, %v2962_v39  ;;  %v2984_v51 = vrot.slane %v2146_v29, %v2962_v39  ;;  %v2992_v56 = vrot.slane %v2145_v30, %v2962_v39  ;;  %v2995_v58 = vrot.slane %v2147_v40, %v2962_v39  ;;  %v2642_v26 = vld [vmem:[%s3345_s1 + $0x88] sm:$0xff]   ;;  %v2644_v29 = vld [vmem:[%s3345_s1 + $0xc0] sm:$0xff]   ;;  %v2649_v40 = vld [vmem:[%s3345_s1 + $0x238] sm:$0xff]  }
  0x2f   : > { %v517_v53 = vrot.slane %v495_v44, %v2962_v39  ;;  %v524_v54 = vrot.slane %v496_v48, %v2962_v39  ;;  %v2645_v30 = vld [vmem:[%s3345_s1] sm:$0xff]   ;;  %v2650_v48 = vld [vmem:[%s3345_s1 + $0x2b8] sm:$0xff]   ;;  %v3231_v7 = vrot.slane %v1600_v33, %v2962_v39  ;;  %v2687_v31 = vld [vmem:[%s3345_s1 + $0x368] sm:$0xff]  }
  0x30   : > { %v840_v3 = vcombine.high %v2981_v50, %v2984_v51  ;;  %v842_v4 = vcombine.high %v2992_v56, %v2995_v58  ;;  %v839_v44 = vcombine.low %v2981_v50, %v2984_v51  ;;  %v2653_v50 = vld [vmem:[%s3345_s1 + $0x230] sm:$0xff]  }
  0x31   : > { %v526_v60 = vcombine.high %v503_v45, %v517_v53  ;;  %v528_v61 = vcombine.high %v510_v49, %v524_v54  ;;  %v525_v62 = vcombine.low %v503_v45, %v517_v53  ;;  %v527_v63 = vcombine.low %v510_v49, %v524_v54  ;;  %v2651_v49 = vld [vmem:[%s3345_s1 + $0x270] sm:$0xff]   ;;  %v2655_v54 = vld [vmem:[%s3345_s1 + $0x268] sm:$0xff]  }
  0x32   : > { %v841_v45 = vcombine.low %v2992_v56, %v2995_v58  ;;  %v2652_v53 = vld [vmem:[%s3345_s1 + $0x2f0] sm:$0xff]   ;;  %v2657_v56 = vld [vmem:[%s3345_s1 + $0x228] sm:$0xff]  }
  0x33   : > { %757 = vmatprep.mubr.bf16.mxu0 %v526_v60  ;;  %798 = vmatprep.mubr.bf16.mxu1 %v528_v61  ;;  %v2654_v51 = vld [vmem:[%s3345_s1 + $0x2b0] sm:$0xff]   ;;  %v2658_v58 = vld [vmem:[%s3345_s1 + $0x2a8] sm:$0xff]   ;;  %v2660_v60 = vld [vmem:[%s3345_s1 + $0x2e0] sm:$0xff]  }
  0x34   : > { %758 = vmatmul.mubr.bf16.vlgmr.msra.gmra.mxu0 %v525_v62  ;;  %799 = vmatmul.mubr.bf16.vlgmr.msra.gmra.mxu1 %v527_v63  ;;  %v2661_v61 = vld [vmem:[%s3345_s1 + $0x220] sm:$0xff]   ;;  %v2663_v63 = vld [vmem:[%s3345_s1 + $0x258] sm:$0xff]  }
  0x35   : > { %2426 = vmatpush3.bf16.msra.mxu0 %v2617_v55  ;;  %2448 = vmatpush3.bf16.msra.mxu1 %v2618_v59  ;;  %v2656_v55 = vld [vmem:[%s3345_s1 + $0x2e8] sm:$0xff]   ;;  %v2659_v59 = vld [vmem:[%s3345_s1 + $0x260] sm:$0xff]  }
  0x36   : > { %2427 = vmatprep.subr.bf16.mxu0 %v2619_v0  ;;  %2449 = vmatprep.subr.bf16.mxu1 %v2620_v1  ;;  %v2662_v62 = vld [vmem:[%s3345_s1 + $0x2a0] sm:$0xff]   ;;  %v2664_v0 = vld [vmem:[%s3345_s1 + $0x2d8] sm:$0xff]  }
  0x37   : > { %1071 = vmatprep.mubr.bf16.mxu0 %v840_v3  ;;  %1112 = vmatprep.mubr.bf16.mxu1 %v842_v4  ;;  %v2665_v1 = vld [vmem:[%s3345_s1 + $0x218] sm:$0xff]   ;;  %v2667_v3 = vld [vmem:[%s3345_s1 + $0x250] sm:$0xff]  }
  0x38   : > { %v2668_v4 = vld [vmem:[%s3345_s1 + $0x2d0] sm:$0xff]  }
  0x39   : > { %2428 = vmatpush3.bf16.msra.mxu0 %v2621_v2  ;;  %2450 = vmatpush3.bf16.msra.mxu1 %v2622_v5  ;;  %v2666_v2 = vld [vmem:[%s3345_s1 + $0x298] sm:$0xff]   ;;  %v2669_v5 = vld [vmem:[%s3345_s1 + $0x210] sm:$0xff]  }
  0x3a   : > { %2429 = vmatprep.subr.bf16.mxu0 %v2623_v6  ;;  %2451 = vmatprep.subr.bf16.mxu1 %v2624_v8  ;;  %v2670_v6 = vld [vmem:[%s3345_s1 + $0x290] sm:$0xff]   ;;  %v2180_v8 = vld.sshfl [vmem:[%s2874_s6 + $0x40] sm:$0x5f pattern:$0x76325410] }
  0x3d   : > { %2430 = vmatpush3.bf16.msra.mxu0 %v2625_v9  ;;  %2452 = vmatpush3.bf16.msra.mxu1 %v2626_v10  ;;  %v2671_v9 = vld [vmem:[%s3345_s1 + $0x248] sm:$0xff]  }
  0x3e   : > { %2431 = vmatprep.subr.bf16.mxu0 %v2627_v11  ;;  %2453 = vmatprep.subr.bf16.mxu1 %v2628_v12  ;;  %v2672_v10 = vld [vmem:[%s3345_s1 + $0x2c8] sm:$0xff]   ;;  %v2248_v11 = vcombine.low %v2914_v47, %v2180_v8  ;;  %v1213_v12 = vrot.slane %v2246_v46, %v2962_v39 }
  0x3f   : > { %v2673_v47 = vld [vmem:[%s3345_s1 + $0x208] sm:$0xff]  }
  0x40   : > { %v1227_v38 = vrot.slane %v2248_v11, %v2962_v39  ;;  %v2707_v11 = vld [vmem:[%s3345_s1 + $0x340] sm:$0xff]  }
  0x41   : > { %2432 = vmatpush3.bf16.msra.mxu0 %v2629_v13  ;;  %2454 = vmatpush3.bf16.msra.mxu1 %v2630_v14  ;;  %v2181_v13 = vld.sshfl [vmem:[%s2874_s6 + $0x48] sm:$0x5f pattern:$0x76325410]  ;;  %v1220_v14 = vrot.slane %v2247_v57, %v2962_v39 }
  0x42   : > { %2433 = vmatprep.subr.bf16.mxu0 %v2631_v15  ;;  %2455 = vmatprep.subr.bf16.mxu1 %v2632_v16  ;;  %v1137_v15 = vcombine.low %v2180_v8, %v2181_v13  ;;  %v2249_v16 = vcombine.low %v2921_v52, %v2181_v13 }
  0x44   : > { %v1234_v42 = vrot.slane %v2249_v16, %v2962_v39  ;;  %v1521_v46 = vshrl.u32 %v1137_v15, 16  ;;  %v1524_v57 = vshll.u32 %v1137_v15, 16 }
  0x45   : > { %2434 = vmatpush3.bf16.msra.mxu0 %v2633_v17  ;;  %2456 = vmatpush3.bf16.msra.mxu1 %v2634_v18  ;;  %v1519_v17 = vcombine.high %v2180_v8, %v2181_v13  ;;  %v2676_v18 = vld [vmem:[%s3345_s1 + $0x2c0] sm:$0xff]   ;;  %v2704_v8 = vld [vmem:[%s3345_s1 + $0x3c8] sm:$0xff]  }
  0x46   : > { %2435 = vmatprep.subr.bf16.mxu0 %v2635_v19  ;;  %2457 = vmatprep.subr.bf16.mxu1 %v2636_v20  ;;  %v1236_v19 = vcombine.high %v1213_v12, %v1227_v38  ;;  %v1238_v20 = vcombine.high %v1220_v14, %v1234_v42  ;;  %v2709_v13 = vld [vmem:[%s3345_s1 + $0x300] sm:$0xff]  }
  0x47   : > { %v1530_v52 = vshll.u32 %v1519_v17, 16 }
  0x49   : > { %2436 = vmatpush3.bf16.msra.mxu0 %v2637_v21  ;;  %2458 = vmatpush3.bf16.msra.mxu1 %v2638_v22  ;;  %v1523_v21 = vrot.slane %v1521_v46, 6  ;;  %v1526_v22 = vrot.slane %v1524_v57, 7 }
  0x4a   : > { %2437 = vmatprep.subr.bf16.mxu0 %v2639_v23  ;;  %2459 = vmatprep.subr.bf16.mxu1 %v2640_v24  ;;  %v2677_v23 = vld [vmem:[%s3345_s1 + $0x200] sm:$0xff]  }
  0x4b   : > { %v2678_v24 = vld [vmem:[%s3345_s1 + $0x280] sm:$0xff]  }
  0x4d   : > { %2438 = vmatpush3.bf16.msra.mxu0 %v2641_v25  ;;  %2460 = vmatpush3.bf16.msra.mxu1 %v2642_v26  ;;  %v1527_v25 = vor.u32 %v1526_v22, %v1523_v21  ;;  %v1532_v26 = vrot.slane %v1530_v52, 7 }
  0x4e   : > { %2439 = vmatprep.subr.bf16.mxu0 %v2643_v28  ;;  %2461 = vmatprep.subr.bf16.mxu1 %v2644_v29  ;;  %v2679_v28 = vld [vmem:[%s3345_s1 + $0x378] sm:$0xff]  }
  0x4f   : > { %v2680_v29 = vld [vmem:[%s3345_s1 + $0x3f8] sm:$0xff]  }
  0x51   : > { %2440 = vmatpush3.bf16.msra.mxu0 %v2645_v30  ;;  %2462 = vmatpush3.bf16.msra.mxu1 %v2646_v35  ;;  %v1528_v30 = vrot.slane %v1527_v25, 2  ;;  %v2681_v35 = vld [vmem:[%s3345_s1 + $0x338] sm:$0xff]  }
  0x52   : > { %2469 = vmatprep.subr.bf16.mxu0 %v2647_v36  ;;  %2491 = vmatprep.subr.bf16.mxu1 %v2648_v32  ;;  %v1235_v36 = vcombine.low %v1213_v12, %v1227_v38  ;;  %v1237_v32 = vcombine.low %v1220_v14, %v1234_v42  ;;  %v2708_v12 = vld [vmem:[%s3345_s1 + $0x3c0] sm:$0xff]  }
  0x53   : > { %v2710_v14 = vld [vmem:[%s3345_s1 + $0x380] sm:$0xff]  }
  0x54   : > { %1072 = vmatmul.mubr.bf16.vlgmr.msra.gmra.mxu0 %v839_v44  ;;  %1113 = vmatmul.mubr.bf16.vlgmr.msra.gmra.mxu1 %v841_v45  ;;  %v1533_v44 = vsel %vm2940_vm6, %v1528_v30, %v1532_v26  ;;  %v3220_v45 = vrot.slane %v1599_v41, %v2962_v39  ;;  %v2684_v41 = vld [vmem:[%s3345_s1 + $0x3f0] sm:$0xff]  }
  0x55   : > { %2470 = vmatpush3.bf16.msra.mxu0 %v2649_v40  ;;  %2492 = vmatpush3.bf16.msra.mxu1 %v2650_v48  ;;  %v2682_v40 = vld [vmem:[%s3345_s1 + $0x3b8] sm:$0xff]   ;;  %v2683_v48 = vld [vmem:[%s3345_s1 + $0x370] sm:$0xff]  }
  0x56   : > { %2471 = vmatprep.subr.bf16.mxu0 %v2651_v49  ;;  %2493 = vmatprep.subr.bf16.mxu1 %v2652_v53  ;;  %v1601_v49 = vcombine.low %v2972_v43, %v1533_v44  ;;  %v1602_v53 = vcombine.high %v2972_v43, %v1533_v44 }
  0x57   : > { %1467 = vmatprep.mubr.bf16.mxu0 %v1236_v19  ;;  %1508 = vmatprep.mubr.bf16.mxu1 %v1238_v20 }
  0x58   : > { %v3243_v43 = vrot.slane %v1602_v53, %v2962_v39 }
  0x59   : > { %2472 = vmatpush3.bf16.msra.mxu0 %v2653_v50  ;;  %2494 = vmatpush3.bf16.msra.mxu1 %v2654_v51  ;;  %v2685_v50 = vld [vmem:[%s3345_s1 + $0x330] sm:$0xff]   ;;  %v3240_v51 = vrot.slane %v1601_v49, %v2962_v39  ;;  %v2688_v39 = vld [vmem:[%s3345_s1 + $0x3e8] sm:$0xff]  }
  0x5a   : > { %2473 = vmatprep.subr.bf16.mxu0 %v2655_v54  ;;  %2495 = vmatprep.subr.bf16.mxu1 %v2656_v55  ;;  %v1634_v54 = vcombine.high %v3231_v7, %v3243_v43  ;;  %v2689_v55 = vld [vmem:[%s3345_s1 + $0x328] sm:$0xff]   ;;  %v1633_v16 = vcombine.low %v3231_v7, %v3243_v43 }
  0x5b   : > { %v1632_v33 = vcombine.high %v3220_v45, %v3240_v51  ;;  %v1631_v15 = vcombine.low %v3220_v45, %v3240_v51 }
  0x5d   : > { %2474 = vmatpush3.bf16.msra.mxu0 %v2657_v56  ;;  %2496 = vmatpush3.bf16.msra.mxu1 %v2658_v58  ;;  %v2690_v56 = vld [vmem:[%s3345_s1 + $0x3a8] sm:$0xff]   ;;  %v2691_v58 = vld [vmem:[%s3345_s1 + $0x360] sm:$0xff]  }
  0x5e   : > { %2475 = vmatprep.subr.bf16.mxu0 %v2659_v59  ;;  %2497 = vmatprep.subr.bf16.mxu1 %v2660_v60  ;;  %v2692_v59 = vld [vmem:[%s3345_s1 + $0x3e0] sm:$0xff]  }
  0x5f   : > { %v2693_v60 = vld [vmem:[%s3345_s1 + $0x320] sm:$0xff]  }
  0x61   : > { %2476 = vmatpush3.bf16.msra.mxu0 %v2661_v61  ;;  %2498 = vmatpush3.bf16.msra.mxu1 %v2662_v62  ;;  %v2694_v61 = vld [vmem:[%s3345_s1 + $0x3a0] sm:$0xff]   ;;  %v2695_v62 = vld [vmem:[%s3345_s1 + $0x358] sm:$0xff]  }
  0x62   : > { %2477 = vmatprep.subr.bf16.mxu0 %v2663_v63  ;;  %2499 = vmatprep.subr.bf16.mxu1 %v2664_v0  ;;  %v2696_v63 = vld [vmem:[%s3345_s1 + $0x3d8] sm:$0xff]  }
  0x63   : > { %v2697_v0 = vld [vmem:[%s3345_s1 + $0x318] sm:$0xff]  }
  0x65   : > { %2478 = vmatpush3.bf16.msra.mxu0 %v2665_v1  ;;  %2500 = vmatpush3.bf16.msra.mxu1 %v2666_v2  ;;  %v2698_v1 = vld [vmem:[%s3345_s1 + $0x398] sm:$0xff]   ;;  %v2699_v2 = vld [vmem:[%s3345_s1 + $0x350] sm:$0xff]  }
  0x66   : > { %2479 = vmatprep.subr.bf16.mxu0 %v2667_v3  ;;  %2501 = vmatprep.subr.bf16.mxu1 %v2668_v4  ;;  %v2700_v3 = vld [vmem:[%s3345_s1 + $0x3d0] sm:$0xff]  }
  0x67   : > { %v2701_v4 = vld [vmem:[%s3345_s1 + $0x310] sm:$0xff]  }
  0x69   : > { %2480 = vmatpush3.bf16.msra.mxu0 %v2669_v5  ;;  %2502 = vmatpush3.bf16.msra.mxu1 %v2670_v6  ;;  %v2702_v5 = vld [vmem:[%s3345_s1 + $0x390] sm:$0xff]   ;;  %v2703_v6 = vld [vmem:[%s3345_s1 + $0x348] sm:$0xff]  }
  0x6a   : > { %2481 = vmatprep.subr.bf16.mxu0 %v2671_v9  ;;  %2503 = vmatprep.subr.bf16.mxu1 %v2672_v10  ;;  %v2705_v9 = vld [vmem:[%s3345_s1 + $0x308] sm:$0xff]  }
  0x6b   : > { %v2706_v10 = vld [vmem:[%s3345_s1 + $0x388] sm:$0xff]  }
  0x6d   : > { %2482 = vmatpush3.bf16.msra.mxu0 %v2673_v47  ;;  %2504 = vmatpush3.bf16.msra.mxu1 %v2674_v34 }
  0x6e   : > { %2483 = vmatprep.subr.bf16.mxu0 %v2675_v37  ;;  %2505 = vmatprep.subr.bf16.mxu1 %v2676_v18 }
  0x71   : > { %2484 = vmatpush3.bf16.msra.mxu0 %v2677_v23  ;;  %2506 = vmatpush3.bf16.msra.mxu1 %v2678_v24 }
  0x72   : > { %2513 = vmatprep.subr.bf16.mxu0 %v2679_v28  ;;  %2535 = vmatprep.subr.bf16.mxu1 %v2680_v29 }
  0x74   : > { %1468 = vmatmul.mubr.bf16.vlgmr.msra.gmra.mxu0 %v1235_v36  ;;  %1509 = vmatmul.mubr.bf16.vlgmr.msra.gmra.mxu1 %v1237_v32 }
  0x75   : > { %2514 = vmatpush3.bf16.msra.mxu0 %v2681_v35  ;;  %2536 = vmatpush3.bf16.msra.mxu1 %v2682_v40 }
  0x76   : > { %2515 = vmatprep.subr.bf16.mxu0 %v2683_v48  ;;  %2537 = vmatprep.subr.bf16.mxu1 %v2684_v41 }
  0x77   : > { %1863 = vmatprep.mubr.bf16.mxu0 %v1632_v33  ;;  %1904 = vmatprep.mubr.bf16.mxu1 %v1634_v54 }
  0x79   : > { %2516 = vmatpush3.bf16.msra.mxu0 %v2685_v50  ;;  %2538 = vmatpush3.bf16.msra.mxu1 %v2686_v27 }
  0x7a   : > { %2517 = vmatprep.subr.bf16.mxu0 %v2687_v31  ;;  %2539 = vmatprep.subr.bf16.mxu1 %v2688_v39 }
  0x7d   : > { %2518 = vmatpush3.bf16.msra.mxu0 %v2689_v55  ;;  %2540 = vmatpush3.bf16.msra.mxu1 %v2690_v56 }
  0x7e   : > { %2519 = vmatprep.subr.bf16.mxu0 %v2691_v58  ;;  %2541 = vmatprep.subr.bf16.mxu1 %v2692_v59 }
  0x81   : > { %2520 = vmatpush3.bf16.msra.mxu0 %v2693_v60  ;;  %2542 = vmatpush3.bf16.msra.mxu1 %v2694_v61 }
  0x82   : > { %2521 = vmatprep.subr.bf16.mxu0 %v2695_v62  ;;  %2543 = vmatprep.subr.bf16.mxu1 %v2696_v63 }
  0x85   : > { %2522 = vmatpush3.bf16.msra.mxu0 %v2697_v0  ;;  %2544 = vmatpush3.bf16.msra.mxu1 %v2698_v1 }
  0x86   : > { %2523 = vmatprep.subr.bf16.mxu0 %v2699_v2  ;;  %2545 = vmatprep.subr.bf16.mxu1 %v2700_v3 }
  0x89   : > { %2524 = vmatpush3.bf16.msra.mxu0 %v2701_v4  ;;  %2546 = vmatpush3.bf16.msra.mxu1 %v2702_v5  ;;  %v2378_v5 = vld [vmem:[%s3346_s2] ss:$0 sm:$0xff] }
  0x8a   : > { %2525 = vmatprep.subr.bf16.mxu0 %v2703_v6  ;;  %2547 = vmatprep.subr.bf16.mxu1 %v2704_v8 }
  0x8d   : > { %2526 = vmatpush3.bf16.msra.mxu0 %v2705_v9  ;;  %2548 = vmatpush3.bf16.msra.mxu1 %v2706_v10 }
  0x8e   : > { %2527 = vmatprep.subr.bf16.mxu0 %v2707_v11  ;;  %2549 = vmatprep.subr.bf16.mxu1 %v2708_v12 }
  0x91   : > { %2528 = vmatpush3.bf16.msra.mxu0 %v2709_v13  ;;  %2550 = vmatpush3.bf16.msra.mxu1 %v2710_v14 }
  0x94   : > { %1864 = vmatmul.mubr.bf16.vlgmr.msra.gmra.mxu0 %v1631_v15  ;;  %1905 = vmatmul.mubr.bf16.vlgmr.msra.gmra.mxu1 %v1633_v16 }
  0xf4   : > { %v2397_v17 = vpop.f32.mrf.mxu0  ;;  %v2419_v47 = vpop.f32.mrf.mxu1 }
  0xf6   : > { %v2398_v34 = vpop.f32.mrf.mxu0  ;;  %v2420_v38 = vpop.f32.mrf.mxu1 }
  0xf7   : > { %v2399_v30 = vadd.f32 %v2398_v34, %v2397_v17  ;;  %v2421_v35 = vadd.f32 %v2420_v38, %v2419_v47 }
  0xf8   : > { %v2400_v37 = vpop.f32.mrf.mxu0  ;;  %v2422_v42 = vpop.f32.mrf.mxu1 }
  0xf9   : > { %v801_v48 = vadd.f32 %v2421_v35, %v2399_v30 }
  0xfa   : > { %v2401_v46 = vpop.f32.mrf.mxu0  ;;  %v2423_v57 = vpop.f32.mrf.mxu1 }
  0xfb   : > { %v2402_v44 = vadd.f32 %v2401_v46, %v2400_v37  ;;  %v2424_v45 = vadd.f32 %v2423_v57, %v2422_v42 }
  0xfd   : > { %v804_v43 = vadd.f32 %v2424_v45, %v2402_v44 }
 0x114   : > { %v2441_v52 = vpop.f32.mrf.mxu0  ;;  %v2463_v18 = vpop.f32.mrf.mxu1 }
 0x116   : > { %v2442_v19 = vpop.f32.mrf.mxu0  ;;  %v2464_v20 = vpop.f32.mrf.mxu1 }
 0x117   : > { %v2443_v40 = vadd.f32 %v2442_v19, %v2441_v52  ;;  %v2465_v33 = vadd.f32 %v2464_v20, %v2463_v18 }
 0x118   : > { %v2444_v21 = vpop.f32.mrf.mxu0  ;;  %v2466_v22 = vpop.f32.mrf.mxu1 }
 0x119   : > { %v1074_v50 = vadd.f32 %v2443_v40, %v801_v48 }
 0x11a   : > { %v2445_v23 = vpop.f32.mrf.mxu0  ;;  %v2467_v24 = vpop.f32.mrf.mxu1 }
 0x11b   : > { %v2446_v51 = vadd.f32 %v2445_v23, %v2444_v21  ;;  %v1115_v59 = vadd.f32 %v2465_v33, %v1074_v50  ;;  %v2468_v1 = vadd.f32 %v2467_v24, %v2466_v22 }
 0x11d   : > { %v1077_v60 = vadd.f32 %v2446_v51, %v804_v43 }
 0x11f   : > { %v1118_v9 = vadd.f32 %v2468_v1, %v1077_v60 }
 0x134   : > { %v2485_v25 = vpop.f32.mrf.mxu0  ;;  %v2507_v26 = vpop.f32.mrf.mxu1 }
 0x136   : > { %v2486_v28 = vpop.f32.mrf.mxu0  ;;  %v2508_v29 = vpop.f32.mrf.mxu1 }
 0x137   : > { %v2487_v49 = vadd.f32 %v2486_v28, %v2485_v25  ;;  %v2509_v53 = vadd.f32 %v2508_v29, %v2507_v26 }
 0x138   : > { %v2488_v36 = vpop.f32.mrf.mxu0  ;;  %v2510_v32 = vpop.f32.mrf.mxu1 }
 0x139   : > { %v1511_v54 = vadd.f32 %v2509_v53, %v2487_v49 }
 0x13a   : > { %v2489_v7 = vpop.f32.mrf.mxu0  ;;  %v2511_v41 = vpop.f32.mrf.mxu1 }
 0x13b   : > { %v2490_v39 = vadd.f32 %v2489_v7, %v2488_v36  ;;  %v2512_v55 = vadd.f32 %v2511_v41, %v2510_v32  ;;  %v1517_v2 = vadd.f32 %v1511_v54, %v1115_v59 }
 0x13d   : > { %v1514_v3 = vadd.f32 %v2512_v55, %v2490_v39 }
 0x13f   : > { %v1518_v13 = vadd.f32 %v1514_v3, %v1118_v9 }
 0x154   : > { %v2529_v27 = vpop.f32.mrf.mxu0  ;;  %v2551_v31 = vpop.f32.mrf.mxu1 }
 0x156   : > { %v2530_v56 = vpop.f32.mrf.mxu0  ;;  %v2552_v58 = vpop.f32.mrf.mxu1 }
 0x157   : > { %v2531_v61 = vadd.f32 %v2530_v56, %v2529_v27  ;;  %v2553_v62 = vadd.f32 %v2552_v58, %v2551_v31 }
 0x158   : > { %v2532_v63 = vpop.f32.mrf.mxu0  ;;  %v2554_v0 = vpop.f32.mrf.mxu1 }
 0x159   : > { %v1907_v4 = vadd.f32 %v2553_v62, %v2531_v61 }
 0x15a   : > { %v2533_v6 = vpop.f32.mrf.mxu0  ;;  %v2555_v8 = vpop.f32.mrf.mxu1 }
 0x15b   : > { %v1913_v10 = vadd.f32 %v1907_v4, %v1517_v2  ;;  %v2534_v11 = vadd.f32 %v2533_v6, %v2532_v63  ;;  %v2556_v12 = vadd.f32 %v2555_v8, %v2554_v0 }
 0x15d   : > { %v1922_v14 = vadd.f32 %v2378_v5, %v1913_v10  ;;  %v1910_v15 = vadd.f32 %v2556_v12, %v2534_v11 }
 0x15f   : > { %v1914_v16 = vadd.f32 %v1910_v15, %v1518_v13  ;;  %v1926_v17 = vmul.f32 0.2, %v1922_v14  ;;  %vm1924_vm7 = vcmp.ge.f32.partialorder %v1922_v14, 0.0 }
 0x161   : > { %v1923_v47 = vadd.f32 %v2378_v5, %v1914_v16  ;;  %v1928_v38 = vsel %vm1924_vm7, %v1922_v14, %v1926_v17 }
 0x163   : > { %vm1925_vm8 = vcmp.ge.f32.partialorder %v1923_v47, 0.0  ;;  %v1927_v34 = vmul.f32 0.2, %v1923_v47 }
 0x165   : > { %v1929_v37 = vsel %vm1925_vm8, %v1923_v47, %v1927_v34 }
 0x166   : > { %v1930_v42 = vadd.f32 %v1929_v37, %v1928_v38 }
 0x168   : > { %v1931_v46 = vrot.slane %v1930_v42, 4 }
 0x16a   : > { %v1932_v57 = vadd.f32 %v1931_v46, %v1930_v42 }
 0x16c   : > { %v1933_v52 = vrot.slane %v1932_v57, 2 }
 0x16e   : > { %v1934_v18 = vadd.f32 %v1933_v52, %v1932_v57 }
 0x170   : > { %v1935_v19 = vrot.slane %v1934_v18, 1 }
 0x172   : > { %v1936_v20 = vadd.f32 %v1935_v19, %v1934_v18 }
 0x174   : > { %v1937_v21 = vmul.f32 0.0625, %v1936_v20 }
 0x176   : > { %1938 = vst [vmem:[%s217_s4] sm:$0x1] %v1937_v21 }
 0x177 PF: > { %s13_s14 = sadd.s32 1, %s2733_s14   ;;  %s3352_s12 = smov %s2729_s13 }
 0x178   : > { %p10_p5 = scmp.ge.s32.totalorder %s13_s14, 4   ;;  %s3353_s13 = smov %s3355_s15 }
 0x17a   :  { %12 = sbr.rel (!%p10_p5) target bundleno = 2 (0x2), region = 71 }

</bundles_post_ra>
